<compile_context>
chip_gen: v6e
topology: v6e:2x2x1
jax: 0.10.0
libtpu: 0.0.40
codegen_flags: <defaults>
</compile_context>

<pallas_src>
import jax
import jax.numpy as jnp
from jax.experimental import pallas as pl
from jax.experimental.pallas import tpu as pltpu

# ---- model hyper-parameters (small, consistent with the module's __init__) ----
INPUT_SIZE = 50      # vocab size for nn.Embedding
EMBED_SIZE = 16
HIDDEN_SIZE = 32
NUM_LAYERS = 2       # kernel below is specialized to 2 GRU layers
OUTPUT_SIZE = 40
SEQ_LEN = 8
BATCH = 4
DROPOUT_P = 0.0      # eval-mode / p=0 -> identity

HID_PAD = 128        # lane-aligned hidden width (per-gate block width too)
OUT_PAD = 128        # lane-aligned output-projection width


def decoder_gru_kernel(tok_ref, emb_ref, h0_ref,
                       wih0_ref, whh0_ref, bgi0_ref, bhhn0_ref,
                       wih1_ref, whh1_ref, bgi1_ref, bhhn1_ref,
                       wout_ref, bout_ref,
                       out_ref, hn_ref,
                       x_scratch, seq_scratch):
    """2-layer GRU over the full sequence + output Linear, all in VMEM.

    tok_ref : (S*B,) i32 SMEM          emb_ref : (V, 1, E) f32 VMEM
    h0_ref  : (L, B, HP) f32           wih*    : (E or HP, 3*GP) f32 (gate-padded)
    whh*    : (HP, 3*GP) f32           bgi*    : (1, 3*GP)  (b_ih with b_hh folded for r/z)
    bhhn*   : (1, GP)    (b_hn only)   wout    : (HP, OP)   bout : (1, OP)
    out_ref : (S*B, OP) f32            hn_ref  : (L, B, HP) f32
    x_scratch   : (S*B, E)  VMEM (gathered embeddings)
    seq_scratch : (S*B, HP) VMEM (flat per-layer output sequence)
    """
    SB, OP = out_ref.shape
    L, B, HP = hn_ref.shape
    GP = HP                      # per-gate lane-aligned block width
    S = SB // B

    # ---- fused embedding gather: tokens from SMEM, table rows from VMEM ----
    for i in range(SB):                              # SB = 32, fully unrolled
        tok = tok_ref[i]
        x_scratch[pl.ds(i, 1), :] = emb_ref[tok]     # (1, E) leading-dim dynamic load

    def run_layer(gi_all, whh_ref, bhhn_ref, h_init):
        # loop-invariant loads hoisted out of the time loop
        whh = whh_ref[...]                           # (HP, 3*GP)
        bhh_n = bhhn_ref[...]                        # (1, GP)
        h = h_init                                   # carried in vregs
        for t in range(S):                           # S = 8, fully unrolled
            r0 = t * B
            gi = gi_all[r0:r0 + B, :]                # static vreg slice (B, 3*GP)
            gh = jnp.dot(h, whh, preferred_element_type=jnp.float32)
            # PyTorch GRU gate order: [r, z, n]; each block is 128-lane aligned.
            r = jax.nn.sigmoid(gi[:, 0:GP] + gh[:, 0:GP])
            z = jax.nn.sigmoid(gi[:, GP:2 * GP] + gh[:, GP:2 * GP])
            n = jnp.tanh(gi[:, 2 * GP:3 * GP] + r * (gh[:, 2 * GP:3 * GP] + bhh_n))
            h = (1.0 - z) * n + z * h
            seq_scratch[pl.ds(r0, B), :] = h         # off the serial path
        return h

    # ---- layer 0: batched input projection (one matmul for whole sequence) ----
    gi0 = jnp.dot(x_scratch[...], wih0_ref[...],
                  preferred_element_type=jnp.float32) + bgi0_ref[...]
    hn_ref[0] = run_layer(gi0, whh0_ref, bhhn0_ref, h0_ref[0])

    # NOTE: inter-layer dropout is identity (p = 0.0 / eval mode).

    # ---- layer 1: input is layer-0's sequence (read before it is overwritten) ----
    gi1 = jnp.dot(seq_scratch[...], wih1_ref[...],
                  preferred_element_type=jnp.float32) + bgi1_ref[...]
    hn_ref[1] = run_layer(gi1, whh1_ref, bhhn1_ref, h0_ref[1])

    # ---- output projection: flat, lane-dense (S*B, OP) store ----
    out_ref[...] = jnp.dot(seq_scratch[...], wout_ref[...],
                           preferred_element_type=jnp.float32) + bout_ref[...]


@jax.jit
def decoder_rnn_forward(inp_tokens, h0, params):
    """inp_tokens: (S, B) int32; h0: (L, B, H) f32. Returns (output1, hidden)."""
    S, B = inp_tokens.shape
    L = h0.shape[0]
    H, E, O = HIDDEN_SIZE, EMBED_SIZE, OUTPUT_SIZE
    HP, GP, OP = HID_PAD, HID_PAD, OUT_PAD
    f32 = jnp.float32

    # ---- gate-aligned / lane-padded parameter layout (tiny, done under jit) ----
    def gate_pad_cols(w):                    # (in, 3H) -> (in, 3*GP), gates at 128-lane blocks
        in_dim = w.shape[0]
        out = jnp.zeros((in_dim, 3 * GP), f32)
        for g in range(3):
            out = out.at[:, g * GP:g * GP + H].set(w[:, g * H:(g + 1) * H])
        return out

    def pad_rows(w, rows):                   # zero-pad contraction dim (padded h cols stay 0)
        return jnp.zeros((rows, w.shape[1]), f32).at[:w.shape[0], :].set(w)

    def gi_bias(b_ih, b_hh):                 # fold r/z hh-bias into the batched gi bias
        comb = jnp.concatenate(
            [b_ih[:, :2 * H] + b_hh[:, :2 * H], b_ih[:, 2 * H:]], axis=1)
        return gate_pad_cols(comb)

    def hh_n_bias(b_hh):                     # b_hn must stay inside r*(...)
        return jnp.zeros((1, GP), f32).at[:, :H].set(b_hh[:, 2 * H:])

    wih0 = gate_pad_cols(params["w_ih_T"][0])                        # (E, 3*GP)
    whh0 = pad_rows(gate_pad_cols(params["w_hh_T"][0]), HP)          # (HP, 3*GP)
    wih1 = pad_rows(gate_pad_cols(params["w_ih_T"][1]), HP)
    whh1 = pad_rows(gate_pad_cols(params["w_hh_T"][1]), HP)
    bgi0 = gi_bias(params["b_ih"][0], params["b_hh"][0])
    bhhn0 = hh_n_bias(params["b_hh"][0])
    bgi1 = gi_bias(params["b_ih"][1], params["b_hh"][1])
    bhhn1 = hh_n_bias(params["b_hh"][1])

    wout = pad_rows(jnp.zeros((H, OP), f32).at[:, :O].set(params["w_out_T"]), HP)
    bout = jnp.zeros((1, OP), f32).at[:, :O].set(params["b_out"])

    h0_pad = jnp.zeros((L, B, HP), f32).at[:, :, :H].set(h0)
    emb_tbl = params["embedding"].reshape(INPUT_SIZE, 1, E)   # leading-dim dynamic gather in-kernel
    toks = inp_tokens.reshape(S * B).astype(jnp.int32)

    # advisory cost hint for the surrounding XLA schedule
    flops = (2 * S * B * (E + HP) * 3 * GP            # batched gi (both layers)
             + 2 * L * S * B * HP * 3 * GP            # recurrent gh per step
             + 2 * S * B * HP * OP)                   # output projection
    cost = pl.CostEstimate(
        flops=flops,
        transcendentals=3 * L * S * B * GP,
        bytes_accessed=4 * (3 * HP * 3 * GP + E * 3 * GP + HP * OP
                            + S * B * (E + HP + OP) + L * B * HP))

    vmem = lambda: pl.BlockSpec(memory_space=pltpu.MemorySpace.VMEM)
    smem = pl.BlockSpec(memory_space=pltpu.MemorySpace.SMEM)

    out_flat, hn_pad = pl.pallas_call(
        decoder_gru_kernel,
        out_shape=(
            jax.ShapeDtypeStruct((S * B, OP), f32),   # lane-dense logits slab
            jax.ShapeDtypeStruct((L, B, HP), f32),    # lane-dense hidden slab
        ),
        in_specs=[smem] + [vmem() for _ in range(12)],
        out_specs=(vmem(), vmem()),
        scratch_shapes=[
            pltpu.VMEM((S * B, E), f32),    # gathered embeddings
            pltpu.VMEM((S * B, HP), f32),   # flat per-layer output sequence
        ],
        cost_estimate=cost,
    )(toks, emb_tbl, h0_pad,
      wih0, whh0, bgi0, bhhn0,
      wih1, whh1, bgi1, bhhn1,
      wout, bout)

    output1 = out_flat.reshape(S, B, OP)[:, :, :O]
    hidden = hn_pad[:, :, :H]
    return output1, hidden


def init_params(key):
    """Deterministic synthetic parameters, PyTorch shapes pre-transposed for the kernel."""
    ks = jax.random.split(key, 16)
    i = iter(range(16))
    scale = 0.1

    embedding = scale * jax.random.normal(ks[next(i)], (INPUT_SIZE, EMBED_SIZE), jnp.float32)

    w_ih_T, w_hh_T, b_ih, b_hh = [], [], [], []
    for layer in range(NUM_LAYERS):
        in_dim = EMBED_SIZE if layer == 0 else HIDDEN_SIZE
        # torch: weight_ih_l{k} (3H, in_dim), weight_hh_l{k} (3H, H)  -> transposed
        w_ih_T.append(scale * jax.random.normal(ks[next(i)], (in_dim, 3 * HIDDEN_SIZE), jnp.float32))
        w_hh_T.append(scale * jax.random.normal(ks[next(i)], (HIDDEN_SIZE, 3 * HIDDEN_SIZE), jnp.float32))
        b_ih.append(scale * jax.random.normal(ks[next(i)], (1, 3 * HIDDEN_SIZE), jnp.float32))
        b_hh.append(scale * jax.random.normal(ks[next(i)], (1, 3 * HIDDEN_SIZE), jnp.float32))

    # torch: out.weight (O, H) -> transposed to (H, O)
    w_out_T = scale * jax.random.normal(ks[next(i)], (HIDDEN_SIZE, OUTPUT_SIZE), jnp.float32)
    b_out = scale * jax.random.normal(ks[next(i)], (1, OUTPUT_SIZE), jnp.float32)

    return {
        "embedding": embedding,
        "w_ih_T": w_ih_T, "w_hh_T": w_hh_T, "b_ih": b_ih, "b_hh": b_hh,
        "w_out_T": w_out_T, "b_out": b_out,
    }


def reference_forward(inp_tokens, h0, params):
    """Pure-JAX reference (mirrors torch GRU equations) for correctness check."""
    emb = jnp.take(params["embedding"], inp_tokens, axis=0)      # (S, B, E)
    H = HIDDEN_SIZE
    x_seq = emb
    h_final = []
    for layer in range(NUM_LAYERS):
        wihT = params["w_ih_T"][layer]
        whhT = params["w_hh_T"][layer]
        bi = params["b_ih"][layer]
        bh = params["b_hh"][layer]
        h = h0[layer]
        outs = []
        for t in range(x_seq.shape[0]):
            gi = x_seq[t] @ wihT + bi
            gh = h @ whhT + bh
            r = jax.nn.sigmoid(gi[:, :H] + gh[:, :H])
            z = jax.nn.sigmoid(gi[:, H:2 * H] + gh[:, H:2 * H])
            n = jnp.tanh(gi[:, 2 * H:] + r * gh[:, 2 * H:])
            h = (1.0 - z) * n + z * h
            outs.append(h)
        x_seq = jnp.stack(outs, axis=0)
        h_final.append(h)
    out1 = x_seq @ params["w_out_T"] + params["b_out"]
    return out1, jnp.stack(h_final, axis=0)


if __name__ == "__main__":
    key = jax.random.PRNGKey(0)
    k_param, k_inp = jax.random.split(key)

    params = init_params(k_param)
    inp = jax.random.randint(k_inp, (SEQ_LEN, BATCH), 0, INPUT_SIZE, dtype=jnp.int32)
    # initHidden(): zeros(num_layers, batch, hidden)
    h0 = jnp.zeros((NUM_LAYERS, BATCH, HIDDEN_SIZE), jnp.float32)

    out1, hn = decoder_rnn_forward(inp, h0, params)
    jax.block_until_ready((out1, hn))

    ref_out1, ref_hn = reference_forward(inp, h0, params)
    assert out1.shape == (SEQ_LEN, BATCH, OUTPUT_SIZE)
    assert hn.shape == (NUM_LAYERS, BATCH, HIDDEN_SIZE)
    assert jnp.allclose(out1, ref_out1, rtol=1e-4, atol=1e-4)
    assert jnp.allclose(hn, ref_hn, rtol=1e-4, atol=1e-4)

    print("KERNEL_OK")
</pallas_src>

<mosaic_0001>
module attributes {stable_mosaic.version = 11 : i64} {
  func.func @decoder_gru_kernel(%arg0: memref<32xi32, #tpu.memory_space<smem>>, %arg1: memref<50x1x16xf32, #tpu.memory_space<vmem>>, %arg2: memref<2x4x128xf32, #tpu.memory_space<vmem>>, %arg3: memref<16x384xf32, #tpu.memory_space<vmem>>, %arg4: memref<128x384xf32, #tpu.memory_space<vmem>>, %arg5: memref<1x384xf32, #tpu.memory_space<vmem>>, %arg6: memref<1x128xf32, #tpu.memory_space<vmem>>, %arg7: memref<128x384xf32, #tpu.memory_space<vmem>>, %arg8: memref<128x384xf32, #tpu.memory_space<vmem>>, %arg9: memref<1x384xf32, #tpu.memory_space<vmem>>, %arg10: memref<1x128xf32, #tpu.memory_space<vmem>>, %arg11: memref<128x128xf32, #tpu.memory_space<vmem>>, %arg12: memref<1x128xf32, #tpu.memory_space<vmem>>, %arg13: memref<32x128xf32, #tpu.memory_space<vmem>>, %arg14: memref<2x4x128xf32, #tpu.memory_space<vmem>>, %arg15: memref<32x16xf32, #tpu.memory_space<vmem>>, %arg16: memref<32x128xf32, #tpu.memory_space<vmem>>) attributes {dimension_semantics = [], scalar_prefetch = 0 : i64, scratch_operands = 2 : i64, tpu.core_type = #tpu.core_type<tc>} {
    %c0 = arith.constant 0 : index
    %0 = memref.load %arg0[%c0] : memref<32xi32, #tpu.memory_space<smem>>
    %1 = arith.index_cast %0 : i32 to index
    %c0_0 = arith.constant 0 : index
    %c0_1 = arith.constant 0 : index
    %2 = vector.load %arg1[%1, %c0_0, %c0_1] : memref<50x1x16xf32, #tpu.memory_space<vmem>>, vector<1x1x16xf32>
    %3 = vector.shape_cast %2 : vector<1x1x16xf32> to vector<1x16xf32>
    %c0_2 = arith.constant 0 : index
    %c0_3 = arith.constant 0 : index
    %4 = vector.load %arg15[%c0_2, %c0_3] : memref<32x16xf32, #tpu.memory_space<vmem>>, vector<1x16xf32>
    tpu.vector_store %arg15[%c0_2, %c0_3], %3 {strides = array<i32>} : memref<32x16xf32, #tpu.memory_space<vmem>>, vector<1x16xf32>,
    %c1 = arith.constant 1 : index
    %5 = memref.load %arg0[%c1] : memref<32xi32, #tpu.memory_space<smem>>
    %6 = arith.index_cast %5 : i32 to index
    %c0_4 = arith.constant 0 : index
    %c0_5 = arith.constant 0 : index
    %7 = vector.load %arg1[%6, %c0_4, %c0_5] : memref<50x1x16xf32, #tpu.memory_space<vmem>>, vector<1x1x16xf32>
    %8 = vector.shape_cast %7 : vector<1x1x16xf32> to vector<1x16xf32>
    %c1_6 = arith.constant 1 : index
    %c0_7 = arith.constant 0 : index
    %9 = vector.load %arg15[%c1_6, %c0_7] : memref<32x16xf32, #tpu.memory_space<vmem>>, vector<1x16xf32>
    tpu.vector_store %arg15[%c1_6, %c0_7], %8 {strides = array<i32>} : memref<32x16xf32, #tpu.memory_space<vmem>>, vector<1x16xf32>,
    %c2 = arith.constant 2 : index
    %10 = memref.load %arg0[%c2] : memref<32xi32, #tpu.memory_space<smem>>
    %11 = arith.index_cast %10 : i32 to index
    %c0_8 = arith.constant 0 : index
    %c0_9 = arith.constant 0 : index
    %12 = vector.load %arg1[%11, %c0_8, %c0_9] : memref<50x1x16xf32, #tpu.memory_space<vmem>>, vector<1x1x16xf32>
    %13 = vector.shape_cast %12 : vector<1x1x16xf32> to vector<1x16xf32>
    %c2_10 = arith.constant 2 : index
    %c0_11 = arith.constant 0 : index
    %14 = vector.load %arg15[%c2_10, %c0_11] : memref<32x16xf32, #tpu.memory_space<vmem>>, vector<1x16xf32>
    tpu.vector_store %arg15[%c2_10, %c0_11], %13 {strides = array<i32>} : memref<32x16xf32, #tpu.memory_space<vmem>>, vector<1x16xf32>,
    %c3 = arith.constant 3 : index
    %15 = memref.load %arg0[%c3] : memref<32xi32, #tpu.memory_space<smem>>
    %16 = arith.index_cast %15 : i32 to index
    %c0_12 = arith.constant 0 : index
    %c0_13 = arith.constant 0 : index
    %17 = vector.load %arg1[%16, %c0_12, %c0_13] : memref<50x1x16xf32, #tpu.memory_space<vmem>>, vector<1x1x16xf32>
    %18 = vector.shape_cast %17 : vector<1x1x16xf32> to vector<1x16xf32>
    %c3_14 = arith.constant 3 : index
    %c0_15 = arith.constant 0 : index
    %19 = vector.load %arg15[%c3_14, %c0_15] : memref<32x16xf32, #tpu.memory_space<vmem>>, vector<1x16xf32>
    tpu.vector_store %arg15[%c3_14, %c0_15], %18 {strides = array<i32>} : memref<32x16xf32, #tpu.memory_space<vmem>>, vector<1x16xf32>,
    %c4 = arith.constant 4 : index
    %20 = memref.load %arg0[%c4] : memref<32xi32, #tpu.memory_space<smem>>
    %21 = arith.index_cast %20 : i32 to index
    %c0_16 = arith.constant 0 : index
    %c0_17 = arith.constant 0 : index
    %22 = vector.load %arg1[%21, %c0_16, %c0_17] : memref<50x1x16xf32, #tpu.memory_space<vmem>>, vector<1x1x16xf32>
    %23 = vector.shape_cast %22 : vector<1x1x16xf32> to vector<1x16xf32>
    %c4_18 = arith.constant 4 : index
    %c0_19 = arith.constant 0 : index
    %24 = vector.load %arg15[%c4_18, %c0_19] : memref<32x16xf32, #tpu.memory_space<vmem>>, vector<1x16xf32>
    tpu.vector_store %arg15[%c4_18, %c0_19], %23 {strides = array<i32>} : memref<32x16xf32, #tpu.memory_space<vmem>>, vector<1x16xf32>,
    %c5 = arith.constant 5 : index
    %25 = memref.load %arg0[%c5] : memref<32xi32, #tpu.memory_space<smem>>
    %26 = arith.index_cast %25 : i32 to index
    %c0_20 = arith.constant 0 : index
    %c0_21 = arith.constant 0 : index
    %27 = vector.load %arg1[%26, %c0_20, %c0_21] : memref<50x1x16xf32, #tpu.memory_space<vmem>>, vector<1x1x16xf32>
    %28 = vector.shape_cast %27 : vector<1x1x16xf32> to vector<1x16xf32>
    %c5_22 = arith.constant 5 : index
    %c0_23 = arith.constant 0 : index
    %29 = vector.load %arg15[%c5_22, %c0_23] : memref<32x16xf32, #tpu.memory_space<vmem>>, vector<1x16xf32>
    tpu.vector_store %arg15[%c5_22, %c0_23], %28 {strides = array<i32>} : memref<32x16xf32, #tpu.memory_space<vmem>>, vector<1x16xf32>,
    %c6 = arith.constant 6 : index
    %30 = memref.load %arg0[%c6] : memref<32xi32, #tpu.memory_space<smem>>
    %31 = arith.index_cast %30 : i32 to index
    %c0_24 = arith.constant 0 : index
    %c0_25 = arith.constant 0 : index
    %32 = vector.load %arg1[%31, %c0_24, %c0_25] : memref<50x1x16xf32, #tpu.memory_space<vmem>>, vector<1x1x16xf32>
    %33 = vector.shape_cast %32 : vector<1x1x16xf32> to vector<1x16xf32>
    %c6_26 = arith.constant 6 : index
    %c0_27 = arith.constant 0 : index
    %34 = vector.load %arg15[%c6_26, %c0_27] : memref<32x16xf32, #tpu.memory_space<vmem>>, vector<1x16xf32>
    tpu.vector_store %arg15[%c6_26, %c0_27], %33 {strides = array<i32>} : memref<32x16xf32, #tpu.memory_space<vmem>>, vector<1x16xf32>,
    %c7 = arith.constant 7 : index
    %35 = memref.load %arg0[%c7] : memref<32xi32, #tpu.memory_space<smem>>
    %36 = arith.index_cast %35 : i32 to index
    %c0_28 = arith.constant 0 : index
    %c0_29 = arith.constant 0 : index
    %37 = vector.load %arg1[%36, %c0_28, %c0_29] : memref<50x1x16xf32, #tpu.memory_space<vmem>>, vector<1x1x16xf32>
    %38 = vector.shape_cast %37 : vector<1x1x16xf32> to vector<1x16xf32>
    %c7_30 = arith.constant 7 : index
    %c0_31 = arith.constant 0 : index
    %39 = vector.load %arg15[%c7_30, %c0_31] : memref<32x16xf32, #tpu.memory_space<vmem>>, vector<1x16xf32>
    tpu.vector_store %arg15[%c7_30, %c0_31], %38 {strides = array<i32>} : memref<32x16xf32, #tpu.memory_space<vmem>>, vector<1x16xf32>,
    %c8 = arith.constant 8 : index
    %40 = memref.load %arg0[%c8] : memref<32xi32, #tpu.memory_space<smem>>
    %41 = arith.index_cast %40 : i32 to index
    %c0_32 = arith.constant 0 : index
    %c0_33 = arith.constant 0 : index
    %42 = vector.load %arg1[%41, %c0_32, %c0_33] : memref<50x1x16xf32, #tpu.memory_space<vmem>>, vector<1x1x16xf32>
    %43 = vector.shape_cast %42 : vector<1x1x16xf32> to vector<1x16xf32>
    %c8_34 = arith.constant 8 : index
    %c0_35 = arith.constant 0 : index
    %44 = vector.load %arg15[%c8_34, %c0_35] : memref<32x16xf32, #tpu.memory_space<vmem>>, vector<1x16xf32>
    tpu.vector_store %arg15[%c8_34, %c0_35], %43 {strides = array<i32>} : memref<32x16xf32, #tpu.memory_space<vmem>>, vector<1x16xf32>,
    %c9 = arith.constant 9 : index
    %45 = memref.load %arg0[%c9] : memref<32xi32, #tpu.memory_space<smem>>
    %46 = arith.index_cast %45 : i32 to index
    %c0_36 = arith.constant 0 : index
    %c0_37 = arith.constant 0 : index
    %47 = vector.load %arg1[%46, %c0_36, %c0_37] : memref<50x1x16xf32, #tpu.memory_space<vmem>>, vector<1x1x16xf32>
    %48 = vector.shape_cast %47 : vector<1x1x16xf32> to vector<1x16xf32>
    %c9_38 = arith.constant 9 : index
    %c0_39 = arith.constant 0 : index
    %49 = vector.load %arg15[%c9_38, %c0_39] : memref<32x16xf32, #tpu.memory_space<vmem>>, vector<1x16xf32>
    tpu.vector_store %arg15[%c9_38, %c0_39], %48 {strides = array<i32>} : memref<32x16xf32, #tpu.memory_space<vmem>>, vector<1x16xf32>,
    %c10 = arith.constant 10 : index
    %50 = memref.load %arg0[%c10] : memref<32xi32, #tpu.memory_space<smem>>
    %51 = arith.index_cast %50 : i32 to index
    %c0_40 = arith.constant 0 : index
    %c0_41 = arith.constant 0 : index
    %52 = vector.load %arg1[%51, %c0_40, %c0_41] : memref<50x1x16xf32, #tpu.memory_space<vmem>>, vector<1x1x16xf32>
    %53 = vector.shape_cast %52 : vector<1x1x16xf32> to vector<1x16xf32>
    %c10_42 = arith.constant 10 : index
    %c0_43 = arith.constant 0 : index
    %54 = vector.load %arg15[%c10_42, %c0_43] : memref<32x16xf32, #tpu.memory_space<vmem>>, vector<1x16xf32>
    tpu.vector_store %arg15[%c10_42, %c0_43], %53 {strides = array<i32>} : memref<32x16xf32, #tpu.memory_space<vmem>>, vector<1x16xf32>,
    %c11 = arith.constant 11 : index
    %55 = memref.load %arg0[%c11] : memref<32xi32, #tpu.memory_space<smem>>
    %56 = arith.index_cast %55 : i32 to index
    %c0_44 = arith.constant 0 : index
    %c0_45 = arith.constant 0 : index
    %57 = vector.load %arg1[%56, %c0_44, %c0_45] : memref<50x1x16xf32, #tpu.memory_space<vmem>>, vector<1x1x16xf32>
    %58 = vector.shape_cast %57 : vector<1x1x16xf32> to vector<1x16xf32>
    %c11_46 = arith.constant 11 : index
    %c0_47 = arith.constant 0 : index
    %59 = vector.load %arg15[%c11_46, %c0_47] : memref<32x16xf32, #tpu.memory_space<vmem>>, vector<1x16xf32>
    tpu.vector_store %arg15[%c11_46, %c0_47], %58 {strides = array<i32>} : memref<32x16xf32, #tpu.memory_space<vmem>>, vector<1x16xf32>,
    %c12 = arith.constant 12 : index
    %60 = memref.load %arg0[%c12] : memref<32xi32, #tpu.memory_space<smem>>
    %61 = arith.index_cast %60 : i32 to index
    %c0_48 = arith.constant 0 : index
    %c0_49 = arith.constant 0 : index
    %62 = vector.load %arg1[%61, %c0_48, %c0_49] : memref<50x1x16xf32, #tpu.memory_space<vmem>>, vector<1x1x16xf32>
    %63 = vector.shape_cast %62 : vector<1x1x16xf32> to vector<1x16xf32>
    %c12_50 = arith.constant 12 : index
    %c0_51 = arith.constant 0 : index
    %64 = vector.load %arg15[%c12_50, %c0_51] : memref<32x16xf32, #tpu.memory_space<vmem>>, vector<1x16xf32>
    tpu.vector_store %arg15[%c12_50, %c0_51], %63 {strides = array<i32>} : memref<32x16xf32, #tpu.memory_space<vmem>>, vector<1x16xf32>,
    %c13 = arith.constant 13 : index
    %65 = memref.load %arg0[%c13] : memref<32xi32, #tpu.memory_space<smem>>
    %66 = arith.index_cast %65 : i32 to index
    %c0_52 = arith.constant 0 : index
    %c0_53 = arith.constant 0 : index
    %67 = vector.load %arg1[%66, %c0_52, %c0_53] : memref<50x1x16xf32, #tpu.memory_space<vmem>>, vector<1x1x16xf32>
    %68 = vector.shape_cast %67 : vector<1x1x16xf32> to vector<1x16xf32>
    %c13_54 = arith.constant 13 : index
    %c0_55 = arith.constant 0 : index
    %69 = vector.load %arg15[%c13_54, %c0_55] : memref<32x16xf32, #tpu.memory_space<vmem>>, vector<1x16xf32>
    tpu.vector_store %arg15[%c13_54, %c0_55], %68 {strides = array<i32>} : memref<32x16xf32, #tpu.memory_space<vmem>>, vector<1x16xf32>,
    %c14 = arith.constant 14 : index
    %70 = memref.load %arg0[%c14] : memref<32xi32, #tpu.memory_space<smem>>
    %71 = arith.index_cast %70 : i32 to index
    %c0_56 = arith.constant 0 : index
    %c0_57 = arith.constant 0 : index
    %72 = vector.load %arg1[%71, %c0_56, %c0_57] : memref<50x1x16xf32, #tpu.memory_space<vmem>>, vector<1x1x16xf32>
    %73 = vector.shape_cast %72 : vector<1x1x16xf32> to vector<1x16xf32>
    %c14_58 = arith.constant 14 : index
    %c0_59 = arith.constant 0 : index
    %74 = vector.load %arg15[%c14_58, %c0_59] : memref<32x16xf32, #tpu.memory_space<vmem>>, vector<1x16xf32>
    tpu.vector_store %arg15[%c14_58, %c0_59], %73 {strides = array<i32>} : memref<32x16xf32, #tpu.memory_space<vmem>>, vector<1x16xf32>,
    %c15 = arith.constant 15 : index
    %75 = memref.load %arg0[%c15] : memref<32xi32, #tpu.memory_space<smem>>
    %76 = arith.index_cast %75 : i32 to index
    %c0_60 = arith.constant 0 : index
    %c0_61 = arith.constant 0 : index
    %77 = vector.load %arg1[%76, %c0_60, %c0_61] : memref<50x1x16xf32, #tpu.memory_space<vmem>>, vector<1x1x16xf32>
    %78 = vector.shape_cast %77 : vector<1x1x16xf32> to vector<1x16xf32>
    %c15_62 = arith.constant 15 : index
    %c0_63 = arith.constant 0 : index
    %79 = vector.load %arg15[%c15_62, %c0_63] : memref<32x16xf32, #tpu.memory_space<vmem>>, vector<1x16xf32>
    tpu.vector_store %arg15[%c15_62, %c0_63], %78 {strides = array<i32>} : memref<32x16xf32, #tpu.memory_space<vmem>>, vector<1x16xf32>,
    %c16 = arith.constant 16 : index
    %80 = memref.load %arg0[%c16] : memref<32xi32, #tpu.memory_space<smem>>
    %81 = arith.index_cast %80 : i32 to index
    %c0_64 = arith.constant 0 : index
    %c0_65 = arith.constant 0 : index
    %82 = vector.load %arg1[%81, %c0_64, %c0_65] : memref<50x1x16xf32, #tpu.memory_space<vmem>>, vector<1x1x16xf32>
    %83 = vector.shape_cast %82 : vector<1x1x16xf32> to vector<1x16xf32>
    %c16_66 = arith.constant 16 : index
    %c0_67 = arith.constant 0 : index
    %84 = vector.load %arg15[%c16_66, %c0_67] : memref<32x16xf32, #tpu.memory_space<vmem>>, vector<1x16xf32>
    tpu.vector_store %arg15[%c16_66, %c0_67], %83 {strides = array<i32>} : memref<32x16xf32, #tpu.memory_space<vmem>>, vector<1x16xf32>,
    %c17 = arith.constant 17 : index
    %85 = memref.load %arg0[%c17] : memref<32xi32, #tpu.memory_space<smem>>
    %86 = arith.index_cast %85 : i32 to index
    %c0_68 = arith.constant 0 : index
    %c0_69 = arith.constant 0 : index
    %87 = vector.load %arg1[%86, %c0_68, %c0_69] : memref<50x1x16xf32, #tpu.memory_space<vmem>>, vector<1x1x16xf32>
    %88 = vector.shape_cast %87 : vector<1x1x16xf32> to vector<1x16xf32>
    %c17_70 = arith.constant 17 : index
    %c0_71 = arith.constant 0 : index
    %89 = vector.load %arg15[%c17_70, %c0_71] : memref<32x16xf32, #tpu.memory_space<vmem>>, vector<1x16xf32>
    tpu.vector_store %arg15[%c17_70, %c0_71], %88 {strides = array<i32>} : memref<32x16xf32, #tpu.memory_space<vmem>>, vector<1x16xf32>,
    %c18 = arith.constant 18 : index
    %90 = memref.load %arg0[%c18] : memref<32xi32, #tpu.memory_space<smem>>
    %91 = arith.index_cast %90 : i32 to index
    %c0_72 = arith.constant 0 : index
    %c0_73 = arith.constant 0 : index
    %92 = vector.load %arg1[%91, %c0_72, %c0_73] : memref<50x1x16xf32, #tpu.memory_space<vmem>>, vector<1x1x16xf32>
    %93 = vector.shape_cast %92 : vector<1x1x16xf32> to vector<1x16xf32>
    %c18_74 = arith.constant 18 : index
    %c0_75 = arith.constant 0 : index
    %94 = vector.load %arg15[%c18_74, %c0_75] : memref<32x16xf32, #tpu.memory_space<vmem>>, vector<1x16xf32>
    tpu.vector_store %arg15[%c18_74, %c0_75], %93 {strides = array<i32>} : memref<32x16xf32, #tpu.memory_space<vmem>>, vector<1x16xf32>,
    %c19 = arith.constant 19 : index
    %95 = memref.load %arg0[%c19] : memref<32xi32, #tpu.memory_space<smem>>
    %96 = arith.index_cast %95 : i32 to index
    %c0_76 = arith.constant 0 : index
    %c0_77 = arith.constant 0 : index
    %97 = vector.load %arg1[%96, %c0_76, %c0_77] : memref<50x1x16xf32, #tpu.memory_space<vmem>>, vector<1x1x16xf32>
    %98 = vector.shape_cast %97 : vector<1x1x16xf32> to vector<1x16xf32>
    %c19_78 = arith.constant 19 : index
    %c0_79 = arith.constant 0 : index
    %99 = vector.load %arg15[%c19_78, %c0_79] : memref<32x16xf32, #tpu.memory_space<vmem>>, vector<1x16xf32>
    tpu.vector_store %arg15[%c19_78, %c0_79], %98 {strides = array<i32>} : memref<32x16xf32, #tpu.memory_space<vmem>>, vector<1x16xf32>,
    %c20 = arith.constant 20 : index
    %100 = memref.load %arg0[%c20] : memref<32xi32, #tpu.memory_space<smem>>
    %101 = arith.index_cast %100 : i32 to index
    %c0_80 = arith.constant 0 : index
    %c0_81 = arith.constant 0 : index
    %102 = vector.load %arg1[%101, %c0_80, %c0_81] : memref<50x1x16xf32, #tpu.memory_space<vmem>>, vector<1x1x16xf32>
    %103 = vector.shape_cast %102 : vector<1x1x16xf32> to vector<1x16xf32>
    %c20_82 = arith.constant 20 : index
    %c0_83 = arith.constant 0 : index
    %104 = vector.load %arg15[%c20_82, %c0_83] : memref<32x16xf32, #tpu.memory_space<vmem>>, vector<1x16xf32>
    tpu.vector_store %arg15[%c20_82, %c0_83], %103 {strides = array<i32>} : memref<32x16xf32, #tpu.memory_space<vmem>>, vector<1x16xf32>,
    %c21 = arith.constant 21 : index
    %105 = memref.load %arg0[%c21] : memref<32xi32, #tpu.memory_space<smem>>
    %106 = arith.index_cast %105 : i32 to index
    %c0_84 = arith.constant 0 : index
    %c0_85 = arith.constant 0 : index
    %107 = vector.load %arg1[%106, %c0_84, %c0_85] : memref<50x1x16xf32, #tpu.memory_space<vmem>>, vector<1x1x16xf32>
    %108 = vector.shape_cast %107 : vector<1x1x16xf32> to vector<1x16xf32>
    %c21_86 = arith.constant 21 : index
    %c0_87 = arith.constant 0 : index
    %109 = vector.load %arg15[%c21_86, %c0_87] : memref<32x16xf32, #tpu.memory_space<vmem>>, vector<1x16xf32>
    tpu.vector_store %arg15[%c21_86, %c0_87], %108 {strides = array<i32>} : memref<32x16xf32, #tpu.memory_space<vmem>>, vector<1x16xf32>,
    %c22 = arith.constant 22 : index
    %110 = memref.load %arg0[%c22] : memref<32xi32, #tpu.memory_space<smem>>
    %111 = arith.index_cast %110 : i32 to index
    %c0_88 = arith.constant 0 : index
    %c0_89 = arith.constant 0 : index
    %112 = vector.load %arg1[%111, %c0_88, %c0_89] : memref<50x1x16xf32, #tpu.memory_space<vmem>>, vector<1x1x16xf32>
    %113 = vector.shape_cast %112 : vector<1x1x16xf32> to vector<1x16xf32>
    %c22_90 = arith.constant 22 : index
    %c0_91 = arith.constant 0 : index
    %114 = vector.load %arg15[%c22_90, %c0_91] : memref<32x16xf32, #tpu.memory_space<vmem>>, vector<1x16xf32>
    tpu.vector_store %arg15[%c22_90, %c0_91], %113 {strides = array<i32>} : memref<32x16xf32, #tpu.memory_space<vmem>>, vector<1x16xf32>,
    %c23 = arith.constant 23 : index
    %115 = memref.load %arg0[%c23] : memref<32xi32, #tpu.memory_space<smem>>
    %116 = arith.index_cast %115 : i32 to index
    %c0_92 = arith.constant 0 : index
    %c0_93 = arith.constant 0 : index
    %117 = vector.load %arg1[%116, %c0_92, %c0_93] : memref<50x1x16xf32, #tpu.memory_space<vmem>>, vector<1x1x16xf32>
    %118 = vector.shape_cast %117 : vector<1x1x16xf32> to vector<1x16xf32>
    %c23_94 = arith.constant 23 : index
    %c0_95 = arith.constant 0 : index
    %119 = vector.load %arg15[%c23_94, %c0_95] : memref<32x16xf32, #tpu.memory_space<vmem>>, vector<1x16xf32>
    tpu.vector_store %arg15[%c23_94, %c0_95], %118 {strides = array<i32>} : memref<32x16xf32, #tpu.memory_space<vmem>>, vector<1x16xf32>,
    %c24 = arith.constant 24 : index
    %120 = memref.load %arg0[%c24] : memref<32xi32, #tpu.memory_space<smem>>
    %121 = arith.index_cast %120 : i32 to index
    %c0_96 = arith.constant 0 : index
    %c0_97 = arith.constant 0 : index
    %122 = vector.load %arg1[%121, %c0_96, %c0_97] : memref<50x1x16xf32, #tpu.memory_space<vmem>>, vector<1x1x16xf32>
    %123 = vector.shape_cast %122 : vector<1x1x16xf32> to vector<1x16xf32>
    %c24_98 = arith.constant 24 : index
    %c0_99 = arith.constant 0 : index
    %124 = vector.load %arg15[%c24_98, %c0_99] : memref<32x16xf32, #tpu.memory_space<vmem>>, vector<1x16xf32>
    tpu.vector_store %arg15[%c24_98, %c0_99], %123 {strides = array<i32>} : memref<32x16xf32, #tpu.memory_space<vmem>>, vector<1x16xf32>,
    %c25 = arith.constant 25 : index
    %125 = memref.load %arg0[%c25] : memref<32xi32, #tpu.memory_space<smem>>
    %126 = arith.index_cast %125 : i32 to index
    %c0_100 = arith.constant 0 : index
    %c0_101 = arith.constant 0 : index
    %127 = vector.load %arg1[%126, %c0_100, %c0_101] : memref<50x1x16xf32, #tpu.memory_space<vmem>>, vector<1x1x16xf32>
    %128 = vector.shape_cast %127 : vector<1x1x16xf32> to vector<1x16xf32>
    %c25_102 = arith.constant 25 : index
    %c0_103 = arith.constant 0 : index
    %129 = vector.load %arg15[%c25_102, %c0_103] : memref<32x16xf32, #tpu.memory_space<vmem>>, vector<1x16xf32>
    tpu.vector_store %arg15[%c25_102, %c0_103], %128 {strides = array<i32>} : memref<32x16xf32, #tpu.memory_space<vmem>>, vector<1x16xf32>,
    %c26 = arith.constant 26 : index
    %130 = memref.load %arg0[%c26] : memref<32xi32, #tpu.memory_space<smem>>
    %131 = arith.index_cast %130 : i32 to index
    %c0_104 = arith.constant 0 : index
    %c0_105 = arith.constant 0 : index
    %132 = vector.load %arg1[%131, %c0_104, %c0_105] : memref<50x1x16xf32, #tpu.memory_space<vmem>>, vector<1x1x16xf32>
    %133 = vector.shape_cast %132 : vector<1x1x16xf32> to vector<1x16xf32>
    %c26_106 = arith.constant 26 : index
    %c0_107 = arith.constant 0 : index
    %134 = vector.load %arg15[%c26_106, %c0_107] : memref<32x16xf32, #tpu.memory_space<vmem>>, vector<1x16xf32>
    tpu.vector_store %arg15[%c26_106, %c0_107], %133 {strides = array<i32>} : memref<32x16xf32, #tpu.memory_space<vmem>>, vector<1x16xf32>,
    %c27 = arith.constant 27 : index
    %135 = memref.load %arg0[%c27] : memref<32xi32, #tpu.memory_space<smem>>
    %136 = arith.index_cast %135 : i32 to index
    %c0_108 = arith.constant 0 : index
    %c0_109 = arith.constant 0 : index
    %137 = vector.load %arg1[%136, %c0_108, %c0_109] : memref<50x1x16xf32, #tpu.memory_space<vmem>>, vector<1x1x16xf32>
    %138 = vector.shape_cast %137 : vector<1x1x16xf32> to vector<1x16xf32>
    %c27_110 = arith.constant 27 : index
    %c0_111 = arith.constant 0 : index
    %139 = vector.load %arg15[%c27_110, %c0_111] : memref<32x16xf32, #tpu.memory_space<vmem>>, vector<1x16xf32>
    tpu.vector_store %arg15[%c27_110, %c0_111], %138 {strides = array<i32>} : memref<32x16xf32, #tpu.memory_space<vmem>>, vector<1x16xf32>,
    %c28 = arith.constant 28 : index
    %140 = memref.load %arg0[%c28] : memref<32xi32, #tpu.memory_space<smem>>
    %141 = arith.index_cast %140 : i32 to index
    %c0_112 = arith.constant 0 : index
    %c0_113 = arith.constant 0 : index
    %142 = vector.load %arg1[%141, %c0_112, %c0_113] : memref<50x1x16xf32, #tpu.memory_space<vmem>>, vector<1x1x16xf32>
    %143 = vector.shape_cast %142 : vector<1x1x16xf32> to vector<1x16xf32>
    %c28_114 = arith.constant 28 : index
    %c0_115 = arith.constant 0 : index
    %144 = vector.load %arg15[%c28_114, %c0_115] : memref<32x16xf32, #tpu.memory_space<vmem>>, vector<1x16xf32>
    tpu.vector_store %arg15[%c28_114, %c0_115], %143 {strides = array<i32>} : memref<32x16xf32, #tpu.memory_space<vmem>>, vector<1x16xf32>,
    %c29 = arith.constant 29 : index
    %145 = memref.load %arg0[%c29] : memref<32xi32, #tpu.memory_space<smem>>
    %146 = arith.index_cast %145 : i32 to index
    %c0_116 = arith.constant 0 : index
    %c0_117 = arith.constant 0 : index
    %147 = vector.load %arg1[%146, %c0_116, %c0_117] : memref<50x1x16xf32, #tpu.memory_space<vmem>>, vector<1x1x16xf32>
    %148 = vector.shape_cast %147 : vector<1x1x16xf32> to vector<1x16xf32>
    %c29_118 = arith.constant 29 : index
    %c0_119 = arith.constant 0 : index
    %149 = vector.load %arg15[%c29_118, %c0_119] : memref<32x16xf32, #tpu.memory_space<vmem>>, vector<1x16xf32>
    tpu.vector_store %arg15[%c29_118, %c0_119], %148 {strides = array<i32>} : memref<32x16xf32, #tpu.memory_space<vmem>>, vector<1x16xf32>,
    %c30 = arith.constant 30 : index
    %150 = memref.load %arg0[%c30] : memref<32xi32, #tpu.memory_space<smem>>
    %151 = arith.index_cast %150 : i32 to index
    %c0_120 = arith.constant 0 : index
    %c0_121 = arith.constant 0 : index
    %152 = vector.load %arg1[%151, %c0_120, %c0_121] : memref<50x1x16xf32, #tpu.memory_space<vmem>>, vector<1x1x16xf32>
    %153 = vector.shape_cast %152 : vector<1x1x16xf32> to vector<1x16xf32>
    %c30_122 = arith.constant 30 : index
    %c0_123 = arith.constant 0 : index
    %154 = vector.load %arg15[%c30_122, %c0_123] : memref<32x16xf32, #tpu.memory_space<vmem>>, vector<1x16xf32>
    tpu.vector_store %arg15[%c30_122, %c0_123], %153 {strides = array<i32>} : memref<32x16xf32, #tpu.memory_space<vmem>>, vector<1x16xf32>,
    %c31 = arith.constant 31 : index
    %155 = memref.load %arg0[%c31] : memref<32xi32, #tpu.memory_space<smem>>
    %156 = arith.index_cast %155 : i32 to index
    %c0_124 = arith.constant 0 : index
    %c0_125 = arith.constant 0 : index
    %157 = vector.load %arg1[%156, %c0_124, %c0_125] : memref<50x1x16xf32, #tpu.memory_space<vmem>>, vector<1x1x16xf32>
    %158 = vector.shape_cast %157 : vector<1x1x16xf32> to vector<1x16xf32>
    %c31_126 = arith.constant 31 : index
    %c0_127 = arith.constant 0 : index
    %159 = vector.load %arg15[%c31_126, %c0_127] : memref<32x16xf32, #tpu.memory_space<vmem>>, vector<1x16xf32>
    tpu.vector_store %arg15[%c31_126, %c0_127], %158 {strides = array<i32>} : memref<32x16xf32, #tpu.memory_space<vmem>>, vector<1x16xf32>,
    %c0_128 = arith.constant 0 : index
    %c0_129 = arith.constant 0 : index
    %160 = vector.load %arg15[%c0_128, %c0_129] : memref<32x16xf32, #tpu.memory_space<vmem>>, vector<32x16xf32>
    %c0_130 = arith.constant 0 : index
    %c0_131 = arith.constant 0 : index
    %161 = vector.load %arg3[%c0_130, %c0_131] : memref<16x384xf32, #tpu.memory_space<vmem>>, vector<16x384xf32>
    %cst = arith.constant dense<0.000000e+00> : vector<32x384xf32>
    %162 = tpu.matmul %160, %161, %cst {dimension_numbers = #tpu.dot_dimension_numbers<[1], [0], [0], [1], [0, 0, 1, 1], [], []>} : vector<32x16xf32>, vector<16x384xf32>, vector<32x384xf32> -> vector<32x384xf32>
    %c0_132 = arith.constant 0 : index
    %c0_133 = arith.constant 0 : index
    %163 = vector.load %arg5[%c0_132, %c0_133] : memref<1x384xf32, #tpu.memory_space<vmem>>, vector<1x384xf32>
    %164 = vector.broadcast %163 : vector<1x384xf32> to vector<32x384xf32>
    %165 = arith.addf %162, %164 : vector<32x384xf32>
    %c0_134 = arith.constant 0 : index
    %c0_135 = arith.constant 0 : index
    %c0_136 = arith.constant 0 : index
    %166 = vector.load %arg2[%c0_134, %c0_135, %c0_136] : memref<2x4x128xf32, #tpu.memory_space<vmem>>, vector<1x4x128xf32>
    %167 = vector.shape_cast %166 : vector<1x4x128xf32> to vector<4x128xf32>
    %c0_137 = arith.constant 0 : index
    %c0_138 = arith.constant 0 : index
    %168 = vector.load %arg4[%c0_137, %c0_138] : memref<128x384xf32, #tpu.memory_space<vmem>>, vector<128x384xf32>
    %c0_139 = arith.constant 0 : index
    %c0_140 = arith.constant 0 : index
    %169 = vector.load %arg6[%c0_139, %c0_140] : memref<1x128xf32, #tpu.memory_space<vmem>>, vector<1x128xf32>
    %170 = vector.extract_strided_slice %165 {offsets = [0, 0], sizes = [4, 384], strides = [1, 1]} : vector<32x384xf32> to vector<4x384xf32>
    %cst_141 = arith.constant dense<0.000000e+00> : vector<4x384xf32>
    %171 = tpu.matmul %167, %168, %cst_141 {dimension_numbers = #tpu.dot_dimension_numbers<[1], [0], [0], [1], [0, 0, 1, 1], [], []>} : vector<4x128xf32>, vector<128x384xf32>, vector<4x384xf32> -> vector<4x384xf32>
    %172 = vector.extract_strided_slice %170 {offsets = [0, 0], sizes = [4, 128], strides = [1, 1]} : vector<4x384xf32> to vector<4x128xf32>
    %173 = vector.extract_strided_slice %171 {offsets = [0, 0], sizes = [4, 128], strides = [1, 1]} : vector<4x384xf32> to vector<4x128xf32>
    %174 = arith.addf %172, %173 : vector<4x128xf32>
    %175 = arith.negf %174 : vector<4x128xf32>
    %176 = math.exp %175 : vector<4x128xf32>
    %cst_142 = arith.constant 1.000000e+00 : f32
    %177 = vector.broadcast %cst_142 : f32 to vector<4x128xf32>
    %178 = arith.addf %177, %176 : vector<4x128xf32>
    %179 = arith.divf %177, %178 : vector<4x128xf32>
    %180 = vector.extract_strided_slice %170 {offsets = [0, 128], sizes = [4, 128], strides = [1, 1]} : vector<4x384xf32> to vector<4x128xf32>
    %181 = vector.extract_strided_slice %171 {offsets = [0, 128], sizes = [4, 128], strides = [1, 1]} : vector<4x384xf32> to vector<4x128xf32>
    %182 = arith.addf %180, %181 : vector<4x128xf32>
    %183 = arith.negf %182 : vector<4x128xf32>
    %184 = math.exp %183 : vector<4x128xf32>
    %cst_143 = arith.constant 1.000000e+00 : f32
    %185 = vector.broadcast %cst_143 : f32 to vector<4x128xf32>
    %186 = arith.addf %185, %184 : vector<4x128xf32>
    %187 = arith.divf %185, %186 : vector<4x128xf32>
    %188 = vector.extract_strided_slice %170 {offsets = [0, 256], sizes = [4, 128], strides = [1, 1]} : vector<4x384xf32> to vector<4x128xf32>
    %189 = vector.extract_strided_slice %171 {offsets = [0, 256], sizes = [4, 128], strides = [1, 1]} : vector<4x384xf32> to vector<4x128xf32>
    %190 = vector.broadcast %169 : vector<1x128xf32> to vector<4x128xf32>
    %191 = arith.addf %189, %190 : vector<4x128xf32>
    %192 = arith.mulf %179, %191 : vector<4x128xf32>
    %193 = arith.addf %188, %192 : vector<4x128xf32>
    %194 = math.tanh %193 : vector<4x128xf32>
    %cst_144 = arith.constant 1.000000e+00 : f32
    %195 = vector.broadcast %cst_144 : f32 to vector<4x128xf32>
    %196 = arith.subf %195, %187 : vector<4x128xf32>
    %197 = arith.mulf %196, %194 : vector<4x128xf32>
    %198 = arith.mulf %187, %167 : vector<4x128xf32>
    %199 = arith.addf %197, %198 : vector<4x128xf32>
    %c0_145 = arith.constant 0 : index
    %c0_146 = arith.constant 0 : index
    %200 = vector.load %arg16[%c0_145, %c0_146] : memref<32x128xf32, #tpu.memory_space<vmem>>, vector<4x128xf32>
    tpu.vector_store %arg16[%c0_145, %c0_146], %199 {strides = array<i32>} : memref<32x128xf32, #tpu.memory_space<vmem>>, vector<4x128xf32>,
    %201 = vector.extract_strided_slice %165 {offsets = [4, 0], sizes = [4, 384], strides = [1, 1]} : vector<32x384xf32> to vector<4x384xf32>
    %cst_147 = arith.constant dense<0.000000e+00> : vector<4x384xf32>
    %202 = tpu.matmul %199, %168, %cst_147 {dimension_numbers = #tpu.dot_dimension_numbers<[1], [0], [0], [1], [0, 0, 1, 1], [], []>} : vector<4x128xf32>, vector<128x384xf32>, vector<4x384xf32> -> vector<4x384xf32>
    %203 = vector.extract_strided_slice %201 {offsets = [0, 0], sizes = [4, 128], strides = [1, 1]} : vector<4x384xf32> to vector<4x128xf32>
    %204 = vector.extract_strided_slice %202 {offsets = [0, 0], sizes = [4, 128], strides = [1, 1]} : vector<4x384xf32> to vector<4x128xf32>
    %205 = arith.addf %203, %204 : vector<4x128xf32>
    %206 = arith.negf %205 : vector<4x128xf32>
    %207 = math.exp %206 : vector<4x128xf32>
    %cst_148 = arith.constant 1.000000e+00 : f32
    %208 = vector.broadcast %cst_148 : f32 to vector<4x128xf32>
    %209 = arith.addf %208, %207 : vector<4x128xf32>
    %210 = arith.divf %208, %209 : vector<4x128xf32>
    %211 = vector.extract_strided_slice %201 {offsets = [0, 128], sizes = [4, 128], strides = [1, 1]} : vector<4x384xf32> to vector<4x128xf32>
    %212 = vector.extract_strided_slice %202 {offsets = [0, 128], sizes = [4, 128], strides = [1, 1]} : vector<4x384xf32> to vector<4x128xf32>
    %213 = arith.addf %211, %212 : vector<4x128xf32>
    %214 = arith.negf %213 : vector<4x128xf32>
    %215 = math.exp %214 : vector<4x128xf32>
    %cst_149 = arith.constant 1.000000e+00 : f32
    %216 = vector.broadcast %cst_149 : f32 to vector<4x128xf32>
    %217 = arith.addf %216, %215 : vector<4x128xf32>
    %218 = arith.divf %216, %217 : vector<4x128xf32>
    %219 = vector.extract_strided_slice %201 {offsets = [0, 256], sizes = [4, 128], strides = [1, 1]} : vector<4x384xf32> to vector<4x128xf32>
    %220 = vector.extract_strided_slice %202 {offsets = [0, 256], sizes = [4, 128], strides = [1, 1]} : vector<4x384xf32> to vector<4x128xf32>
    %221 = vector.broadcast %169 : vector<1x128xf32> to vector<4x128xf32>
    %222 = arith.addf %220, %221 : vector<4x128xf32>
    %223 = arith.mulf %210, %222 : vector<4x128xf32>
    %224 = arith.addf %219, %223 : vector<4x128xf32>
    %225 = math.tanh %224 : vector<4x128xf32>
    %cst_150 = arith.constant 1.000000e+00 : f32
    %226 = vector.broadcast %cst_150 : f32 to vector<4x128xf32>
    %227 = arith.subf %226, %218 : vector<4x128xf32>
    %228 = arith.mulf %227, %225 : vector<4x128xf32>
    %229 = arith.mulf %218, %199 : vector<4x128xf32>
    %230 = arith.addf %228, %229 : vector<4x128xf32>
    %c4_151 = arith.constant 4 : index
    %c0_152 = arith.constant 0 : index
    %231 = vector.load %arg16[%c4_151, %c0_152] : memref<32x128xf32, #tpu.memory_space<vmem>>, vector<4x128xf32>
    tpu.vector_store %arg16[%c4_151, %c0_152], %230 {strides = array<i32>} : memref<32x128xf32, #tpu.memory_space<vmem>>, vector<4x128xf32>,
    %232 = vector.extract_strided_slice %165 {offsets = [8, 0], sizes = [4, 384], strides = [1, 1]} : vector<32x384xf32> to vector<4x384xf32>
    %cst_153 = arith.constant dense<0.000000e+00> : vector<4x384xf32>
    %233 = tpu.matmul %230, %168, %cst_153 {dimension_numbers = #tpu.dot_dimension_numbers<[1], [0], [0], [1], [0, 0, 1, 1], [], []>} : vector<4x128xf32>, vector<128x384xf32>, vector<4x384xf32> -> vector<4x384xf32>
    %234 = vector.extract_strided_slice %232 {offsets = [0, 0], sizes = [4, 128], strides = [1, 1]} : vector<4x384xf32> to vector<4x128xf32>
    %235 = vector.extract_strided_slice %233 {offsets = [0, 0], sizes = [4, 128], strides = [1, 1]} : vector<4x384xf32> to vector<4x128xf32>
    %236 = arith.addf %234, %235 : vector<4x128xf32>
    %237 = arith.negf %236 : vector<4x128xf32>
    %238 = math.exp %237 : vector<4x128xf32>
    %cst_154 = arith.constant 1.000000e+00 : f32
    %239 = vector.broadcast %cst_154 : f32 to vector<4x128xf32>
    %240 = arith.addf %239, %238 : vector<4x128xf32>
    %241 = arith.divf %239, %240 : vector<4x128xf32>
    %242 = vector.extract_strided_slice %232 {offsets = [0, 128], sizes = [4, 128], strides = [1, 1]} : vector<4x384xf32> to vector<4x128xf32>
    %243 = vector.extract_strided_slice %233 {offsets = [0, 128], sizes = [4, 128], strides = [1, 1]} : vector<4x384xf32> to vector<4x128xf32>
    %244 = arith.addf %242, %243 : vector<4x128xf32>
    %245 = arith.negf %244 : vector<4x128xf32>
    %246 = math.exp %245 : vector<4x128xf32>
    %cst_155 = arith.constant 1.000000e+00 : f32
    %247 = vector.broadcast %cst_155 : f32 to vector<4x128xf32>
    %248 = arith.addf %247, %246 : vector<4x128xf32>
    %249 = arith.divf %247, %248 : vector<4x128xf32>
    %250 = vector.extract_strided_slice %232 {offsets = [0, 256], sizes = [4, 128], strides = [1, 1]} : vector<4x384xf32> to vector<4x128xf32>
    %251 = vector.extract_strided_slice %233 {offsets = [0, 256], sizes = [4, 128], strides = [1, 1]} : vector<4x384xf32> to vector<4x128xf32>
    %252 = vector.broadcast %169 : vector<1x128xf32> to vector<4x128xf32>
    %253 = arith.addf %251, %252 : vector<4x128xf32>
    %254 = arith.mulf %241, %253 : vector<4x128xf32>
    %255 = arith.addf %250, %254 : vector<4x128xf32>
    %256 = math.tanh %255 : vector<4x128xf32>
    %cst_156 = arith.constant 1.000000e+00 : f32
    %257 = vector.broadcast %cst_156 : f32 to vector<4x128xf32>
    %258 = arith.subf %257, %249 : vector<4x128xf32>
    %259 = arith.mulf %258, %256 : vector<4x128xf32>
    %260 = arith.mulf %249, %230 : vector<4x128xf32>
    %261 = arith.addf %259, %260 : vector<4x128xf32>
    %c8_157 = arith.constant 8 : index
    %c0_158 = arith.constant 0 : index
    %262 = vector.load %arg16[%c8_157, %c0_158] : memref<32x128xf32, #tpu.memory_space<vmem>>, vector<4x128xf32>
    tpu.vector_store %arg16[%c8_157, %c0_158], %261 {strides = array<i32>} : memref<32x128xf32, #tpu.memory_space<vmem>>, vector<4x128xf32>,
    %263 = vector.extract_strided_slice %165 {offsets = [12, 0], sizes = [4, 384], strides = [1, 1]} : vector<32x384xf32> to vector<4x384xf32>
    %cst_159 = arith.constant dense<0.000000e+00> : vector<4x384xf32>
    %264 = tpu.matmul %261, %168, %cst_159 {dimension_numbers = #tpu.dot_dimension_numbers<[1], [0], [0], [1], [0, 0, 1, 1], [], []>} : vector<4x128xf32>, vector<128x384xf32>, vector<4x384xf32> -> vector<4x384xf32>
    %265 = vector.extract_strided_slice %263 {offsets = [0, 0], sizes = [4, 128], strides = [1, 1]} : vector<4x384xf32> to vector<4x128xf32>
    %266 = vector.extract_strided_slice %264 {offsets = [0, 0], sizes = [4, 128], strides = [1, 1]} : vector<4x384xf32> to vector<4x128xf32>
    %267 = arith.addf %265, %266 : vector<4x128xf32>
    %268 = arith.negf %267 : vector<4x128xf32>
    %269 = math.exp %268 : vector<4x128xf32>
    %cst_160 = arith.constant 1.000000e+00 : f32
    %270 = vector.broadcast %cst_160 : f32 to vector<4x128xf32>
    %271 = arith.addf %270, %269 : vector<4x128xf32>
    %272 = arith.divf %270, %271 : vector<4x128xf32>
    %273 = vector.extract_strided_slice %263 {offsets = [0, 128], sizes = [4, 128], strides = [1, 1]} : vector<4x384xf32> to vector<4x128xf32>
    %274 = vector.extract_strided_slice %264 {offsets = [0, 128], sizes = [4, 128], strides = [1, 1]} : vector<4x384xf32> to vector<4x128xf32>
    %275 = arith.addf %273, %274 : vector<4x128xf32>
    %276 = arith.negf %275 : vector<4x128xf32>
    %277 = math.exp %276 : vector<4x128xf32>
    %cst_161 = arith.constant 1.000000e+00 : f32
    %278 = vector.broadcast %cst_161 : f32 to vector<4x128xf32>
    %279 = arith.addf %278, %277 : vector<4x128xf32>
    %280 = arith.divf %278, %279 : vector<4x128xf32>
    %281 = vector.extract_strided_slice %263 {offsets = [0, 256], sizes = [4, 128], strides = [1, 1]} : vector<4x384xf32> to vector<4x128xf32>
    %282 = vector.extract_strided_slice %264 {offsets = [0, 256], sizes = [4, 128], strides = [1, 1]} : vector<4x384xf32> to vector<4x128xf32>
    %283 = vector.broadcast %169 : vector<1x128xf32> to vector<4x128xf32>
    %284 = arith.addf %282, %283 : vector<4x128xf32>
    %285 = arith.mulf %272, %284 : vector<4x128xf32>
    %286 = arith.addf %281, %285 : vector<4x128xf32>
    %287 = math.tanh %286 : vector<4x128xf32>
    %cst_162 = arith.constant 1.000000e+00 : f32
    %288 = vector.broadcast %cst_162 : f32 to vector<4x128xf32>
    %289 = arith.subf %288, %280 : vector<4x128xf32>
    %290 = arith.mulf %289, %287 : vector<4x128xf32>
    %291 = arith.mulf %280, %261 : vector<4x128xf32>
    %292 = arith.addf %290, %291 : vector<4x128xf32>
    %c12_163 = arith.constant 12 : index
    %c0_164 = arith.constant 0 : index
    %293 = vector.load %arg16[%c12_163, %c0_164] : memref<32x128xf32, #tpu.memory_space<vmem>>, vector<4x128xf32>
    tpu.vector_store %arg16[%c12_163, %c0_164], %292 {strides = array<i32>} : memref<32x128xf32, #tpu.memory_space<vmem>>, vector<4x128xf32>,
    %294 = vector.extract_strided_slice %165 {offsets = [16, 0], sizes = [4, 384], strides = [1, 1]} : vector<32x384xf32> to vector<4x384xf32>
    %cst_165 = arith.constant dense<0.000000e+00> : vector<4x384xf32>
    %295 = tpu.matmul %292, %168, %cst_165 {dimension_numbers = #tpu.dot_dimension_numbers<[1], [0], [0], [1], [0, 0, 1, 1], [], []>} : vector<4x128xf32>, vector<128x384xf32>, vector<4x384xf32> -> vector<4x384xf32>
    %296 = vector.extract_strided_slice %294 {offsets = [0, 0], sizes = [4, 128], strides = [1, 1]} : vector<4x384xf32> to vector<4x128xf32>
    %297 = vector.extract_strided_slice %295 {offsets = [0, 0], sizes = [4, 128], strides = [1, 1]} : vector<4x384xf32> to vector<4x128xf32>
    %298 = arith.addf %296, %297 : vector<4x128xf32>
    %299 = arith.negf %298 : vector<4x128xf32>
    %300 = math.exp %299 : vector<4x128xf32>
    %cst_166 = arith.constant 1.000000e+00 : f32
    %301 = vector.broadcast %cst_166 : f32 to vector<4x128xf32>
    %302 = arith.addf %301, %300 : vector<4x128xf32>
    %303 = arith.divf %301, %302 : vector<4x128xf32>
    %304 = vector.extract_strided_slice %294 {offsets = [0, 128], sizes = [4, 128], strides = [1, 1]} : vector<4x384xf32> to vector<4x128xf32>
    %305 = vector.extract_strided_slice %295 {offsets = [0, 128], sizes = [4, 128], strides = [1, 1]} : vector<4x384xf32> to vector<4x128xf32>
    %306 = arith.addf %304, %305 : vector<4x128xf32>
    %307 = arith.negf %306 : vector<4x128xf32>
    %308 = math.exp %307 : vector<4x128xf32>
    %cst_167 = arith.constant 1.000000e+00 : f32
    %309 = vector.broadcast %cst_167 : f32 to vector<4x128xf32>
    %310 = arith.addf %309, %308 : vector<4x128xf32>
    %311 = arith.divf %309, %310 : vector<4x128xf32>
    %312 = vector.extract_strided_slice %294 {offsets = [0, 256], sizes = [4, 128], strides = [1, 1]} : vector<4x384xf32> to vector<4x128xf32>
    %313 = vector.extract_strided_slice %295 {offsets = [0, 256], sizes = [4, 128], strides = [1, 1]} : vector<4x384xf32> to vector<4x128xf32>
    %314 = vector.broadcast %169 : vector<1x128xf32> to vector<4x128xf32>
    %315 = arith.addf %313, %314 : vector<4x128xf32>
    %316 = arith.mulf %303, %315 : vector<4x128xf32>
    %317 = arith.addf %312, %316 : vector<4x128xf32>
    %318 = math.tanh %317 : vector<4x128xf32>
    %cst_168 = arith.constant 1.000000e+00 : f32
    %319 = vector.broadcast %cst_168 : f32 to vector<4x128xf32>
    %320 = arith.subf %319, %311 : vector<4x128xf32>
    %321 = arith.mulf %320, %318 : vector<4x128xf32>
    %322 = arith.mulf %311, %292 : vector<4x128xf32>
    %323 = arith.addf %321, %322 : vector<4x128xf32>
    %c16_169 = arith.constant 16 : index
    %c0_170 = arith.constant 0 : index
    %324 = vector.load %arg16[%c16_169, %c0_170] : memref<32x128xf32, #tpu.memory_space<vmem>>, vector<4x128xf32>
    tpu.vector_store %arg16[%c16_169, %c0_170], %323 {strides = array<i32>} : memref<32x128xf32, #tpu.memory_space<vmem>>, vector<4x128xf32>,
    %325 = vector.extract_strided_slice %165 {offsets = [20, 0], sizes = [4, 384], strides = [1, 1]} : vector<32x384xf32> to vector<4x384xf32>
    %cst_171 = arith.constant dense<0.000000e+00> : vector<4x384xf32>
    %326 = tpu.matmul %323, %168, %cst_171 {dimension_numbers = #tpu.dot_dimension_numbers<[1], [0], [0], [1], [0, 0, 1, 1], [], []>} : vector<4x128xf32>, vector<128x384xf32>, vector<4x384xf32> -> vector<4x384xf32>
    %327 = vector.extract_strided_slice %325 {offsets = [0, 0], sizes = [4, 128], strides = [1, 1]} : vector<4x384xf32> to vector<4x128xf32>
    %328 = vector.extract_strided_slice %326 {offsets = [0, 0], sizes = [4, 128], strides = [1, 1]} : vector<4x384xf32> to vector<4x128xf32>
    %329 = arith.addf %327, %328 : vector<4x128xf32>
    %330 = arith.negf %329 : vector<4x128xf32>
    %331 = math.exp %330 : vector<4x128xf32>
    %cst_172 = arith.constant 1.000000e+00 : f32
    %332 = vector.broadcast %cst_172 : f32 to vector<4x128xf32>
    %333 = arith.addf %332, %331 : vector<4x128xf32>
    %334 = arith.divf %332, %333 : vector<4x128xf32>
    %335 = vector.extract_strided_slice %325 {offsets = [0, 128], sizes = [4, 128], strides = [1, 1]} : vector<4x384xf32> to vector<4x128xf32>
    %336 = vector.extract_strided_slice %326 {offsets = [0, 128], sizes = [4, 128], strides = [1, 1]} : vector<4x384xf32> to vector<4x128xf32>
    %337 = arith.addf %335, %336 : vector<4x128xf32>
    %338 = arith.negf %337 : vector<4x128xf32>
    %339 = math.exp %338 : vector<4x128xf32>
    %cst_173 = arith.constant 1.000000e+00 : f32
    %340 = vector.broadcast %cst_173 : f32 to vector<4x128xf32>
    %341 = arith.addf %340, %339 : vector<4x128xf32>
    %342 = arith.divf %340, %341 : vector<4x128xf32>
    %343 = vector.extract_strided_slice %325 {offsets = [0, 256], sizes = [4, 128], strides = [1, 1]} : vector<4x384xf32> to vector<4x128xf32>
    %344 = vector.extract_strided_slice %326 {offsets = [0, 256], sizes = [4, 128], strides = [1, 1]} : vector<4x384xf32> to vector<4x128xf32>
    %345 = vector.broadcast %169 : vector<1x128xf32> to vector<4x128xf32>
    %346 = arith.addf %344, %345 : vector<4x128xf32>
    %347 = arith.mulf %334, %346 : vector<4x128xf32>
    %348 = arith.addf %343, %347 : vector<4x128xf32>
    %349 = math.tanh %348 : vector<4x128xf32>
    %cst_174 = arith.constant 1.000000e+00 : f32
    %350 = vector.broadcast %cst_174 : f32 to vector<4x128xf32>
    %351 = arith.subf %350, %342 : vector<4x128xf32>
    %352 = arith.mulf %351, %349 : vector<4x128xf32>
    %353 = arith.mulf %342, %323 : vector<4x128xf32>
    %354 = arith.addf %352, %353 : vector<4x128xf32>
    %c20_175 = arith.constant 20 : index
    %c0_176 = arith.constant 0 : index
    %355 = vector.load %arg16[%c20_175, %c0_176] : memref<32x128xf32, #tpu.memory_space<vmem>>, vector<4x128xf32>
    tpu.vector_store %arg16[%c20_175, %c0_176], %354 {strides = array<i32>} : memref<32x128xf32, #tpu.memory_space<vmem>>, vector<4x128xf32>,
    %356 = vector.extract_strided_slice %165 {offsets = [24, 0], sizes = [4, 384], strides = [1, 1]} : vector<32x384xf32> to vector<4x384xf32>
    %cst_177 = arith.constant dense<0.000000e+00> : vector<4x384xf32>
    %357 = tpu.matmul %354, %168, %cst_177 {dimension_numbers = #tpu.dot_dimension_numbers<[1], [0], [0], [1], [0, 0, 1, 1], [], []>} : vector<4x128xf32>, vector<128x384xf32>, vector<4x384xf32> -> vector<4x384xf32>
    %358 = vector.extract_strided_slice %356 {offsets = [0, 0], sizes = [4, 128], strides = [1, 1]} : vector<4x384xf32> to vector<4x128xf32>
    %359 = vector.extract_strided_slice %357 {offsets = [0, 0], sizes = [4, 128], strides = [1, 1]} : vector<4x384xf32> to vector<4x128xf32>
    %360 = arith.addf %358, %359 : vector<4x128xf32>
    %361 = arith.negf %360 : vector<4x128xf32>
    %362 = math.exp %361 : vector<4x128xf32>
    %cst_178 = arith.constant 1.000000e+00 : f32
    %363 = vector.broadcast %cst_178 : f32 to vector<4x128xf32>
    %364 = arith.addf %363, %362 : vector<4x128xf32>
    %365 = arith.divf %363, %364 : vector<4x128xf32>
    %366 = vector.extract_strided_slice %356 {offsets = [0, 128], sizes = [4, 128], strides = [1, 1]} : vector<4x384xf32> to vector<4x128xf32>
    %367 = vector.extract_strided_slice %357 {offsets = [0, 128], sizes = [4, 128], strides = [1, 1]} : vector<4x384xf32> to vector<4x128xf32>
    %368 = arith.addf %366, %367 : vector<4x128xf32>
    %369 = arith.negf %368 : vector<4x128xf32>
    %370 = math.exp %369 : vector<4x128xf32>
    %cst_179 = arith.constant 1.000000e+00 : f32
    %371 = vector.broadcast %cst_179 : f32 to vector<4x128xf32>
    %372 = arith.addf %371, %370 : vector<4x128xf32>
    %373 = arith.divf %371, %372 : vector<4x128xf32>
    %374 = vector.extract_strided_slice %356 {offsets = [0, 256], sizes = [4, 128], strides = [1, 1]} : vector<4x384xf32> to vector<4x128xf32>
    %375 = vector.extract_strided_slice %357 {offsets = [0, 256], sizes = [4, 128], strides = [1, 1]} : vector<4x384xf32> to vector<4x128xf32>
    %376 = vector.broadcast %169 : vector<1x128xf32> to vector<4x128xf32>
    %377 = arith.addf %375, %376 : vector<4x128xf32>
    %378 = arith.mulf %365, %377 : vector<4x128xf32>
    %379 = arith.addf %374, %378 : vector<4x128xf32>
    %380 = math.tanh %379 : vector<4x128xf32>
    %cst_180 = arith.constant 1.000000e+00 : f32
    %381 = vector.broadcast %cst_180 : f32 to vector<4x128xf32>
    %382 = arith.subf %381, %373 : vector<4x128xf32>
    %383 = arith.mulf %382, %380 : vector<4x128xf32>
    %384 = arith.mulf %373, %354 : vector<4x128xf32>
    %385 = arith.addf %383, %384 : vector<4x128xf32>
    %c24_181 = arith.constant 24 : index
    %c0_182 = arith.constant 0 : index
    %386 = vector.load %arg16[%c24_181, %c0_182] : memref<32x128xf32, #tpu.memory_space<vmem>>, vector<4x128xf32>
    tpu.vector_store %arg16[%c24_181, %c0_182], %385 {strides = array<i32>} : memref<32x128xf32, #tpu.memory_space<vmem>>, vector<4x128xf32>,
    %387 = vector.extract_strided_slice %165 {offsets = [28, 0], sizes = [4, 384], strides = [1, 1]} : vector<32x384xf32> to vector<4x384xf32>
    %cst_183 = arith.constant dense<0.000000e+00> : vector<4x384xf32>
    %388 = tpu.matmul %385, %168, %cst_183 {dimension_numbers = #tpu.dot_dimension_numbers<[1], [0], [0], [1], [0, 0, 1, 1], [], []>} : vector<4x128xf32>, vector<128x384xf32>, vector<4x384xf32> -> vector<4x384xf32>
    %389 = vector.extract_strided_slice %387 {offsets = [0, 0], sizes = [4, 128], strides = [1, 1]} : vector<4x384xf32> to vector<4x128xf32>
    %390 = vector.extract_strided_slice %388 {offsets = [0, 0], sizes = [4, 128], strides = [1, 1]} : vector<4x384xf32> to vector<4x128xf32>
    %391 = arith.addf %389, %390 : vector<4x128xf32>
    %392 = arith.negf %391 : vector<4x128xf32>
    %393 = math.exp %392 : vector<4x128xf32>
    %cst_184 = arith.constant 1.000000e+00 : f32
    %394 = vector.broadcast %cst_184 : f32 to vector<4x128xf32>
    %395 = arith.addf %394, %393 : vector<4x128xf32>
    %396 = arith.divf %394, %395 : vector<4x128xf32>
    %397 = vector.extract_strided_slice %387 {offsets = [0, 128], sizes = [4, 128], strides = [1, 1]} : vector<4x384xf32> to vector<4x128xf32>
    %398 = vector.extract_strided_slice %388 {offsets = [0, 128], sizes = [4, 128], strides = [1, 1]} : vector<4x384xf32> to vector<4x128xf32>
    %399 = arith.addf %397, %398 : vector<4x128xf32>
    %400 = arith.negf %399 : vector<4x128xf32>
    %401 = math.exp %400 : vector<4x128xf32>
    %cst_185 = arith.constant 1.000000e+00 : f32
    %402 = vector.broadcast %cst_185 : f32 to vector<4x128xf32>
    %403 = arith.addf %402, %401 : vector<4x128xf32>
    %404 = arith.divf %402, %403 : vector<4x128xf32>
    %405 = vector.extract_strided_slice %387 {offsets = [0, 256], sizes = [4, 128], strides = [1, 1]} : vector<4x384xf32> to vector<4x128xf32>
    %406 = vector.extract_strided_slice %388 {offsets = [0, 256], sizes = [4, 128], strides = [1, 1]} : vector<4x384xf32> to vector<4x128xf32>
    %407 = vector.broadcast %169 : vector<1x128xf32> to vector<4x128xf32>
    %408 = arith.addf %406, %407 : vector<4x128xf32>
    %409 = arith.mulf %396, %408 : vector<4x128xf32>
    %410 = arith.addf %405, %409 : vector<4x128xf32>
    %411 = math.tanh %410 : vector<4x128xf32>
    %cst_186 = arith.constant 1.000000e+00 : f32
    %412 = vector.broadcast %cst_186 : f32 to vector<4x128xf32>
    %413 = arith.subf %412, %404 : vector<4x128xf32>
    %414 = arith.mulf %413, %411 : vector<4x128xf32>
    %415 = arith.mulf %404, %385 : vector<4x128xf32>
    %416 = arith.addf %414, %415 : vector<4x128xf32>
    %c28_187 = arith.constant 28 : index
    %c0_188 = arith.constant 0 : index
    %417 = vector.load %arg16[%c28_187, %c0_188] : memref<32x128xf32, #tpu.memory_space<vmem>>, vector<4x128xf32>
    tpu.vector_store %arg16[%c28_187, %c0_188], %416 {strides = array<i32>} : memref<32x128xf32, #tpu.memory_space<vmem>>, vector<4x128xf32>,
    %c0_189 = arith.constant 0 : index
    %c0_190 = arith.constant 0 : index
    %c0_191 = arith.constant 0 : index
    %418 = vector.load %arg14[%c0_189, %c0_190, %c0_191] : memref<2x4x128xf32, #tpu.memory_space<vmem>>, vector<1x4x128xf32>
    %419 = vector.shape_cast %418 : vector<1x4x128xf32> to vector<4x128xf32>
    %420 = vector.shape_cast %416 : vector<4x128xf32> to vector<1x4x128xf32>
    tpu.vector_store %arg14[%c0_189, %c0_190, %c0_191], %420 {strides = array<i32>} : memref<2x4x128xf32, #tpu.memory_space<vmem>>, vector<1x4x128xf32>,
    %c0_192 = arith.constant 0 : index
    %c0_193 = arith.constant 0 : index
    %421 = vector.load %arg16[%c0_192, %c0_193] : memref<32x128xf32, #tpu.memory_space<vmem>>, vector<32x128xf32>
    %c0_194 = arith.constant 0 : index
    %c0_195 = arith.constant 0 : index
    %422 = vector.load %arg7[%c0_194, %c0_195] : memref<128x384xf32, #tpu.memory_space<vmem>>, vector<128x384xf32>
    %cst_196 = arith.constant dense<0.000000e+00> : vector<32x384xf32>
    %423 = tpu.matmul %421, %422, %cst_196 {dimension_numbers = #tpu.dot_dimension_numbers<[1], [0], [0], [1], [0, 0, 1, 1], [], []>} : vector<32x128xf32>, vector<128x384xf32>, vector<32x384xf32> -> vector<32x384xf32>
    %c0_197 = arith.constant 0 : index
    %c0_198 = arith.constant 0 : index
    %424 = vector.load %arg9[%c0_197, %c0_198] : memref<1x384xf32, #tpu.memory_space<vmem>>, vector<1x384xf32>
    %425 = vector.broadcast %424 : vector<1x384xf32> to vector<32x384xf32>
    %426 = arith.addf %423, %425 : vector<32x384xf32>
    %c1_199 = arith.constant 1 : index
    %c0_200 = arith.constant 0 : index
    %c0_201 = arith.constant 0 : index
    %427 = vector.load %arg2[%c1_199, %c0_200, %c0_201] : memref<2x4x128xf32, #tpu.memory_space<vmem>>, vector<1x4x128xf32>
    %428 = vector.shape_cast %427 : vector<1x4x128xf32> to vector<4x128xf32>
    %c0_202 = arith.constant 0 : index
    %c0_203 = arith.constant 0 : index
    %429 = vector.load %arg8[%c0_202, %c0_203] : memref<128x384xf32, #tpu.memory_space<vmem>>, vector<128x384xf32>
    %c0_204 = arith.constant 0 : index
    %c0_205 = arith.constant 0 : index
    %430 = vector.load %arg10[%c0_204, %c0_205] : memref<1x128xf32, #tpu.memory_space<vmem>>, vector<1x128xf32>
    %431 = vector.extract_strided_slice %426 {offsets = [0, 0], sizes = [4, 384], strides = [1, 1]} : vector<32x384xf32> to vector<4x384xf32>
    %cst_206 = arith.constant dense<0.000000e+00> : vector<4x384xf32>
    %432 = tpu.matmul %428, %429, %cst_206 {dimension_numbers = #tpu.dot_dimension_numbers<[1], [0], [0], [1], [0, 0, 1, 1], [], []>} : vector<4x128xf32>, vector<128x384xf32>, vector<4x384xf32> -> vector<4x384xf32>
    %433 = vector.extract_strided_slice %431 {offsets = [0, 0], sizes = [4, 128], strides = [1, 1]} : vector<4x384xf32> to vector<4x128xf32>
    %434 = vector.extract_strided_slice %432 {offsets = [0, 0], sizes = [4, 128], strides = [1, 1]} : vector<4x384xf32> to vector<4x128xf32>
    %435 = arith.addf %433, %434 : vector<4x128xf32>
    %436 = arith.negf %435 : vector<4x128xf32>
    %437 = math.exp %436 : vector<4x128xf32>
    %cst_207 = arith.constant 1.000000e+00 : f32
    %438 = vector.broadcast %cst_207 : f32 to vector<4x128xf32>
    %439 = arith.addf %438, %437 : vector<4x128xf32>
    %440 = arith.divf %438, %439 : vector<4x128xf32>
    %441 = vector.extract_strided_slice %431 {offsets = [0, 128], sizes = [4, 128], strides = [1, 1]} : vector<4x384xf32> to vector<4x128xf32>
    %442 = vector.extract_strided_slice %432 {offsets = [0, 128], sizes = [4, 128], strides = [1, 1]} : vector<4x384xf32> to vector<4x128xf32>
    %443 = arith.addf %441, %442 : vector<4x128xf32>
    %444 = arith.negf %443 : vector<4x128xf32>
    %445 = math.exp %444 : vector<4x128xf32>
    %cst_208 = arith.constant 1.000000e+00 : f32
    %446 = vector.broadcast %cst_208 : f32 to vector<4x128xf32>
    %447 = arith.addf %446, %445 : vector<4x128xf32>
    %448 = arith.divf %446, %447 : vector<4x128xf32>
    %449 = vector.extract_strided_slice %431 {offsets = [0, 256], sizes = [4, 128], strides = [1, 1]} : vector<4x384xf32> to vector<4x128xf32>
    %450 = vector.extract_strided_slice %432 {offsets = [0, 256], sizes = [4, 128], strides = [1, 1]} : vector<4x384xf32> to vector<4x128xf32>
    %451 = vector.broadcast %430 : vector<1x128xf32> to vector<4x128xf32>
    %452 = arith.addf %450, %451 : vector<4x128xf32>
    %453 = arith.mulf %440, %452 : vector<4x128xf32>
    %454 = arith.addf %449, %453 : vector<4x128xf32>
    %455 = math.tanh %454 : vector<4x128xf32>
    %cst_209 = arith.constant 1.000000e+00 : f32
    %456 = vector.broadcast %cst_209 : f32 to vector<4x128xf32>
    %457 = arith.subf %456, %448 : vector<4x128xf32>
    %458 = arith.mulf %457, %455 : vector<4x128xf32>
    %459 = arith.mulf %448, %428 : vector<4x128xf32>
    %460 = arith.addf %458, %459 : vector<4x128xf32>
    %c0_210 = arith.constant 0 : index
    %c0_211 = arith.constant 0 : index
    %461 = vector.load %arg16[%c0_210, %c0_211] : memref<32x128xf32, #tpu.memory_space<vmem>>, vector<4x128xf32>
    tpu.vector_store %arg16[%c0_210, %c0_211], %460 {strides = array<i32>} : memref<32x128xf32, #tpu.memory_space<vmem>>, vector<4x128xf32>,
    %462 = vector.extract_strided_slice %426 {offsets = [4, 0], sizes = [4, 384], strides = [1, 1]} : vector<32x384xf32> to vector<4x384xf32>
    %cst_212 = arith.constant dense<0.000000e+00> : vector<4x384xf32>
    %463 = tpu.matmul %460, %429, %cst_212 {dimension_numbers = #tpu.dot_dimension_numbers<[1], [0], [0], [1], [0, 0, 1, 1], [], []>} : vector<4x128xf32>, vector<128x384xf32>, vector<4x384xf32> -> vector<4x384xf32>
    %464 = vector.extract_strided_slice %462 {offsets = [0, 0], sizes = [4, 128], strides = [1, 1]} : vector<4x384xf32> to vector<4x128xf32>
    %465 = vector.extract_strided_slice %463 {offsets = [0, 0], sizes = [4, 128], strides = [1, 1]} : vector<4x384xf32> to vector<4x128xf32>
    %466 = arith.addf %464, %465 : vector<4x128xf32>
    %467 = arith.negf %466 : vector<4x128xf32>
    %468 = math.exp %467 : vector<4x128xf32>
    %cst_213 = arith.constant 1.000000e+00 : f32
    %469 = vector.broadcast %cst_213 : f32 to vector<4x128xf32>
    %470 = arith.addf %469, %468 : vector<4x128xf32>
    %471 = arith.divf %469, %470 : vector<4x128xf32>
    %472 = vector.extract_strided_slice %462 {offsets = [0, 128], sizes = [4, 128], strides = [1, 1]} : vector<4x384xf32> to vector<4x128xf32>
    %473 = vector.extract_strided_slice %463 {offsets = [0, 128], sizes = [4, 128], strides = [1, 1]} : vector<4x384xf32> to vector<4x128xf32>
    %474 = arith.addf %472, %473 : vector<4x128xf32>
    %475 = arith.negf %474 : vector<4x128xf32>
    %476 = math.exp %475 : vector<4x128xf32>
    %cst_214 = arith.constant 1.000000e+00 : f32
    %477 = vector.broadcast %cst_214 : f32 to vector<4x128xf32>
    %478 = arith.addf %477, %476 : vector<4x128xf32>
    %479 = arith.divf %477, %478 : vector<4x128xf32>
    %480 = vector.extract_strided_slice %462 {offsets = [0, 256], sizes = [4, 128], strides = [1, 1]} : vector<4x384xf32> to vector<4x128xf32>
    %481 = vector.extract_strided_slice %463 {offsets = [0, 256], sizes = [4, 128], strides = [1, 1]} : vector<4x384xf32> to vector<4x128xf32>
    %482 = vector.broadcast %430 : vector<1x128xf32> to vector<4x128xf32>
    %483 = arith.addf %481, %482 : vector<4x128xf32>
    %484 = arith.mulf %471, %483 : vector<4x128xf32>
    %485 = arith.addf %480, %484 : vector<4x128xf32>
    %486 = math.tanh %485 : vector<4x128xf32>
    %cst_215 = arith.constant 1.000000e+00 : f32
    %487 = vector.broadcast %cst_215 : f32 to vector<4x128xf32>
    %488 = arith.subf %487, %479 : vector<4x128xf32>
    %489 = arith.mulf %488, %486 : vector<4x128xf32>
    %490 = arith.mulf %479, %460 : vector<4x128xf32>
    %491 = arith.addf %489, %490 : vector<4x128xf32>
    %c4_216 = arith.constant 4 : index
    %c0_217 = arith.constant 0 : index
    %492 = vector.load %arg16[%c4_216, %c0_217] : memref<32x128xf32, #tpu.memory_space<vmem>>, vector<4x128xf32>
    tpu.vector_store %arg16[%c4_216, %c0_217], %491 {strides = array<i32>} : memref<32x128xf32, #tpu.memory_space<vmem>>, vector<4x128xf32>,
    %493 = vector.extract_strided_slice %426 {offsets = [8, 0], sizes = [4, 384], strides = [1, 1]} : vector<32x384xf32> to vector<4x384xf32>
    %cst_218 = arith.constant dense<0.000000e+00> : vector<4x384xf32>
    %494 = tpu.matmul %491, %429, %cst_218 {dimension_numbers = #tpu.dot_dimension_numbers<[1], [0], [0], [1], [0, 0, 1, 1], [], []>} : vector<4x128xf32>, vector<128x384xf32>, vector<4x384xf32> -> vector<4x384xf32>
    %495 = vector.extract_strided_slice %493 {offsets = [0, 0], sizes = [4, 128], strides = [1, 1]} : vector<4x384xf32> to vector<4x128xf32>
    %496 = vector.extract_strided_slice %494 {offsets = [0, 0], sizes = [4, 128], strides = [1, 1]} : vector<4x384xf32> to vector<4x128xf32>
    %497 = arith.addf %495, %496 : vector<4x128xf32>
    %498 = arith.negf %497 : vector<4x128xf32>
    %499 = math.exp %498 : vector<4x128xf32>
    %cst_219 = arith.constant 1.000000e+00 : f32
    %500 = vector.broadcast %cst_219 : f32 to vector<4x128xf32>
    %501 = arith.addf %500, %499 : vector<4x128xf32>
    %502 = arith.divf %500, %501 : vector<4x128xf32>
    %503 = vector.extract_strided_slice %493 {offsets = [0, 128], sizes = [4, 128], strides = [1, 1]} : vector<4x384xf32> to vector<4x128xf32>
    %504 = vector.extract_strided_slice %494 {offsets = [0, 128], sizes = [4, 128], strides = [1, 1]} : vector<4x384xf32> to vector<4x128xf32>
    %505 = arith.addf %503, %504 : vector<4x128xf32>
    %506 = arith.negf %505 : vector<4x128xf32>
    %507 = math.exp %506 : vector<4x128xf32>
    %cst_220 = arith.constant 1.000000e+00 : f32
    %508 = vector.broadcast %cst_220 : f32 to vector<4x128xf32>
    %509 = arith.addf %508, %507 : vector<4x128xf32>
    %510 = arith.divf %508, %509 : vector<4x128xf32>
    %511 = vector.extract_strided_slice %493 {offsets = [0, 256], sizes = [4, 128], strides = [1, 1]} : vector<4x384xf32> to vector<4x128xf32>
    %512 = vector.extract_strided_slice %494 {offsets = [0, 256], sizes = [4, 128], strides = [1, 1]} : vector<4x384xf32> to vector<4x128xf32>
    %513 = vector.broadcast %430 : vector<1x128xf32> to vector<4x128xf32>
    %514 = arith.addf %512, %513 : vector<4x128xf32>
    %515 = arith.mulf %502, %514 : vector<4x128xf32>
    %516 = arith.addf %511, %515 : vector<4x128xf32>
    %517 = math.tanh %516 : vector<4x128xf32>
    %cst_221 = arith.constant 1.000000e+00 : f32
    %518 = vector.broadcast %cst_221 : f32 to vector<4x128xf32>
    %519 = arith.subf %518, %510 : vector<4x128xf32>
    %520 = arith.mulf %519, %517 : vector<4x128xf32>
    %521 = arith.mulf %510, %491 : vector<4x128xf32>
    %522 = arith.addf %520, %521 : vector<4x128xf32>
    %c8_222 = arith.constant 8 : index
    %c0_223 = arith.constant 0 : index
    %523 = vector.load %arg16[%c8_222, %c0_223] : memref<32x128xf32, #tpu.memory_space<vmem>>, vector<4x128xf32>
    tpu.vector_store %arg16[%c8_222, %c0_223], %522 {strides = array<i32>} : memref<32x128xf32, #tpu.memory_space<vmem>>, vector<4x128xf32>,
    %524 = vector.extract_strided_slice %426 {offsets = [12, 0], sizes = [4, 384], strides = [1, 1]} : vector<32x384xf32> to vector<4x384xf32>
    %cst_224 = arith.constant dense<0.000000e+00> : vector<4x384xf32>
    %525 = tpu.matmul %522, %429, %cst_224 {dimension_numbers = #tpu.dot_dimension_numbers<[1], [0], [0], [1], [0, 0, 1, 1], [], []>} : vector<4x128xf32>, vector<128x384xf32>, vector<4x384xf32> -> vector<4x384xf32>
    %526 = vector.extract_strided_slice %524 {offsets = [0, 0], sizes = [4, 128], strides = [1, 1]} : vector<4x384xf32> to vector<4x128xf32>
    %527 = vector.extract_strided_slice %525 {offsets = [0, 0], sizes = [4, 128], strides = [1, 1]} : vector<4x384xf32> to vector<4x128xf32>
    %528 = arith.addf %526, %527 : vector<4x128xf32>
    %529 = arith.negf %528 : vector<4x128xf32>
    %530 = math.exp %529 : vector<4x128xf32>
    %cst_225 = arith.constant 1.000000e+00 : f32
    %531 = vector.broadcast %cst_225 : f32 to vector<4x128xf32>
    %532 = arith.addf %531, %530 : vector<4x128xf32>
    %533 = arith.divf %531, %532 : vector<4x128xf32>
    %534 = vector.extract_strided_slice %524 {offsets = [0, 128], sizes = [4, 128], strides = [1, 1]} : vector<4x384xf32> to vector<4x128xf32>
    %535 = vector.extract_strided_slice %525 {offsets = [0, 128], sizes = [4, 128], strides = [1, 1]} : vector<4x384xf32> to vector<4x128xf32>
    %536 = arith.addf %534, %535 : vector<4x128xf32>
    %537 = arith.negf %536 : vector<4x128xf32>
    %538 = math.exp %537 : vector<4x128xf32>
    %cst_226 = arith.constant 1.000000e+00 : f32
    %539 = vector.broadcast %cst_226 : f32 to vector<4x128xf32>
    %540 = arith.addf %539, %538 : vector<4x128xf32>
    %541 = arith.divf %539, %540 : vector<4x128xf32>
    %542 = vector.extract_strided_slice %524 {offsets = [0, 256], sizes = [4, 128], strides = [1, 1]} : vector<4x384xf32> to vector<4x128xf32>
    %543 = vector.extract_strided_slice %525 {offsets = [0, 256], sizes = [4, 128], strides = [1, 1]} : vector<4x384xf32> to vector<4x128xf32>
    %544 = vector.broadcast %430 : vector<1x128xf32> to vector<4x128xf32>
    %545 = arith.addf %543, %544 : vector<4x128xf32>
    %546 = arith.mulf %533, %545 : vector<4x128xf32>
    %547 = arith.addf %542, %546 : vector<4x128xf32>
    %548 = math.tanh %547 : vector<4x128xf32>
    %cst_227 = arith.constant 1.000000e+00 : f32
    %549 = vector.broadcast %cst_227 : f32 to vector<4x128xf32>
    %550 = arith.subf %549, %541 : vector<4x128xf32>
    %551 = arith.mulf %550, %548 : vector<4x128xf32>
    %552 = arith.mulf %541, %522 : vector<4x128xf32>
    %553 = arith.addf %551, %552 : vector<4x128xf32>
    %c12_228 = arith.constant 12 : index
    %c0_229 = arith.constant 0 : index
    %554 = vector.load %arg16[%c12_228, %c0_229] : memref<32x128xf32, #tpu.memory_space<vmem>>, vector<4x128xf32>
    tpu.vector_store %arg16[%c12_228, %c0_229], %553 {strides = array<i32>} : memref<32x128xf32, #tpu.memory_space<vmem>>, vector<4x128xf32>,
    %555 = vector.extract_strided_slice %426 {offsets = [16, 0], sizes = [4, 384], strides = [1, 1]} : vector<32x384xf32> to vector<4x384xf32>
    %cst_230 = arith.constant dense<0.000000e+00> : vector<4x384xf32>
    %556 = tpu.matmul %553, %429, %cst_230 {dimension_numbers = #tpu.dot_dimension_numbers<[1], [0], [0], [1], [0, 0, 1, 1], [], []>} : vector<4x128xf32>, vector<128x384xf32>, vector<4x384xf32> -> vector<4x384xf32>
    %557 = vector.extract_strided_slice %555 {offsets = [0, 0], sizes = [4, 128], strides = [1, 1]} : vector<4x384xf32> to vector<4x128xf32>
    %558 = vector.extract_strided_slice %556 {offsets = [0, 0], sizes = [4, 128], strides = [1, 1]} : vector<4x384xf32> to vector<4x128xf32>
    %559 = arith.addf %557, %558 : vector<4x128xf32>
    %560 = arith.negf %559 : vector<4x128xf32>
    %561 = math.exp %560 : vector<4x128xf32>
    %cst_231 = arith.constant 1.000000e+00 : f32
    %562 = vector.broadcast %cst_231 : f32 to vector<4x128xf32>
    %563 = arith.addf %562, %561 : vector<4x128xf32>
    %564 = arith.divf %562, %563 : vector<4x128xf32>
    %565 = vector.extract_strided_slice %555 {offsets = [0, 128], sizes = [4, 128], strides = [1, 1]} : vector<4x384xf32> to vector<4x128xf32>
    %566 = vector.extract_strided_slice %556 {offsets = [0, 128], sizes = [4, 128], strides = [1, 1]} : vector<4x384xf32> to vector<4x128xf32>
    %567 = arith.addf %565, %566 : vector<4x128xf32>
    %568 = arith.negf %567 : vector<4x128xf32>
    %569 = math.exp %568 : vector<4x128xf32>
    %cst_232 = arith.constant 1.000000e+00 : f32
    %570 = vector.broadcast %cst_232 : f32 to vector<4x128xf32>
    %571 = arith.addf %570, %569 : vector<4x128xf32>
    %572 = arith.divf %570, %571 : vector<4x128xf32>
    %573 = vector.extract_strided_slice %555 {offsets = [0, 256], sizes = [4, 128], strides = [1, 1]} : vector<4x384xf32> to vector<4x128xf32>
    %574 = vector.extract_strided_slice %556 {offsets = [0, 256], sizes = [4, 128], strides = [1, 1]} : vector<4x384xf32> to vector<4x128xf32>
    %575 = vector.broadcast %430 : vector<1x128xf32> to vector<4x128xf32>
    %576 = arith.addf %574, %575 : vector<4x128xf32>
    %577 = arith.mulf %564, %576 : vector<4x128xf32>
    %578 = arith.addf %573, %577 : vector<4x128xf32>
    %579 = math.tanh %578 : vector<4x128xf32>
    %cst_233 = arith.constant 1.000000e+00 : f32
    %580 = vector.broadcast %cst_233 : f32 to vector<4x128xf32>
    %581 = arith.subf %580, %572 : vector<4x128xf32>
    %582 = arith.mulf %581, %579 : vector<4x128xf32>
    %583 = arith.mulf %572, %553 : vector<4x128xf32>
    %584 = arith.addf %582, %583 : vector<4x128xf32>
    %c16_234 = arith.constant 16 : index
    %c0_235 = arith.constant 0 : index
    %585 = vector.load %arg16[%c16_234, %c0_235] : memref<32x128xf32, #tpu.memory_space<vmem>>, vector<4x128xf32>
    tpu.vector_store %arg16[%c16_234, %c0_235], %584 {strides = array<i32>} : memref<32x128xf32, #tpu.memory_space<vmem>>, vector<4x128xf32>,
    %586 = vector.extract_strided_slice %426 {offsets = [20, 0], sizes = [4, 384], strides = [1, 1]} : vector<32x384xf32> to vector<4x384xf32>
    %cst_236 = arith.constant dense<0.000000e+00> : vector<4x384xf32>
    %587 = tpu.matmul %584, %429, %cst_236 {dimension_numbers = #tpu.dot_dimension_numbers<[1], [0], [0], [1], [0, 0, 1, 1], [], []>} : vector<4x128xf32>, vector<128x384xf32>, vector<4x384xf32> -> vector<4x384xf32>
    %588 = vector.extract_strided_slice %586 {offsets = [0, 0], sizes = [4, 128], strides = [1, 1]} : vector<4x384xf32> to vector<4x128xf32>
    %589 = vector.extract_strided_slice %587 {offsets = [0, 0], sizes = [4, 128], strides = [1, 1]} : vector<4x384xf32> to vector<4x128xf32>
    %590 = arith.addf %588, %589 : vector<4x128xf32>
    %591 = arith.negf %590 : vector<4x128xf32>
    %592 = math.exp %591 : vector<4x128xf32>
    %cst_237 = arith.constant 1.000000e+00 : f32
    %593 = vector.broadcast %cst_237 : f32 to vector<4x128xf32>
    %594 = arith.addf %593, %592 : vector<4x128xf32>
    %595 = arith.divf %593, %594 : vector<4x128xf32>
    %596 = vector.extract_strided_slice %586 {offsets = [0, 128], sizes = [4, 128], strides = [1, 1]} : vector<4x384xf32> to vector<4x128xf32>
    %597 = vector.extract_strided_slice %587 {offsets = [0, 128], sizes = [4, 128], strides = [1, 1]} : vector<4x384xf32> to vector<4x128xf32>
    %598 = arith.addf %596, %597 : vector<4x128xf32>
    %599 = arith.negf %598 : vector<4x128xf32>
    %600 = math.exp %599 : vector<4x128xf32>
    %cst_238 = arith.constant 1.000000e+00 : f32
    %601 = vector.broadcast %cst_238 : f32 to vector<4x128xf32>
    %602 = arith.addf %601, %600 : vector<4x128xf32>
    %603 = arith.divf %601, %602 : vector<4x128xf32>
    %604 = vector.extract_strided_slice %586 {offsets = [0, 256], sizes = [4, 128], strides = [1, 1]} : vector<4x384xf32> to vector<4x128xf32>
    %605 = vector.extract_strided_slice %587 {offsets = [0, 256], sizes = [4, 128], strides = [1, 1]} : vector<4x384xf32> to vector<4x128xf32>
    %606 = vector.broadcast %430 : vector<1x128xf32> to vector<4x128xf32>
    %607 = arith.addf %605, %606 : vector<4x128xf32>
    %608 = arith.mulf %595, %607 : vector<4x128xf32>
    %609 = arith.addf %604, %608 : vector<4x128xf32>
    %610 = math.tanh %609 : vector<4x128xf32>
    %cst_239 = arith.constant 1.000000e+00 : f32
    %611 = vector.broadcast %cst_239 : f32 to vector<4x128xf32>
    %612 = arith.subf %611, %603 : vector<4x128xf32>
    %613 = arith.mulf %612, %610 : vector<4x128xf32>
    %614 = arith.mulf %603, %584 : vector<4x128xf32>
    %615 = arith.addf %613, %614 : vector<4x128xf32>
    %c20_240 = arith.constant 20 : index
    %c0_241 = arith.constant 0 : index
    %616 = vector.load %arg16[%c20_240, %c0_241] : memref<32x128xf32, #tpu.memory_space<vmem>>, vector<4x128xf32>
    tpu.vector_store %arg16[%c20_240, %c0_241], %615 {strides = array<i32>} : memref<32x128xf32, #tpu.memory_space<vmem>>, vector<4x128xf32>,
    %617 = vector.extract_strided_slice %426 {offsets = [24, 0], sizes = [4, 384], strides = [1, 1]} : vector<32x384xf32> to vector<4x384xf32>
    %cst_242 = arith.constant dense<0.000000e+00> : vector<4x384xf32>
    %618 = tpu.matmul %615, %429, %cst_242 {dimension_numbers = #tpu.dot_dimension_numbers<[1], [0], [0], [1], [0, 0, 1, 1], [], []>} : vector<4x128xf32>, vector<128x384xf32>, vector<4x384xf32> -> vector<4x384xf32>
    %619 = vector.extract_strided_slice %617 {offsets = [0, 0], sizes = [4, 128], strides = [1, 1]} : vector<4x384xf32> to vector<4x128xf32>
    %620 = vector.extract_strided_slice %618 {offsets = [0, 0], sizes = [4, 128], strides = [1, 1]} : vector<4x384xf32> to vector<4x128xf32>
    %621 = arith.addf %619, %620 : vector<4x128xf32>
    %622 = arith.negf %621 : vector<4x128xf32>
    %623 = math.exp %622 : vector<4x128xf32>
    %cst_243 = arith.constant 1.000000e+00 : f32
    %624 = vector.broadcast %cst_243 : f32 to vector<4x128xf32>
    %625 = arith.addf %624, %623 : vector<4x128xf32>
    %626 = arith.divf %624, %625 : vector<4x128xf32>
    %627 = vector.extract_strided_slice %617 {offsets = [0, 128], sizes = [4, 128], strides = [1, 1]} : vector<4x384xf32> to vector<4x128xf32>
    %628 = vector.extract_strided_slice %618 {offsets = [0, 128], sizes = [4, 128], strides = [1, 1]} : vector<4x384xf32> to vector<4x128xf32>
    %629 = arith.addf %627, %628 : vector<4x128xf32>
    %630 = arith.negf %629 : vector<4x128xf32>
    %631 = math.exp %630 : vector<4x128xf32>
    %cst_244 = arith.constant 1.000000e+00 : f32
    %632 = vector.broadcast %cst_244 : f32 to vector<4x128xf32>
    %633 = arith.addf %632, %631 : vector<4x128xf32>
    %634 = arith.divf %632, %633 : vector<4x128xf32>
    %635 = vector.extract_strided_slice %617 {offsets = [0, 256], sizes = [4, 128], strides = [1, 1]} : vector<4x384xf32> to vector<4x128xf32>
    %636 = vector.extract_strided_slice %618 {offsets = [0, 256], sizes = [4, 128], strides = [1, 1]} : vector<4x384xf32> to vector<4x128xf32>
    %637 = vector.broadcast %430 : vector<1x128xf32> to vector<4x128xf32>
    %638 = arith.addf %636, %637 : vector<4x128xf32>
    %639 = arith.mulf %626, %638 : vector<4x128xf32>
    %640 = arith.addf %635, %639 : vector<4x128xf32>
    %641 = math.tanh %640 : vector<4x128xf32>
    %cst_245 = arith.constant 1.000000e+00 : f32
    %642 = vector.broadcast %cst_245 : f32 to vector<4x128xf32>
    %643 = arith.subf %642, %634 : vector<4x128xf32>
    %644 = arith.mulf %643, %641 : vector<4x128xf32>
    %645 = arith.mulf %634, %615 : vector<4x128xf32>
    %646 = arith.addf %644, %645 : vector<4x128xf32>
    %c24_246 = arith.constant 24 : index
    %c0_247 = arith.constant 0 : index
    %647 = vector.load %arg16[%c24_246, %c0_247] : memref<32x128xf32, #tpu.memory_space<vmem>>, vector<4x128xf32>
    tpu.vector_store %arg16[%c24_246, %c0_247], %646 {strides = array<i32>} : memref<32x128xf32, #tpu.memory_space<vmem>>, vector<4x128xf32>,
    %648 = vector.extract_strided_slice %426 {offsets = [28, 0], sizes = [4, 384], strides = [1, 1]} : vector<32x384xf32> to vector<4x384xf32>
    %cst_248 = arith.constant dense<0.000000e+00> : vector<4x384xf32>
    %649 = tpu.matmul %646, %429, %cst_248 {dimension_numbers = #tpu.dot_dimension_numbers<[1], [0], [0], [1], [0, 0, 1, 1], [], []>} : vector<4x128xf32>, vector<128x384xf32>, vector<4x384xf32> -> vector<4x384xf32>
    %650 = vector.extract_strided_slice %648 {offsets = [0, 0], sizes = [4, 128], strides = [1, 1]} : vector<4x384xf32> to vector<4x128xf32>
    %651 = vector.extract_strided_slice %649 {offsets = [0, 0], sizes = [4, 128], strides = [1, 1]} : vector<4x384xf32> to vector<4x128xf32>
    %652 = arith.addf %650, %651 : vector<4x128xf32>
    %653 = arith.negf %652 : vector<4x128xf32>
    %654 = math.exp %653 : vector<4x128xf32>
    %cst_249 = arith.constant 1.000000e+00 : f32
    %655 = vector.broadcast %cst_249 : f32 to vector<4x128xf32>
    %656 = arith.addf %655, %654 : vector<4x128xf32>
    %657 = arith.divf %655, %656 : vector<4x128xf32>
    %658 = vector.extract_strided_slice %648 {offsets = [0, 128], sizes = [4, 128], strides = [1, 1]} : vector<4x384xf32> to vector<4x128xf32>
    %659 = vector.extract_strided_slice %649 {offsets = [0, 128], sizes = [4, 128], strides = [1, 1]} : vector<4x384xf32> to vector<4x128xf32>
    %660 = arith.addf %658, %659 : vector<4x128xf32>
    %661 = arith.negf %660 : vector<4x128xf32>
    %662 = math.exp %661 : vector<4x128xf32>
    %cst_250 = arith.constant 1.000000e+00 : f32
    %663 = vector.broadcast %cst_250 : f32 to vector<4x128xf32>
    %664 = arith.addf %663, %662 : vector<4x128xf32>
    %665 = arith.divf %663, %664 : vector<4x128xf32>
    %666 = vector.extract_strided_slice %648 {offsets = [0, 256], sizes = [4, 128], strides = [1, 1]} : vector<4x384xf32> to vector<4x128xf32>
    %667 = vector.extract_strided_slice %649 {offsets = [0, 256], sizes = [4, 128], strides = [1, 1]} : vector<4x384xf32> to vector<4x128xf32>
    %668 = vector.broadcast %430 : vector<1x128xf32> to vector<4x128xf32>
    %669 = arith.addf %667, %668 : vector<4x128xf32>
    %670 = arith.mulf %657, %669 : vector<4x128xf32>
    %671 = arith.addf %666, %670 : vector<4x128xf32>
    %672 = math.tanh %671 : vector<4x128xf32>
    %cst_251 = arith.constant 1.000000e+00 : f32
    %673 = vector.broadcast %cst_251 : f32 to vector<4x128xf32>
    %674 = arith.subf %673, %665 : vector<4x128xf32>
    %675 = arith.mulf %674, %672 : vector<4x128xf32>
    %676 = arith.mulf %665, %646 : vector<4x128xf32>
    %677 = arith.addf %675, %676 : vector<4x128xf32>
    %c28_252 = arith.constant 28 : index
    %c0_253 = arith.constant 0 : index
    %678 = vector.load %arg16[%c28_252, %c0_253] : memref<32x128xf32, #tpu.memory_space<vmem>>, vector<4x128xf32>
    tpu.vector_store %arg16[%c28_252, %c0_253], %677 {strides = array<i32>} : memref<32x128xf32, #tpu.memory_space<vmem>>, vector<4x128xf32>,
    %c1_254 = arith.constant 1 : index
    %c0_255 = arith.constant 0 : index
    %c0_256 = arith.constant 0 : index
    %679 = vector.load %arg14[%c1_254, %c0_255, %c0_256] : memref<2x4x128xf32, #tpu.memory_space<vmem>>, vector<1x4x128xf32>
    %680 = vector.shape_cast %679 : vector<1x4x128xf32> to vector<4x128xf32>
    %681 = vector.shape_cast %677 : vector<4x128xf32> to vector<1x4x128xf32>
    tpu.vector_store %arg14[%c1_254, %c0_255, %c0_256], %681 {strides = array<i32>} : memref<2x4x128xf32, #tpu.memory_space<vmem>>, vector<1x4x128xf32>,
    %c0_257 = arith.constant 0 : index
    %c0_258 = arith.constant 0 : index
    %682 = vector.load %arg16[%c0_257, %c0_258] : memref<32x128xf32, #tpu.memory_space<vmem>>, vector<32x128xf32>
    %c0_259 = arith.constant 0 : index
    %c0_260 = arith.constant 0 : index
    %683 = vector.load %arg11[%c0_259, %c0_260] : memref<128x128xf32, #tpu.memory_space<vmem>>, vector<128x128xf32>
    %cst_261 = arith.constant dense<0.000000e+00> : vector<32x128xf32>
    %684 = tpu.matmul %682, %683, %cst_261 {dimension_numbers = #tpu.dot_dimension_numbers<[1], [0], [0], [1], [0, 0, 1, 1], [], []>} : vector<32x128xf32>, vector<128x128xf32>, vector<32x128xf32> -> vector<32x128xf32>
    %c0_262 = arith.constant 0 : index
    %c0_263 = arith.constant 0 : index
    %685 = vector.load %arg12[%c0_262, %c0_263] : memref<1x128xf32, #tpu.memory_space<vmem>>, vector<1x128xf32>
    %686 = vector.broadcast %685 : vector<1x128xf32> to vector<32x128xf32>
    %687 = arith.addf %684, %686 : vector<32x128xf32>
    %c0_264 = arith.constant 0 : index
    %c0_265 = arith.constant 0 : index
    %688 = vector.load %arg13[%c0_264, %c0_265] : memref<32x128xf32, #tpu.memory_space<vmem>>, vector<32x128xf32>
    tpu.vector_store %arg13[%c0_264, %c0_265], %687 {strides = array<i32>} : memref<32x128xf32, #tpu.memory_space<vmem>>, vector<32x128xf32>,
    return
  }
}

</mosaic_0001>

<bundles_post_ra>
// kernel: decoder_rnn_forward.1
= control target key start
LH: loop header
LB: loop body
LE: loop exit
PB: predicated region body
PF: predicated region fallthrough
CT: control target
= control target key end

     0   :  { %20 = vsyncpa [#allocation6], 0  ;;  %s7934_s0 = inlined_call_operand.vmem [shape: s32[32], index: 0, kind: input, shape index: {}]   ;;  %s7935_s1 = inlined_call_operand.vmem [shape: f32[50,1,16], index: 1, kind: input, shape index: {}]   ;;  %s7936_s2 = inlined_call_operand.vmem [shape: f32[2,4,128], index: 2, kind: input, shape index: {}]   ;;  %s7937_s3 = inlined_call_operand.vmem [shape: f32[16,384], index: 3, kind: input, shape index: {}]   ;;  %s7938_s4 = inlined_call_operand.vmem [shape: f32[128,384], index: 4, kind: input, shape index: {}]   ;;  %s7939_s5 = inlined_call_operand.vmem [shape: f32[1,384], index: 5, kind: input, shape index: {}]   ;;  %s7940_s6 = inlined_call_operand.vmem [shape: f32[1,128], index: 6, kind: input, shape index: {}]   ;;  %s7941_s7 = inlined_call_operand.vmem [shape: f32[128,384], index: 7, kind: input, shape index: {}]   ;;  %s7942_s8 = inlined_call_operand.vmem [shape: f32[128,384], index: 8, kind: input, shape index: {}]   ;;  %s7943_s9 = inlined_call_operand.vmem [shape: f32[1,384], index: 9, kind: input, shape index: {}]   ;;  %s7944_s10 = inlined_call_operand.vmem [shape: f32[1,128], index: 10, kind: input, shape index: {}]   ;;  %s7945_s11 = inlined_call_operand.vmem [shape: f32[128,128], index: 11, kind: input, shape index: {}]   ;;  %s7946_s12 = inlined_call_operand.vmem [shape: f32[1,128], index: 12, kind: input, shape index: {}]   ;;  %s7947_s13 = inlined_call_operand.hbm [shape: f32[32,128], index: 13, kind: output, shape index: {0}]   ;;  %s7948_s14 = inlined_call_operand.hbm [shape: f32[2,4,128], index: 14, kind: output, shape index: {1}]  }
   0x1   :  { %21 = vsyncpa [#allocation5], 0 }
   0x2   :  { %22 = vsyncpa [#allocation9], 0  ;;  %s29_s15 = sshll.u32 %s7934_s0, 4  ;;  %s30_s15 = int_to_ptr.vmem [resolvable:$true] %s29_s15 }
   0x3   :  { %s4988_s16 = scalar_lea.vmem %s30_s15, 16  ;;  %p4993_p1 = scmp.lt.s32.totalorder %s30_s15, %s30_s15 }
   0x4   :  { %p4989_p0 = scmp.ne.s32.totalorder %s30_s15, %s4988_s16  ;;  %p4994_p2 = scmp.lt.s32.totalorder %s4988_s16, %s4988_s16 }
   0x6   :  { %p4995_p3 = por %p4994_p2, %p4993_p1 }
   0x8   :  { %p4996_p4 = pnand %p4995_p3, %p4989_p0 }
   0xa   :  { %4999 = shalt.err (!%p4996_p4)
}
   0xb   :  { %s5046_s17 = smov [#allocation4]  }
   0xc   :  { %32 = dma.vmem_to_smem %s30_s15, 16, %s5046_s17, [#allocation6]  }
   0xd   :  { %5040 = dma.done.wait [#allocation6], 16  }
   0xe   :  { %5041 = vsyncadd [#allocation6], 4294967280 }
   0xf   :  { %60 = sfence }
  0x10   :  { %v5136_v0 = vld [vmem:[%s7938_s4 + $0x170] sm:$0xff]  ;;  %v5141_v1 = vld [vmem:[%s7938_s4 + $0x168] sm:$0xff]  ;;  %v5146_v2 = vld [vmem:[%s7938_s4 + $0x158] sm:$0xff]  ;;  %s5148_s23 = sld [smem:[#allocation4]]  ;;  %v7949_v4 = vmov 0.0   ;;  %vm64_vm0 = vcmask 122880  }
  0x11   :  { %8020 = vst [vmem:[#allocation13_spill] sm:$0xff] %v5136_v0  ;;  %454 = vmatprep.subr.mxu0 %v5136_v0  ;;  %v5154_v3 = vld [vmem:[%s7938_s4 + $0x150] sm:$0xff]  ;;  %294 = vmatprep.mubr.f32.mxu1 %v7949_v4  ;;  %s5157_s26 = sld [smem:[#allocation4 + $0x1]]  ;;  %v5163_v5 = vld [vmem:[%s7938_s4 + $0x140] sm:$0xff]  ;;  %v5172_v6 = vld [vmem:[%s7938_s4 + $0x138] sm:$0xff]  ;;  %vm217_vm1 = vcmask 130048  }
  0x12   :  { %455 = vmatpush1.msra.mxu0 %v5141_v1  ;;  %s5165_s29 = sld [smem:[#allocation4 + $0x2]]  ;;  %518 = vmatprep.mubr.f32.mxu0 %v7949_v4  ;;  %v198_v7 = vld [vmem:[%s7937_s3 + $0x20] sm:$0xff]  ;;  %v5183_v8 = vld [vmem:[%s7938_s4 + $0x128] sm:$0xff]  ;;  %v197_v9 = vld [vmem:[%s7937_s3 + $0x18] sm:$0xff]  ;;  %vm5048_vm2 = vmmov 0  }
  0x13   :  { %456 = vmatprep.subr.mxu0 %v5146_v2  ;;  %s5177_s18 = sld [smem:[#allocation4 + $0x3]]  ;;  %258 = vmatprep.subr.mxu1 %v198_v7  ;;  %v5194_v10 = vld [vmem:[%s7938_s4 + $0x120] sm:$0xff]  ;;  %v195_v11 = vld [vmem:[%s7937_s3 + $0x8] sm:$0xff]  ;;  %v5208_v13 = vld [vmem:[%s7938_s4 + $0x110] sm:$0xff] }
  0x14   :  { %457 = vmatpush1.msra.mxu0 %v5154_v3  ;;  %s5188_s22 = sld [smem:[#allocation4 + $0x4]]  ;;  %259 = vmatpush1.msra.mxu1 %v197_v9  ;;  %v194_v12 = vld [vmem:[%s7937_s3] sm:$0xff]  ;;  %v5219_v14 = vld [vmem:[%s7937_s3 + $0x28] sm:$0xff]  ;;  %v5237_v17 = vld [vmem:[%s7938_s4 + $0xf8] sm:$0xff] }
  0x15   :  { %458 = vmatprep.subr.mxu0 %v5163_v5  ;;  %s5202_s16 = sld [smem:[#allocation4 + $0x5]]  ;;  %260 = vmatprep.subr.mxu1 %v195_v11  ;;  %v5225_v15 = vld [vmem:[%s7938_s4 + $0x108] sm:$0xff]  ;;  %v5251_v19 = vld [vmem:[%s7938_s4 + $0xf0] sm:$0xff]  ;;  %v5264_v21 = vld [vmem:[%s7938_s4 + $0xe0] sm:$0xff] }
  0x16   :  { %459 = vmatpush1.msra.mxu0 %v5172_v6  ;;  %s62_s21 = scalar_lea.vmem %s7935_s1, %s5148_s23  ;;  %s5214_s24 = sld [smem:[#allocation4 + $0x6]]  ;;  %261 = vmatpush1.msra.mxu1 %v194_v12  ;;  %v5277_v23 = vld [vmem:[%s7938_s4 + $0xd8] sm:$0xff]  ;;  %v5290_v25 = vld [vmem:[%s7938_s4 + $0xc8] sm:$0xff]  ;;  %v5308_v28 = vld [vmem:[%s7938_s4 + $0xc0] sm:$0xff] }
  0x17   :  { %460 = vmatprep.subr.mxu0 %v5183_v8  ;;  %v63_v16 = vld [vmem:[%s62_s21] sm:$0x1]  ;;  %s67_s23 = scalar_lea.vmem %s7935_s1, %s5157_s26  ;;  %s5231_s19 = sld [smem:[#allocation4 + $0x7]]  ;;  %4075 = vmatprep.subr.mxu1 %v5219_v14  ;;  %v5317_v30 = vld [vmem:[%s7938_s4 + $0xb0] sm:$0xff]  ;;  %v5330_v31 = vld [vmem:[%s7938_s4 + $0xa8] sm:$0xff] }
  0x18   :  { %461 = vmatpush1.msra.mxu0 %v5194_v10  ;;  %65 = vst.msk [vmem:[#allocation2] sm:$0x1] %vm64_vm0, %v63_v16  ;;  %v68_v18 = vld [vmem:[%s67_s23] sm:$0x1]  ;;  %s71_s21 = scalar_lea.vmem %s7935_s1, %s5165_s29  ;;  %s5245_s26 = sld [smem:[#allocation4 + $0x8]]  ;;  %v5342_v33 = vld [vmem:[%s7938_s4 + $0x98] sm:$0xff] }
  0x19   :  { %462 = vmatprep.subr.mxu0 %v5208_v13  ;;  %69 = vst.msk [vmem:[#allocation2 + $0x1] sm:$0x1] %vm64_vm0, %v68_v18  ;;  %v72_v20 = vld [vmem:[%s71_s21] sm:$0x1]  ;;  %s75_s23 = scalar_lea.vmem %s7935_s1, %s5177_s18  ;;  %s5258_s29 = sld [smem:[#allocation4 + $0x9]]  ;;  %v5360_v36 = vld [vmem:[%s7938_s4 + $0x90] sm:$0xff] }
  0x1a   :  { %463 = vmatpush1.msra.mxu0 %v5225_v15  ;;  %73 = vst.msk [vmem:[#allocation2 + $0x2] sm:$0x1] %vm64_vm0, %v72_v20  ;;  %v76_v22 = vld [vmem:[%s75_s23] sm:$0x1]  ;;  %s79_s21 = scalar_lea.vmem %s7935_s1, %s5188_s22  ;;  %s5271_s28 = sld [smem:[#allocation4 + $0xa]]  ;;  %v5386_v40 = vld [vmem:[%s7938_s4 + $0x78] sm:$0xff] }
  0x1b   :  { %464 = vmatprep.subr.mxu0 %v5237_v17  ;;  %77 = vst.msk [vmem:[#allocation2 + $0x3] sm:$0x1] %vm64_vm0, %v76_v22  ;;  %v80_v24 = vld [vmem:[%s79_s21] sm:$0x1]  ;;  %s83_s23 = scalar_lea.vmem %s7935_s1, %s5202_s16  ;;  %s5284_s20 = sld [smem:[#allocation4 + $0xb]]  ;;  %v5399_v42 = vld [vmem:[%s7938_s4 + $0x68] sm:$0xff] }
  0x1c   :  { %465 = vmatpush1.msra.mxu0 %v5251_v19  ;;  %81 = vst.msk [vmem:[#allocation2 + $0x4] sm:$0x1] %vm64_vm0, %v80_v24  ;;  %v84_v26 = vld [vmem:[%s83_s23] sm:$0x1]  ;;  %s87_s21 = scalar_lea.vmem %s7935_s1, %s5214_s24  ;;  %s5297_s18 = sld [smem:[#allocation4 + $0xc]]  ;;  %v196_v47 = vld [vmem:[%s7937_s3 + $0x10] sm:$0xff] }
  0x1d   :  { %466 = vmatprep.subr.mxu0 %v5264_v21  ;;  %85 = vst.msk [vmem:[#allocation2 + $0x5] sm:$0x1] %vm64_vm0, %v84_v26  ;;  %v88_v27 = vld [vmem:[%s87_s21] sm:$0x1]  ;;  %s91_s15 = scalar_lea.vmem %s7935_s1, %s5231_s19  ;;  %s5310_s23 = sld [smem:[#allocation4 + $0xd]]  ;;  %v5442_v49 = vld [vmem:[%s7938_s4 + $0x50] sm:$0xff] }
  0x1e   :  { %467 = vmatpush1.msra.mxu0 %v5277_v23  ;;  %89 = vst.msk [vmem:[#allocation2 + $0x6] sm:$0x1] %vm64_vm0, %v88_v27  ;;  %v92_v29 = vld [vmem:[%s91_s15] sm:$0x1]  ;;  %s95_s27 = scalar_lea.vmem %s7935_s1, %s5245_s26  ;;  %s5323_s21 = sld [smem:[#allocation4 + $0xe]]  ;;  %v5454_v51 = vld [vmem:[%s7938_s4 + $0x48] sm:$0xff] }
  0x1f   :  { %468 = vmatprep.subr.mxu0 %v5290_v25  ;;  %93 = vst.msk [vmem:[#allocation2 + $0x7] sm:$0x1] %vm64_vm0, %v92_v29  ;;  %v96_v32 = vld [vmem:[%s95_s27] sm:$0x1]  ;;  %s99_s22 = scalar_lea.vmem %s7935_s1, %s5258_s29  ;;  %s5336_s24 = sld [smem:[#allocation4 + $0xf]]  ;;  %v5467_v53 = vld [vmem:[%s7938_s4 + $0x38] sm:$0xff] }
  0x20   :  { %469 = vmatpush1.msra.mxu0 %v5308_v28  ;;  %97 = vst.msk [vmem:[#allocation2 + $0x8] sm:$0x1] %vm64_vm0, %v96_v32  ;;  %v100_v34 = vld [vmem:[%s99_s22] sm:$0x1]  ;;  %s103_s27 = scalar_lea.vmem %s7935_s1, %s5271_s28  ;;  %s5349_s16 = sld [smem:[#allocation4 + $0x10]]  ;;  %v5482_v55 = vld [vmem:[%s7938_s4 + $0x30] sm:$0xff] }
  0x21   :  { %470 = vmatprep.subr.mxu0 %v5317_v30  ;;  %101 = vst.msk [vmem:[#allocation2 + $0x9] sm:$0x1] %vm64_vm0, %v100_v34  ;;  %v104_v35 = vld [vmem:[%s103_s27] sm:$0x1]  ;;  %s107_s15 = scalar_lea.vmem %s7935_s1, %s5284_s20  ;;  %s5362_s22 = sld [smem:[#allocation4 + $0x11]]  ;;  %v5509_v59 = vld [vmem:[%s7938_s4 + $0x18] sm:$0xff] }
  0x22   :  { %471 = vmatpush1.msra.mxu0 %v5330_v31  ;;  %105 = vst.msk [vmem:[#allocation2 + $0xa] sm:$0x1] %vm64_vm0, %v104_v35  ;;  %v108_v37 = vld [vmem:[%s107_s15] sm:$0x1]  ;;  %s111_s25 = scalar_lea.vmem %s7935_s1, %s5297_s18  ;;  %s5375_s20 = sld [smem:[#allocation4 + $0x12]]  ;;  %8021 = vst [vmem:[#allocation14_spill] sm:$0xff] %v5509_v59 }
  0x23   :  { %v5373_v38 = vld [vmem:[%s7938_s4 + $0x80] sm:$0xff]  ;;  %472 = vmatprep.subr.mxu0 %v5342_v33  ;;  %109 = vst.msk [vmem:[#allocation2 + $0xb] sm:$0x1] %vm64_vm0, %v108_v37  ;;  %s115_s15 = scalar_lea.vmem %s7935_s1, %s5310_s23  ;;  %s5388_s18 = sld [smem:[#allocation4 + $0x13]]  ;;  %v5522_v61 = vld [vmem:[%s7938_s4 + $0x8] sm:$0xff]  ;;  %v5614_v29 = vld [vmem:[%s7938_s4 + $0x178] sm:$0xff] }
  0x24   :  { %v112_v39 = vld [vmem:[%s111_s25] sm:$0x1]  ;;  %s119_s25 = scalar_lea.vmem %s7935_s1, %s5323_s21  ;;  %473 = vmatpush1.msra.mxu0 %v5360_v36  ;;  %s5401_s27 = sld [smem:[#allocation4 + $0x14]]  ;;  %8022 = vst [vmem:[#allocation15_spill] sm:$0xff] %v5522_v61  ;;  %v5632_v34 = vld [vmem:[%s7938_s4 + $0x148] sm:$0xff]  ;;  %v5641_v35 = vld [vmem:[%s7938_s4 + $0x130] sm:$0xff] }
  0x25   :  { %113 = vst.msk [vmem:[#allocation2 + $0xc] sm:$0x1] %vm64_vm0, %v112_v39  ;;  %v116_v41 = vld [vmem:[%s115_s15] sm:$0x1]  ;;  %s123_s15 = scalar_lea.vmem %s7935_s1, %s5336_s24  ;;  %474 = vmatprep.subr.mxu0 %v5373_v38  ;;  %s5409_s21 = sld [smem:[#allocation4 + $0x15]]  ;;  %v5651_v37 = vld [vmem:[%s7938_s4 + $0x118] sm:$0xff] }
  0x26   :  { %117 = vst.msk [vmem:[#allocation2 + $0xd] sm:$0x1] %vm64_vm0, %v116_v41  ;;  %v120_v43 = vld [vmem:[%s119_s25] sm:$0x1]  ;;  %475 = vmatpush1.msra.mxu0 %v5386_v40  ;;  %s127_s24 = scalar_lea.vmem %s7935_s1, %s5349_s16  ;;  %s5424_s25 = sld [smem:[#allocation4 + $0x16]]  ;;  %v5669_v41 = vld [vmem:[%s7938_s4 + $0xe8] sm:$0xff] }
  0x27   :  { %v5414_v44 = vld [vmem:[%s7938_s4 + $0x60] sm:$0xff]  ;;  %121 = vst.msk [vmem:[#allocation2 + $0xe] sm:$0x1] %vm64_vm0, %v120_v43  ;;  %476 = vmatprep.subr.mxu0 %v5399_v42  ;;  %s5437_s16 = sld [smem:[#allocation4 + $0x17]]  ;;  %v5678_v43 = vld [vmem:[%s7938_s4 + $0xd0] sm:$0xff] }
  0x28   :  { %v5416_v45 = vld [vmem:[#allocation2] sm:$0xff]  ;;  %s135_s0 = scalar_lea.vmem %s7935_s1, %s5375_s20  ;;  %s5456_s19 = sld [smem:[#allocation4 + $0x18]]  ;;  %477 = vmatpush1.msra.mxu0 %v5414_v44 }
  0x29   :  { %v124_v46 = vld [vmem:[%s123_s15] sm:$0x1]  ;;  %3713 = vmatmul.mubr.msk.f32.vlgmr.msra.gmra.mxu1 %vm217_vm1, %v5416_v45  ;;  %s131_s15 = scalar_lea.vmem %s7935_s1, %s5362_s22  ;;  %s139_s30 = scalar_lea.vmem %s7935_s1, %s5388_s18  ;;  %478 = vmatprep.subr.mxu0 %v5442_v49 }
  0x2a   :  { %125 = vst.msk [vmem:[#allocation2 + $0xf] sm:$0x1] %vm64_vm0, %v124_v46  ;;  %v128_v48 = vld [vmem:[%s127_s24] sm:$0x1]  ;;  %4076 = vmatpush3.msra.mxu1 %v5219_v14  ;;  %300 = vmatprep.mubr.f32.mxu1 %v7949_v4  ;;  %s5469_s17 = sld [smem:[#allocation4 + $0x19]]  ;;  %s143_s28 = scalar_lea.vmem %s7935_s1, %s5401_s27 }
  0x2b   :  { %129 = vst.msk [vmem:[#allocation2 + $0x10] sm:$0x1] %vm64_vm0, %v128_v48  ;;  %v132_v50 = vld [vmem:[%s131_s15] sm:$0x1]  ;;  %4077 = vmatprep.subr.mxu1 %v196_v47  ;;  %s5477_s18 = sld [smem:[#allocation4 + $0x1a]]  ;;  %s147_s29 = scalar_lea.vmem %s7935_s1, %s5409_s21  ;;  %479 = vmatpush1.msra.mxu0 %v5454_v51  ;;  %v5713_v48 = vld [vmem:[%s7938_s4 + $0x70] sm:$0xff] }
  0x2c   :  { %133 = vst.msk [vmem:[#allocation2 + $0x11] sm:$0x1] %vm64_vm0, %v132_v50  ;;  %v136_v52 = vld [vmem:[%s135_s0] sm:$0x1]  ;;  %4078 = vmatpush3.msra.mxu1 %v196_v47  ;;  %s5490_s27 = sld [smem:[#allocation4 + $0x1b]]  ;;  %s151_s3 = scalar_lea.vmem %s7935_s1, %s5424_s25  ;;  %480 = vmatprep.subr.mxu0 %v5467_v53  ;;  %v5705_v47 = vld [vmem:[%s7938_s4 + $0x88] sm:$0xff] }
  0x2d   :  { %137 = vst.msk [vmem:[#allocation2 + $0x12] sm:$0x1] %vm64_vm0, %v136_v52  ;;  %v140_v54 = vld [vmem:[%s139_s30] sm:$0x1]  ;;  %4085 = vmatprep.subr.mxu1 %v7949_v4  ;;  %s5504_s21 = sld [smem:[#allocation4 + $0x1c]]  ;;  %s155_s23 = scalar_lea.vmem %s7935_s1, %s5437_s16  ;;  %481 = vmatpush1.msra.mxu0 %v5482_v55  ;;  %v5720_v50 = vld [vmem:[%s7938_s4 + $0x58] sm:$0xff] }
  0x2e   :  { %141 = vst.msk [vmem:[#allocation2 + $0x13] sm:$0x1] %vm64_vm0, %v140_v54  ;;  %v144_v56 = vld [vmem:[%s143_s28] sm:$0x1]  ;;  %s159_s26 = scalar_lea.vmem %s7935_s1, %s5456_s19  ;;  %s5531_s16 = sld [smem:[#allocation4 + $0x1e]]  ;;  %v5734_v54 = vld [vmem:[%s7938_s4 + $0x28] sm:$0xff] }
  0x2f   :  { %v5495_v57 = vld [vmem:[%s7938_s4 + $0x20] sm:$0xff]  ;;  %145 = vst.msk [vmem:[#allocation2 + $0x14] sm:$0x1] %vm64_vm0, %v144_v56  ;;  %s5546_s24 = sld [smem:[#allocation4 + $0x1f]]  ;;  %8024 = vst [vmem:[#allocation17_spill] sm:$0xff] %v5734_v54  ;;  %v5741_v56 = vld [vmem:[%s7938_s4 + $0x10] sm:$0xff] }
  0x30   :  { %v148_v58 = vld [vmem:[%s147_s29] sm:$0x1]  ;;  %s5516_s29 = sld [smem:[#allocation4 + $0x1d]]  ;;  %482 = vmatprep.subr.mxu0 %v5495_v57  ;;  %s163_s19 = scalar_lea.vmem %s7935_s1, %s5469_s17  ;;  %8025 = vst [vmem:[#allocation18_spill] sm:$0xff] %v5741_v56 }
  0x31   :  { %149 = vst.msk [vmem:[#allocation2 + $0x15] sm:$0x1] %vm64_vm0, %v148_v58  ;;  %v152_v60 = vld [vmem:[%s151_s3] sm:$0x1]  ;;  %v5524_v62 = vld [vmem:[#allocation2 + $0x8] sm:$0xff]  ;;  %483 = vmatpush1.msra.mxu0 %v5509_v59  ;;  %s167_s20 = scalar_lea.vmem %s7935_s1, %s5477_s18  ;;  %v202_v58 = vlaneseq }
  0x32   :  { %153 = vst.msk [vmem:[#allocation2 + $0x16] sm:$0x1] %vm64_vm0, %v152_v60  ;;  %v156_v63 = vld [vmem:[%s155_s23] sm:$0x1]  ;;  %3714 = vmatmul.mubr.msk.f32.gmra.mxu1 %vm217_vm1, %v5524_v62  ;;  %484 = vmatprep.subr.mxu0 %v5522_v61  ;;  %s171_s3 = scalar_lea.vmem %s7935_s1, %s5490_s27 }
  0x33   :  { %v5537_v7 = vld [vmem:[%s7938_s4] sm:$0xff]  ;;  %157 = vst.msk [vmem:[#allocation2 + $0x17] sm:$0x1] %vm64_vm0, %v156_v63  ;;  %306 = vmatprep.mubr.f32.mxu1 %v7949_v4  ;;  %s175_s18 = scalar_lea.vmem %s7935_s1, %s5504_s21  ;;  %v5782_v60 = vshrl.u32 %v202_v58, 7 }
  0x34   :  { %8023 = vst [vmem:[#allocation16_spill] sm:$0xff] %v5537_v7  ;;  %v160_v9 = vld [vmem:[%s159_s26] sm:$0x1]  ;;  %485 = vmatpush1.msra.mxu0 %v5537_v7  ;;  %s183_s25 = scalar_lea.vmem %s7935_s1, %s5531_s16 }
  0x35   :  { %v5552_v11 = vld [vmem:[%s7936_s2] sm:$0xf]  ;;  %161 = vst.msk [vmem:[#allocation2 + $0x18] sm:$0x1] %vm64_vm0, %v160_v9  ;;  %624 = vmatprep.subr.mxu0 %v5136_v0  ;;  %8026 = vst [vmem:[#allocation19_spill] sm:$0xff] %v5782_v60  ;;  %v7956_v63 = vsub.s32 0, %v5782_v60 }
  0x36   :  { %v164_v12 = vld [vmem:[%s163_s19] sm:$0x1]  ;;  %519 = vmatmul.mubr.f32.vlgmr.msra.gmra.mxu0 %v5552_v11  ;;  %s179_s27 = scalar_lea.vmem %s7935_s1, %s5516_s29  ;;  %s187_s29 = scalar_lea.vmem %s7935_s1, %s5546_s24 }
  0x37   :  { %165 = vst.msk [vmem:[#allocation2 + $0x19] sm:$0x1] %vm64_vm0, %v164_v12  ;;  %v168_v14 = vld [vmem:[%s167_s20] sm:$0x1]  ;;  %625 = vmatpush1.msra.mxu0 %v5141_v1  ;;  %688 = vmatprep.mubr.f32.mxu0 %v7949_v4 }
  0x38   :  { %169 = vst.msk [vmem:[#allocation2 + $0x1a] sm:$0x1] %vm64_vm0, %v168_v14  ;;  %v172_v16 = vld [vmem:[%s171_s3] sm:$0x1]  ;;  %626 = vmatprep.subr.mxu0 %v5146_v2  ;;  %v7961_v14 = vsub.s32 1, %v5782_v60 }
  0x39   :  { %173 = vst.msk [vmem:[#allocation2 + $0x1b] sm:$0x1] %vm64_vm0, %v172_v16  ;;  %v176_v18 = vld [vmem:[%s175_s18] sm:$0x1]  ;;  %627 = vmatpush1.msra.mxu0 %v5154_v3 }
  0x3a   :  { %177 = vst.msk [vmem:[#allocation2 + $0x1c] sm:$0x1] %vm64_vm0, %v176_v18  ;;  %v180_v20 = vld [vmem:[%s179_s27] sm:$0x1]  ;;  %v192_v24 = vld [vmem:[#allocation2 + $0x10] sm:$0xff]  ;;  %628 = vmatprep.subr.mxu0 %v5163_v5 }
  0x3b   :  { %181 = vst.msk [vmem:[#allocation2 + $0x1d] sm:$0x1] %vm64_vm0, %v180_v20  ;;  %v184_v22 = vld [vmem:[%s183_s25] sm:$0x1]  ;;  %3715 = vmatmul.mubr.msk.f32.gmra.mxu1 %vm217_vm1, %v192_v24  ;;  %629 = vmatpush1.msra.mxu0 %v5172_v6 }
  0x3c   :  { %185 = vst.msk [vmem:[#allocation2 + $0x1e] sm:$0x1] %vm64_vm0, %v184_v22  ;;  %v188_v26 = vld [vmem:[%s187_s29] sm:$0x1]  ;;  %312 = vmatprep.mubr.f32.mxu1 %v7949_v4  ;;  %630 = vmatprep.subr.mxu0 %v5183_v8 }
  0x3d   :  { %189 = vst.msk [vmem:[#allocation2 + $0x1f] sm:$0x1] %vm64_vm0, %v188_v26  ;;  %631 = vmatpush1.msra.mxu0 %v5194_v10  ;;  %v5623_v32 = vld [vmem:[%s7938_s4 + $0x160] sm:$0xff] }
  0x3e   :  { %632 = vmatprep.subr.mxu0 %v5208_v13  ;;  %v5660_v39 = vld [vmem:[%s7938_s4 + $0x100] sm:$0xff] }
  0x3f   :  { %633 = vmatpush1.msra.mxu0 %v5225_v15  ;;  %v5696_v46 = vld [vmem:[%s7938_s4 + $0xa0] sm:$0xff] }
  0x40   :  { %634 = vmatprep.subr.mxu0 %v5237_v17  ;;  %v5727_v52 = vld [vmem:[%s7938_s4 + $0x40] sm:$0xff] }
  0x41   :  { %635 = vmatpush1.msra.mxu0 %v5251_v19  ;;  %v200_v9 = vld [vmem:[%s7939_s5] sm:$0x7] }
  0x42   :  { %636 = vmatprep.subr.mxu0 %v5264_v21  ;;  %v205_v16 = vrot.slane %v200_v9, %v7956_v63  ;;  %v209_v20 = vrot.slane %v200_v9, %v7961_v14 }
  0x43   :  { %637 = vmatpush1.msra.mxu0 %v5277_v23 }
  0x44   :  { %v193_v27 = vld [vmem:[#allocation2 + $0x18] sm:$0xff]  ;;  %638 = vmatprep.subr.mxu0 %v5290_v25 }
  0x45   :  { %3716 = vmatmul.mubr.msk.f32.gmra.mxu1 %vm217_vm1, %v193_v27  ;;  %639 = vmatpush1.msra.mxu0 %v5308_v28 }
  0x46   :  { %4079 = vmatprep.mubr.msk.f32.mxu1 %vm217_vm1, %v5416_v45  ;;  %640 = vmatprep.subr.mxu0 %v5317_v30  ;;  %v5687_v45 = vld [vmem:[%s7938_s4 + $0xb8] sm:$0xff] }
  0x47   :  { %641 = vmatpush1.msra.mxu0 %v5330_v31 }
  0x48   :  { %642 = vmatprep.subr.mxu0 %v5342_v33 }
  0x49   :  { %4080 = vmatmul.mubr.msk.f32.vlgmr.msra.gmra.mxu1 %vm217_vm1, %v5524_v62  ;;  %643 = vmatpush1.msra.mxu0 %v5360_v36 }
  0x4a   :  { %4086 = vmatpush3.msra.mxu1 %v5614_v29  ;;  %4082 = vmatprep.mubr.msk.f32.mxu1 %vm217_vm1, %v192_v24 }
  0x4b   :  { %4087 = vmatprep.subr.mxu1 %v7949_v4  ;;  %644 = vmatprep.subr.mxu0 %v5373_v38 }
  0x4c   :  { %4088 = vmatpush3.msra.mxu1 %v5623_v32  ;;  %645 = vmatpush1.msra.mxu0 %v5386_v40 }
  0x4d   :  { %4089 = vmatprep.subr.mxu1 %v7949_v4  ;;  %4083 = vmatmul.mubr.msk.f32.gmra.mxu1 %vm217_vm1, %v193_v27 }
  0x4e   :  { %4090 = vmatpush3.msra.mxu1 %v5632_v34  ;;  %4117 = vmatprep.mubr.msk.f32.mxu1 %vm5048_vm2, %v7949_v4 }
  0x4f   :  { %4091 = vmatprep.subr.mxu1 %v7949_v4  ;;  %646 = vmatprep.subr.mxu0 %v5399_v42 }
  0x50   :  { %4092 = vmatpush3.msra.mxu1 %v5641_v35  ;;  %647 = vmatpush1.msra.mxu0 %v5414_v44 }
  0x51   :  { %4093 = vmatprep.subr.mxu1 %v7949_v4  ;;  %648 = vmatprep.subr.mxu0 %v5442_v49 }
  0x52   :  { %4094 = vmatpush3.msra.mxu1 %v5651_v37  ;;  %649 = vmatpush1.msra.mxu0 %v5454_v51 }
  0x53   :  { %4095 = vmatprep.subr.mxu1 %v7949_v4  ;;  %650 = vmatprep.subr.mxu0 %v5467_v53 }
  0x54   :  { %4096 = vmatpush3.msra.mxu1 %v5660_v39  ;;  %651 = vmatpush1.msra.mxu0 %v5482_v55 }
  0x55   :  { %4097 = vmatprep.subr.mxu1 %v7949_v4  ;;  %652 = vmatprep.subr.mxu0 %v5495_v57 }
  0x56   :  { %4098 = vmatpush3.msra.mxu1 %v5669_v41  ;;  %653 = vmatpush1.msra.mxu0 %v5509_v59 }
  0x57   :  { %4099 = vmatprep.subr.mxu1 %v7949_v4  ;;  %654 = vmatprep.subr.mxu0 %v5522_v61  ;;  %v7967_v61 = vsub.s32 2, %v5782_v60 }
  0x58   :  { %4100 = vmatpush3.msra.mxu1 %v5678_v43  ;;  %655 = vmatpush1.msra.mxu0 %v5537_v7 }
  0x59   :  { %4101 = vmatprep.subr.mxu1 %v7949_v4  ;;  %803 = vmatprep.subr.mxu0 %v5136_v0 }
  0x5a   :  { %4102 = vmatpush3.msra.mxu1 %v5687_v45 }
  0x5b   :  { %4103 = vmatprep.subr.mxu1 %v7949_v4 }
  0x5c   :  { %4104 = vmatpush3.msra.mxu1 %v5696_v46 }
  0x5d   :  { %4105 = vmatprep.subr.mxu1 %v7949_v4 }
  0x5e   :  { %4106 = vmatpush3.msra.mxu1 %v5705_v47 }
  0x5f   :  { %4107 = vmatprep.subr.mxu1 %v7949_v4 }
  0x60   :  { %4108 = vmatpush3.msra.mxu1 %v5713_v48 }
  0x61   :  { %4109 = vmatprep.subr.mxu1 %v7949_v4 }
  0x62   :  { %4110 = vmatpush3.msra.mxu1 %v5720_v50 }
  0x63   :  { %4111 = vmatprep.subr.mxu1 %v7949_v4 }
  0x64   :  { %4112 = vmatpush3.msra.mxu1 %v5727_v52 }
  0x65   :  { %4113 = vmatprep.subr.mxu1 %v7949_v4 }
  0x66   :  { %4114 = vmatpush3.msra.mxu1 %v5734_v54 }
  0x67   :  { %4115 = vmatprep.subr.mxu1 %v7949_v4 }
  0x68   :  { %4116 = vmatpush3.msra.mxu1 %v5741_v56 }
  0x69   :  { %4118 = vmatmul.mubr.f32.vlgmr.msra.gmra.mxu1 %v5552_v11  ;;  %4120 = vmatprep.subr.mxu1 %v7949_v4 }
  0x6a   :  { %4121 = vmatpush3.msra.mxu1 %v5614_v29  ;;  %4152 = vmatprep.mubr.msk.f32.mxu1 %vm5048_vm2, %v7949_v4 }
  0x6b   :  { %4122 = vmatprep.subr.mxu1 %v7949_v4 }
  0x6c   :  { %4123 = vmatpush3.msra.mxu1 %v5623_v32 }
  0x6d   :  { %4124 = vmatprep.subr.mxu1 %v7949_v4 }
  0x6e   :  { %4125 = vmatpush3.msra.mxu1 %v5632_v34 }
  0x6f   :  { %4126 = vmatprep.subr.mxu1 %v7949_v4 }
  0x70   :  { %4127 = vmatpush3.msra.mxu1 %v5641_v35 }
  0x71   :  { %4128 = vmatprep.subr.mxu1 %v7949_v4 }
  0x72   :  { %4129 = vmatpush3.msra.mxu1 %v5651_v37 }
  0x73   :  { %4130 = vmatprep.subr.mxu1 %v7949_v4 }
  0x74   :  { %4131 = vmatpush3.msra.mxu1 %v5660_v39 }
  0x75   :  { %4132 = vmatprep.subr.mxu1 %v7949_v4 }
  0x76   :  { %4133 = vmatpush3.msra.mxu1 %v5669_v41 }
  0x77   :  { %4134 = vmatprep.subr.mxu1 %v7949_v4 }
  0x78   :  { %4135 = vmatpush3.msra.mxu1 %v5678_v43 }
  0x79   :  { %4136 = vmatprep.subr.mxu1 %v7949_v4 }
  0x7a   :  { %4137 = vmatpush3.msra.mxu1 %v5687_v45 }
  0x7b   :  { %4138 = vmatprep.subr.mxu1 %v7949_v4 }
  0x7c   :  { %4139 = vmatpush3.msra.mxu1 %v5696_v46 }
  0x7d   :  { %4140 = vmatprep.subr.mxu1 %v7949_v4 }
  0x7e   :  { %4141 = vmatpush3.msra.mxu1 %v5705_v47 }
  0x7f   :  { %4142 = vmatprep.subr.mxu1 %v7949_v4 }
  0x80   :  { %4143 = vmatpush3.msra.mxu1 %v5713_v48 }
  0x81   :  { %4144 = vmatprep.subr.mxu1 %v7949_v4 }
  0x82   :  { %4145 = vmatpush3.msra.mxu1 %v5720_v50 }
  0x83   :  { %4146 = vmatprep.subr.mxu1 %v7949_v4 }
  0x84   :  { %4147 = vmatpush3.msra.mxu1 %v5727_v52 }
  0x85   :  { %4148 = vmatprep.subr.mxu1 %v7949_v4 }
  0x86   :  { %4149 = vmatpush3.msra.mxu1 %v5734_v54 }
  0x87   :  { %4150 = vmatprep.subr.mxu1 %v7949_v4 }
  0x88   :  { %4151 = vmatpush3.msra.mxu1 %v5741_v56 }
  0x89   :  { %4155 = vmatprep.subr.mxu1 %v7949_v4 }
  0xe9   :  { %v296_v62 = vpop.f32.mrf.mxu1 }
  0xea   :  { %v5797_v4 = vadd.f32 %v296_v62, %v205_v16 }
  0xeb   :  { %v298_v12 = vpop.f32.mrf.mxu1 }
  0xec   :  { %8029 = vst [vmem:[#allocation22_spill] sm:$0xff] %v5797_v4 }
  0xf2   :  { %v302_v18 = vpop.f32.mrf.mxu1 }
  0xf3   :  { %v5793_v22 = vadd.f32 %v302_v18, %v205_v16 }
  0xf4   :  { %v304_v24 = vpop.f32.mrf.mxu1 }
  0xf5   :  { %8027 = vst [vmem:[#allocation20_spill] sm:$0xff] %v5793_v22  ;;  %v5795_v26 = vadd.f32 %v304_v24, %v209_v20  ;;  %v213_v24 = vrot.slane %v200_v9, %v7967_v61 }
  0xf6   :  { %v520_v58 = vpop.f32.mrf.mxu0 }
  0xf7   :  { %8028 = vst [vmem:[#allocation21_spill] sm:$0xff] %v5795_v26  ;;  %v595_v63 = vadd.f32 %v520_v58, %v5797_v4  ;;  %v5813_v58 = vadd.f32 %v298_v12, %v209_v20 }
  0xf9   :  { %v3721_v54 = vmul.f32 -1.442695, %v595_v63 }
  0xfb   :  { %v308_v27 = vpop.f32.mrf.mxu1  ;;  %4730 = vpow2.f32 %v3721_v54 }
  0xfc   :  { %v5799_v0 = vadd.f32 %v308_v27, %v205_v16 }
  0xfd   :  { %v310_v56 = vpop.f32.mrf.mxu1 }
  0xfe   :  { %8030 = vst [vmem:[#allocation23_spill] sm:$0xff] %v5799_v0  ;;  %v5801_v7 = vadd.f32 %v310_v56, %v209_v20 }
 0x100   :  { %8031 = vst [vmem:[#allocation24_spill] sm:$0xff] %v5801_v7  ;;  %v522_v7 = vpop.f32.mrf.mxu0 }
 0x105   :  { %v314_v14 = vpop.f32.mrf.mxu1 }
 0x106   :  { %v5805_v18 = vadd.f32 %v314_v14, %v205_v16  ;;  %v602_v14 = vadd.f32 %v522_v7, %v5813_v58 }
 0x107   :  { %v316_v26 = vpop.f32.mrf.mxu1 }
 0x108   :  { %8032 = vst [vmem:[#allocation25_spill] sm:$0xff] %v5805_v18  ;;  %v5809_v22 = vadd.f32 %v316_v26, %v209_v20  ;;  %v3722_v9 = vmul.f32 -1.442695, %v602_v14  ;;  %v4731_v61 = vpop.eup %4730 }
 0x109   :  { %v4081_v62 = vpop.f32.mrf.mxu1  ;;  %v599_v26 = vadd.f32 1.0, %v4731_v61 }
 0x10a   :  { %8033 = vst [vmem:[#allocation26_spill] sm:$0xff] %v5809_v22  ;;  %v5811_v27 = vadd.f32 %v4081_v62, %v213_v24  ;;  %4732 = vpow2.f32 %v3722_v9  ;;  %v5823_v62 = vld [vmem:[%s7940_s6] ss:$0 sm:$0xff] }
 0x10b   :  { %v385_v56 = vpop.f32.mrf.mxu1  ;;  %4734 = vrcp.f32 %v599_v26 }
 0x10c   :  { %8034 = vst [vmem:[#allocation27_spill] sm:$0xff] %v5811_v27  ;;  %v5826_v7 = vadd.f32 %v385_v56, %v213_v24 }
 0x10d   :  { %v4084_v0 = vpop.f32.mrf.mxu1 }
 0x10e   :  { %v5815_v4 = vadd.f32 %v4084_v0, %v213_v24 }
 0x10f   :  { %v395_v63 = vpop.f32.mrf.mxu1 }
 0x110   :  { %8035 = vst [vmem:[#allocation28_spill] sm:$0xff] %v5815_v4  ;;  %v5818_v16 = vadd.f32 %v395_v63, %v213_v24 }
 0x112   :  { %8036 = vst [vmem:[#allocation29_spill] sm:$0xff] %v5818_v16 }
 0x117   :  { %v4733_v54 = vpop.eup %4732 }
 0x118   :  { %v606_v12 = vadd.f32 1.0, %v4733_v54  ;;  %v4735_v20 = vpop.eup %4734 }
 0x11a   :  { %4736 = vrcp.f32 %v606_v12 }
 0x127   :  { %v4737_v14 = vpop.eup %4736 }
 0x128   :  { %v619_v9 = vsub.f32 1.0, %v4737_v14  ;;  %v621_v18 = vmul.f32 %v4737_v14, %v5552_v11  ;;  %v8039_v11 = vld [vmem:[#allocation15_spill] sm:$0xff] }
 0x129   :  { %v591_v0 = vpop.f32.mrf.mxu1 }
 0x12a   :  { %v615_v60 = vadd.f32 %v5823_v62, %v591_v0  ;;  %v8043_v0 = vld [vmem:[#allocation22_spill] sm:$0xff] }
 0x12b   :  { %v4119_v4 = vpop.f32.mrf.mxu1 }
 0x12c   :  { %v616_v63 = vmul.f32 %v4735_v20, %v615_v60  ;;  %v8037_v4 = vmov 0.0   ;;  %v8040_v60 = vld [vmem:[#allocation16_spill] sm:$0xff] }
 0x12e   :  { %v617_v61 = vadd.f32 %v616_v63, %v5826_v7 }
 0x130   :  { %4738 = vtanh.f32 %v617_v61 }
 0x13d   :  { %v4739_v26 = vpop.eup %4738 }
 0x13e   :  { %v620_v22 = vmul.f32 %v4739_v26, %v619_v9 }
 0x140   :  { %v5830_v16 = vadd.f32 %v621_v18, %v620_v22  ;;  %v8041_v22 = vld [vmem:[#allocation18_spill] sm:$0xff]  ;;  %v8042_v18 = vld [vmem:[#allocation13_spill] sm:$0xff] }
 0x142   :  { %623 = vst [vmem:[#allocation3 + $0x10] sm:$0xf] %v5830_v16  ;;  %689 = vmatmul.mubr.f32.vlgmr.msra.gmra.mxu0 %v5830_v16  ;;  %4153 = vmatmul.mubr.f32.vlgmr.msra.gmra.mxu1 %v5830_v16 }
 0x143   :  { %804 = vmatpush1.msra.mxu0 %v5141_v1  ;;  %4156 = vmatpush3.msra.mxu1 %v5614_v29 }
 0x144   :  { %805 = vmatprep.subr.mxu0 %v5146_v2  ;;  %4157 = vmatprep.subr.mxu1 %v8037_v4  ;;  %v8038_v2 = vld [vmem:[#allocation17_spill] sm:$0xff] }
 0x145   :  { %806 = vmatpush1.msra.mxu0 %v5154_v3  ;;  %4158 = vmatpush3.msra.mxu1 %v5623_v32 }
 0x146   :  { %807 = vmatprep.subr.mxu0 %v5163_v5  ;;  %4159 = vmatprep.subr.mxu1 %v8037_v4 }
 0x147   :  { %808 = vmatpush1.msra.mxu0 %v5172_v6  ;;  %4160 = vmatpush3.msra.mxu1 %v5632_v34 }
 0x148   :  { %809 = vmatprep.subr.mxu0 %v5183_v8  ;;  %4161 = vmatprep.subr.mxu1 %v8037_v4 }
 0x149   :  { %810 = vmatpush1.msra.mxu0 %v5194_v10  ;;  %4162 = vmatpush3.msra.mxu1 %v5641_v35 }
 0x14a   :  { %811 = vmatprep.subr.mxu0 %v5208_v13  ;;  %4163 = vmatprep.subr.mxu1 %v8037_v4 }
 0x14b   :  { %812 = vmatpush1.msra.mxu0 %v5225_v15  ;;  %4164 = vmatpush3.msra.mxu1 %v5651_v37 }
 0x14c   :  { %813 = vmatprep.subr.mxu0 %v5237_v17  ;;  %4165 = vmatprep.subr.mxu1 %v8037_v4 }
 0x14d   :  { %814 = vmatpush1.msra.mxu0 %v5251_v19  ;;  %4166 = vmatpush3.msra.mxu1 %v5660_v39 }
 0x14e   :  { %815 = vmatprep.subr.mxu0 %v5264_v21  ;;  %4167 = vmatprep.subr.mxu1 %v8037_v4 }
 0x14f   :  { %816 = vmatpush1.msra.mxu0 %v5277_v23  ;;  %4168 = vmatpush3.msra.mxu1 %v5669_v41 }
 0x150   :  { %817 = vmatprep.subr.mxu0 %v5290_v25  ;;  %4169 = vmatprep.subr.mxu1 %v8037_v4 }
 0x151   :  { %818 = vmatpush1.msra.mxu0 %v5308_v28  ;;  %4170 = vmatpush3.msra.mxu1 %v5678_v43 }
 0x152   :  { %819 = vmatprep.subr.mxu0 %v5317_v30  ;;  %4171 = vmatprep.subr.mxu1 %v8037_v4 }
 0x153   :  { %820 = vmatpush1.msra.mxu0 %v5330_v31  ;;  %4172 = vmatpush3.msra.mxu1 %v5687_v45 }
 0x154   :  { %821 = vmatprep.subr.mxu0 %v5342_v33  ;;  %4173 = vmatprep.subr.mxu1 %v8037_v4 }
 0x155   :  { %822 = vmatpush1.msra.mxu0 %v5360_v36  ;;  %4174 = vmatpush3.msra.mxu1 %v5696_v46 }
 0x156   :  { %823 = vmatprep.subr.mxu0 %v5373_v38  ;;  %4175 = vmatprep.subr.mxu1 %v8037_v4 }
 0x157   :  { %824 = vmatpush1.msra.mxu0 %v5386_v40  ;;  %4176 = vmatpush3.msra.mxu1 %v5705_v47 }
 0x158   :  { %825 = vmatprep.subr.mxu0 %v5399_v42  ;;  %4177 = vmatprep.subr.mxu1 %v8037_v4 }
 0x159   :  { %826 = vmatpush1.msra.mxu0 %v5414_v44  ;;  %4178 = vmatpush3.msra.mxu1 %v5713_v48 }
 0x15a   :  { %827 = vmatprep.subr.mxu0 %v5442_v49  ;;  %4179 = vmatprep.subr.mxu1 %v8037_v4 }
 0x15b   :  { %828 = vmatpush1.msra.mxu0 %v5454_v51  ;;  %4180 = vmatpush3.msra.mxu1 %v5720_v50 }
 0x15c   :  { %829 = vmatprep.subr.mxu0 %v5467_v53  ;;  %4181 = vmatprep.subr.mxu1 %v8037_v4 }
 0x15d   :  { %830 = vmatpush1.msra.mxu0 %v5482_v55  ;;  %4182 = vmatpush3.msra.mxu1 %v5727_v52 }
 0x15e   :  { %831 = vmatprep.subr.mxu0 %v5495_v57  ;;  %4183 = vmatprep.subr.mxu1 %v8037_v4 }
 0x15f   :  { %832 = vmatpush1.msra.mxu0 %v5509_v59  ;;  %4184 = vmatpush3.msra.mxu1 %v8038_v2 }
 0x160   :  { %833 = vmatprep.subr.mxu0 %v8039_v11  ;;  %4185 = vmatprep.subr.mxu1 %v8037_v4 }
 0x161   :  { %834 = vmatpush1.msra.mxu0 %v8040_v60  ;;  %867 = vmatprep.mubr.f32.mxu0 %v8037_v4 }
 0x162   :  { %4186 = vmatpush3.msra.mxu1 %v8041_v22  ;;  %4187 = vmatprep.mubr.msk.f32.mxu1 %vm5048_vm2, %v8037_v4 }
 0x163   :  { %967 = vmatprep.subr.mxu0 %v8042_v18  ;;  %4190 = vmatprep.subr.mxu1 %v8037_v4 }
 0x202   :  { %v690_v24 = vpop.f32.mrf.mxu0  ;;  %v761_v56 = vpop.f32.mrf.mxu1 }
 0x203   :  { %v766_v54 = vrot.slane %v690_v24, 4  ;;  %v785_v60 = vadd.f32 %v5823_v62, %v761_v56 }
 0x204   :  { %v692_v12 = vpop.f32.mrf.mxu0  ;;  %v4154_v20 = vpop.f32.mrf.mxu1 }
 0x205   :  { %v768_v63 = vadd.f32 %v766_v54, %v8043_v0  ;;  %v776_v14 = vrot.slane %v692_v12, 4  ;;  %v787_v2 = vrot.slane %v785_v60, 4 }
 0x207   :  { %v3724_v61 = vmul.f32 -1.442695, %v768_v63  ;;  %v778_v9 = vadd.f32 %v776_v14, %v5813_v58  ;;  %v795_v58 = vrot.slane %v5830_v16, 4  ;;  %v8051_v16 = vld [vmem:[#allocation27_spill] sm:$0xff] }
 0x209   :  { %4740 = vpow2.f32 %v3724_v61  ;;  %v3725_v26 = vmul.f32 -1.442695, %v778_v9 }
 0x20b   :  { %4742 = vpow2.f32 %v3725_v26  ;;  %v6001_v26 = vld [vmem:[%s7938_s4 + $0x168] sm:$0xff] }
 0x216   :  { %v4741_v27 = vpop.eup %4740 }
 0x217   :  { %v772_v22 = vadd.f32 1.0, %v4741_v27 }
 0x218   :  { %v4743_v18 = vpop.eup %4742 }
 0x219   :  { %4744 = vrcp.f32 %v772_v22  ;;  %v782_v11 = vadd.f32 1.0, %v4743_v18  ;;  %v6010_v18 = vld [vmem:[%s7938_s4 + $0x150] sm:$0xff] }
 0x21b   :  { %4746 = vrcp.f32 %v782_v11 }
 0x226   :  { %v4745_v24 = vpop.eup %4744 }
 0x227   :  { %v789_v59 = vmul.f32 %v4745_v24, %v787_v2  ;;  %v6017_v24 = vld [vmem:[%s7938_s4 + $0x140] sm:$0xff] }
 0x228   :  { %v4747_v12 = vpop.eup %4746 }
 0x229   :  { %v790_v54 = vadd.f32 %v789_v59, %v5826_v7  ;;  %v792_v20 = vsub.f32 1.0, %v4747_v12  ;;  %v797_v61 = vmul.f32 %v4747_v12, %v795_v58  ;;  %v5916_v59 = vld [vmem:[%s7938_s4 + $0x158] sm:$0xff]  ;;  %v6031_v12 = vld [vmem:[%s7938_s4 + $0x128] sm:$0xff]  ;;  %v6045_v58 = vld [vmem:[%s7938_s4 + $0x110] sm:$0xff] }
 0x22b   :  { %4748 = vtanh.f32 %v790_v54  ;;  %v6024_v54 = vld [vmem:[%s7938_s4 + $0x138] sm:$0xff] }
 0x238   :  { %v4749_v0 = vpop.eup %4748 }
 0x239   :  { %v793_v63 = vmul.f32 %v4749_v0, %v792_v20  ;;  %v6038_v20 = vld [vmem:[%s7938_s4 + $0x120] sm:$0xff]  ;;  %v6052_v0 = vld [vmem:[%s7938_s4 + $0x108] sm:$0xff] }
 0x23b   :  { %v798_v27 = vadd.f32 %v797_v61, %v793_v63  ;;  %v6059_v63 = vld [vmem:[%s7938_s4 + $0xf8] sm:$0xff]  ;;  %v6066_v61 = vld [vmem:[%s7938_s4 + $0xf0] sm:$0xff] }
 0x23d   :  { %799 = vst [vmem:[#allocation3 + $0x10] sm:$0xf0] %v798_v27  ;;  %v5907_v22 = vrot.slane %v798_v27, 4  ;;  %v6073_v27 = vld [vmem:[%s7938_s4 + $0xe0] sm:$0xff] }
 0x23f   :  { %868 = vmatmul.mubr.f32.vlgmr.msra.gmra.mxu0 %v5907_v22  ;;  %4188 = vmatmul.mubr.f32.vlgmr.msra.gmra.mxu1 %v5907_v22 }
 0x240   :  { %968 = vmatpush1.msra.mxu0 %v5141_v1  ;;  %4191 = vmatpush3.msra.mxu1 %v5614_v29  ;;  %v8044_v1 = vld [vmem:[#allocation14_spill] sm:$0xff] }
 0x241   :  { %969 = vmatprep.subr.mxu0 %v5916_v59  ;;  %4192 = vmatprep.subr.mxu1 %v8037_v4 }
 0x242   :  { %970 = vmatpush1.msra.mxu0 %v5154_v3  ;;  %4193 = vmatpush3.msra.mxu1 %v5623_v32  ;;  %v8045_v3 = vld [vmem:[#allocation17_spill] sm:$0xff] }
 0x243   :  { %971 = vmatprep.subr.mxu0 %v5163_v5  ;;  %4194 = vmatprep.subr.mxu1 %v8037_v4  ;;  %v8046_v5 = vld [vmem:[#allocation15_spill] sm:$0xff] }
 0x244   :  { %972 = vmatpush1.msra.mxu0 %v5172_v6  ;;  %4195 = vmatpush3.msra.mxu1 %v5632_v34  ;;  %v8047_v6 = vld [vmem:[#allocation16_spill] sm:$0xff] }
 0x245   :  { %973 = vmatprep.subr.mxu0 %v5183_v8  ;;  %4196 = vmatprep.subr.mxu1 %v8037_v4  ;;  %v8048_v8 = vld [vmem:[#allocation18_spill] sm:$0xff] }
 0x246   :  { %974 = vmatpush1.msra.mxu0 %v5194_v10  ;;  %4197 = vmatpush3.msra.mxu1 %v5641_v35  ;;  %v5984_v10 = vld [vmem:[%s7938_s4 + $0x170] sm:$0xff] }
 0x247   :  { %975 = vmatprep.subr.mxu0 %v5208_v13  ;;  %4198 = vmatprep.subr.mxu1 %v8037_v4 }
 0x248   :  { %976 = vmatpush1.msra.mxu0 %v5225_v15  ;;  %4199 = vmatpush3.msra.mxu1 %v5651_v37 }
 0x249   :  { %977 = vmatprep.subr.mxu0 %v5237_v17  ;;  %4200 = vmatprep.subr.mxu1 %v8037_v4  ;;  %v8049_v17 = vld [vmem:[#allocation20_spill] sm:$0xff] }
 0x24a   :  { %978 = vmatpush1.msra.mxu0 %v5251_v19  ;;  %4201 = vmatpush3.msra.mxu1 %v5660_v39 }
 0x24b   :  { %979 = vmatprep.subr.mxu0 %v5264_v21  ;;  %4202 = vmatprep.subr.mxu1 %v8037_v4 }
 0x24c   :  { %980 = vmatpush1.msra.mxu0 %v5277_v23  ;;  %4203 = vmatpush3.msra.mxu1 %v5669_v41 }
 0x24d   :  { %981 = vmatprep.subr.mxu0 %v5290_v25  ;;  %4204 = vmatprep.subr.mxu1 %v8037_v4 }
 0x24e   :  { %982 = vmatpush1.msra.mxu0 %v5308_v28  ;;  %4205 = vmatpush3.msra.mxu1 %v5678_v43  ;;  %v8050_v28 = vld [vmem:[#allocation21_spill] sm:$0xff] }
 0x24f   :  { %983 = vmatprep.subr.mxu0 %v5317_v30  ;;  %4206 = vmatprep.subr.mxu1 %v8037_v4 }
 0x250   :  { %984 = vmatpush1.msra.mxu0 %v5330_v31  ;;  %4207 = vmatpush3.msra.mxu1 %v5687_v45 }
 0x251   :  { %985 = vmatprep.subr.mxu0 %v5342_v33  ;;  %4208 = vmatprep.subr.mxu1 %v8037_v4 }
 0x252   :  { %986 = vmatpush1.msra.mxu0 %v5360_v36  ;;  %4209 = vmatpush3.msra.mxu1 %v5696_v46 }
 0x253   :  { %987 = vmatprep.subr.mxu0 %v5373_v38  ;;  %4210 = vmatprep.subr.mxu1 %v8037_v4 }
 0x254   :  { %988 = vmatpush1.msra.mxu0 %v5386_v40  ;;  %4211 = vmatpush3.msra.mxu1 %v5705_v47 }
 0x255   :  { %989 = vmatprep.subr.mxu0 %v5399_v42  ;;  %4212 = vmatprep.subr.mxu1 %v8037_v4 }
 0x256   :  { %990 = vmatpush1.msra.mxu0 %v5414_v44  ;;  %4213 = vmatpush3.msra.mxu1 %v5713_v48 }
 0x257   :  { %991 = vmatprep.subr.mxu0 %v5442_v49  ;;  %4214 = vmatprep.subr.mxu1 %v8037_v4 }
 0x258   :  { %992 = vmatpush1.msra.mxu0 %v5454_v51  ;;  %4215 = vmatpush3.msra.mxu1 %v5720_v50 }
 0x259   :  { %993 = vmatprep.subr.mxu0 %v5467_v53  ;;  %4216 = vmatprep.subr.mxu1 %v8037_v4 }
 0x25a   :  { %994 = vmatpush1.msra.mxu0 %v5482_v55  ;;  %4217 = vmatpush3.msra.mxu1 %v5727_v52 }
 0x25b   :  { %995 = vmatprep.subr.mxu0 %v5495_v57  ;;  %4218 = vmatprep.subr.mxu1 %v8037_v4 }
 0x25c   :  { %996 = vmatpush1.msra.mxu0 %v8044_v1  ;;  %4219 = vmatpush3.msra.mxu1 %v8045_v3 }
 0x25d   :  { %997 = vmatprep.subr.mxu0 %v8046_v5  ;;  %4220 = vmatprep.subr.mxu1 %v8037_v4 }
 0x25e   :  { %998 = vmatpush1.msra.mxu0 %v8047_v6  ;;  %1031 = vmatprep.mubr.f32.mxu0 %v8037_v4 }
 0x25f   :  { %4221 = vmatpush3.msra.mxu1 %v8048_v8  ;;  %4222 = vmatprep.mubr.msk.f32.mxu1 %vm5048_vm2, %v8037_v4 }
 0x260   :  { %1146 = vmatprep.subr.mxu0 %v5984_v10  ;;  %4225 = vmatprep.subr.mxu1 %v8037_v4 }
 0x2ff   :  { %v869_v13 = vpop.f32.mrf.mxu0  ;;  %v940_v15 = vpop.f32.mrf.mxu1 }
 0x300   :  { %v944_v19 = vadd.f32 %v869_v13, %v8049_v17  ;;  %v958_v42 = vadd.f32 %v5823_v62, %v940_v15  ;;  %v6087_v13 = vld [vmem:[%s7938_s4 + $0xc8] sm:$0xff]  ;;  %v6094_v15 = vld [vmem:[%s7938_s4 + $0xc0] sm:$0xff] }
 0x301   :  { %v4189_v21 = vpop.f32.mrf.mxu1  ;;  %v871_v25 = vpop.f32.mrf.mxu0 }
 0x302   :  { %v3726_v23 = vmul.f32 -1.442695, %v944_v19  ;;  %v951_v30 = vadd.f32 %v871_v25, %v8050_v28  ;;  %v6101_v19 = vld [vmem:[%s7938_s4 + $0xb0] sm:$0xff]  ;;  %v6108_v21 = vld [vmem:[%s7938_s4 + $0xa8] sm:$0xff] }
 0x303   :  { %v6122_v25 = vld [vmem:[%s7938_s4 + $0x90] sm:$0xff] }
 0x304   :  { %4750 = vpow2.f32 %v3726_v23  ;;  %v3727_v31 = vmul.f32 -1.442695, %v951_v30  ;;  %v6115_v23 = vld [vmem:[%s7938_s4 + $0x98] sm:$0xff]  ;;  %v6129_v30 = vld [vmem:[%s7938_s4 + $0x80] sm:$0xff] }
 0x306   :  { %4752 = vpow2.f32 %v3727_v31  ;;  %v6136_v31 = vld [vmem:[%s7938_s4 + $0x78] sm:$0xff] }
 0x311   :  { %v4751_v33 = vpop.eup %4750 }
 0x312   :  { %v948_v36 = vadd.f32 1.0, %v4751_v33  ;;  %v6143_v33 = vld [vmem:[%s7938_s4 + $0x68] sm:$0xff] }
 0x313   :  { %v4753_v38 = vpop.eup %4752 }
 0x314   :  { %4754 = vrcp.f32 %v948_v36  ;;  %v955_v40 = vadd.f32 1.0, %v4753_v38  ;;  %v6150_v36 = vld [vmem:[%s7938_s4 + $0x60] sm:$0xff]  ;;  %v6157_v38 = vld [vmem:[%s7938_s4 + $0x50] sm:$0xff] }
 0x316   :  { %4756 = vrcp.f32 %v955_v40 }
 0x321   :  { %v4755_v44 = vpop.eup %4754 }
 0x322   :  { %v959_v49 = vmul.f32 %v4755_v44, %v958_v42 }
 0x323   :  { %v4757_v2 = vpop.eup %4756 }
 0x324   :  { %v960_v7 = vadd.f32 %v959_v49, %v8051_v16  ;;  %v962_v11 = vsub.f32 1.0, %v4757_v2  ;;  %v964_v14 = vmul.f32 %v4757_v2, %v5907_v22  ;;  %v6080_v22 = vld [vmem:[%s7938_s4 + $0xd8] sm:$0xff] }
 0x326   :  { %4758 = vtanh.f32 %v960_v7 }
 0x333   :  { %v4759_v60 = vpop.eup %4758 }
 0x334   :  { %v963_v56 = vmul.f32 %v4759_v60, %v962_v11 }
 0x336   :  { %v5993_v9 = vadd.f32 %v964_v14, %v963_v56 }
 0x338   :  { %966 = vst [vmem:[#allocation3] sm:$0xf] %v5993_v9  ;;  %1032 = vmatmul.mubr.f32.vlgmr.msra.gmra.mxu0 %v5993_v9  ;;  %4223 = vmatmul.mubr.f32.vlgmr.msra.gmra.mxu1 %v5993_v9 }
 0x339   :  { %1147 = vmatpush1.msra.mxu0 %v6001_v26  ;;  %4226 = vmatpush3.msra.mxu1 %v5614_v29 }
 0x33a   :  { %1148 = vmatprep.subr.mxu0 %v5916_v59  ;;  %4227 = vmatprep.subr.mxu1 %v8037_v4 }
 0x33b   :  { %1149 = vmatpush1.msra.mxu0 %v6010_v18  ;;  %4228 = vmatpush3.msra.mxu1 %v5623_v32 }
 0x33c   :  { %1150 = vmatprep.subr.mxu0 %v6017_v24  ;;  %4229 = vmatprep.subr.mxu1 %v8037_v4 }
 0x33d   :  { %1151 = vmatpush1.msra.mxu0 %v6024_v54  ;;  %4230 = vmatpush3.msra.mxu1 %v5632_v34 }
 0x33e   :  { %1152 = vmatprep.subr.mxu0 %v6031_v12  ;;  %4231 = vmatprep.subr.mxu1 %v8037_v4 }
 0x33f   :  { %1153 = vmatpush1.msra.mxu0 %v6038_v20  ;;  %4232 = vmatpush3.msra.mxu1 %v5641_v35 }
 0x340   :  { %1154 = vmatprep.subr.mxu0 %v6045_v58  ;;  %4233 = vmatprep.subr.mxu1 %v8037_v4 }
 0x341   :  { %1155 = vmatpush1.msra.mxu0 %v6052_v0  ;;  %4234 = vmatpush3.msra.mxu1 %v5651_v37 }
 0x342   :  { %1156 = vmatprep.subr.mxu0 %v6059_v63  ;;  %4235 = vmatprep.subr.mxu1 %v8037_v4 }
 0x343   :  { %1157 = vmatpush1.msra.mxu0 %v6066_v61  ;;  %4236 = vmatpush3.msra.mxu1 %v5660_v39 }
 0x344   :  { %1158 = vmatprep.subr.mxu0 %v6073_v27  ;;  %4237 = vmatprep.subr.mxu1 %v8037_v4 }
 0x345   :  { %1159 = vmatpush1.msra.mxu0 %v6080_v22  ;;  %4238 = vmatpush3.msra.mxu1 %v5669_v41 }
 0x346   :  { %1160 = vmatprep.subr.mxu0 %v6087_v13  ;;  %4239 = vmatprep.subr.mxu1 %v8037_v4 }
 0x347   :  { %1161 = vmatpush1.msra.mxu0 %v6094_v15  ;;  %4240 = vmatpush3.msra.mxu1 %v5678_v43 }
 0x348   :  { %1162 = vmatprep.subr.mxu0 %v6101_v19  ;;  %4241 = vmatprep.subr.mxu1 %v8037_v4 }
 0x349   :  { %1163 = vmatpush1.msra.mxu0 %v6108_v21  ;;  %4242 = vmatpush3.msra.mxu1 %v5687_v45 }
 0x34a   :  { %1164 = vmatprep.subr.mxu0 %v6115_v23  ;;  %4243 = vmatprep.subr.mxu1 %v8037_v4 }
 0x34b   :  { %1165 = vmatpush1.msra.mxu0 %v6122_v25  ;;  %4244 = vmatpush3.msra.mxu1 %v5696_v46 }
 0x34c   :  { %1166 = vmatprep.subr.mxu0 %v6129_v30  ;;  %4245 = vmatprep.subr.mxu1 %v8037_v4 }
 0x34d   :  { %1167 = vmatpush1.msra.mxu0 %v6136_v31  ;;  %4246 = vmatpush3.msra.mxu1 %v5705_v47 }
 0x34e   :  { %1168 = vmatprep.subr.mxu0 %v6143_v33  ;;  %4247 = vmatprep.subr.mxu1 %v8037_v4 }
 0x34f   :  { %1169 = vmatpush1.msra.mxu0 %v6150_v36  ;;  %4248 = vmatpush3.msra.mxu1 %v5713_v48 }
 0x350   :  { %1170 = vmatprep.subr.mxu0 %v6157_v38  ;;  %4249 = vmatprep.subr.mxu1 %v8037_v4 }
 0x351   :  { %1171 = vmatpush1.msra.mxu0 %v5454_v51  ;;  %4250 = vmatpush3.msra.mxu1 %v5720_v50 }
 0x352   :  { %1172 = vmatprep.subr.mxu0 %v5467_v53  ;;  %4251 = vmatprep.subr.mxu1 %v8037_v4 }
 0x353   :  { %1173 = vmatpush1.msra.mxu0 %v5482_v55  ;;  %4252 = vmatpush3.msra.mxu1 %v5727_v52 }
 0x354   :  { %1174 = vmatprep.subr.mxu0 %v5495_v57  ;;  %4253 = vmatprep.subr.mxu1 %v8037_v4 }
 0x355   :  { %1175 = vmatpush1.msra.mxu0 %v8044_v1  ;;  %4254 = vmatpush3.msra.mxu1 %v8045_v3 }
 0x356   :  { %1176 = vmatprep.subr.mxu0 %v8046_v5  ;;  %4255 = vmatprep.subr.mxu1 %v8037_v4 }
 0x357   :  { %1177 = vmatpush1.msra.mxu0 %v8047_v6  ;;  %1210 = vmatprep.mubr.f32.mxu0 %v8037_v4 }
 0x358   :  { %4256 = vmatpush3.msra.mxu1 %v8048_v8  ;;  %4257 = vmatprep.mubr.msk.f32.mxu1 %vm5048_vm2, %v8037_v4 }
 0x359   :  { %1310 = vmatprep.subr.mxu0 %v5984_v10  ;;  %4260 = vmatprep.subr.mxu1 %v8037_v4 }
 0x3f8   :  { %v1033_v51 = vpop.f32.mrf.mxu0  ;;  %v1104_v53 = vpop.f32.mrf.mxu1 }
 0x3f9   :  { %v1109_v55 = vrot.slane %v1033_v51, 4  ;;  %v1128_v11 = vadd.f32 %v5823_v62, %v1104_v53 }
 0x3fa   :  { %v1035_v57 = vpop.f32.mrf.mxu0  ;;  %v4224_v1 = vpop.f32.mrf.mxu1 }
 0x3fb   :  { %v1111_v5 = vadd.f32 %v1109_v55, %v8049_v17  ;;  %v1119_v6 = vrot.slane %v1035_v57, 4  ;;  %v1130_v56 = vrot.slane %v1128_v11, 4 }
 0x3fd   :  { %v3728_v40 = vmul.f32 -1.442695, %v1111_v5  ;;  %v1121_v42 = vadd.f32 %v1119_v6, %v8050_v28  ;;  %v1138_v28 = vrot.slane %v5993_v9, 4 }
 0x3ff   :  { %4760 = vpow2.f32 %v3728_v40  ;;  %v3729_v44 = vmul.f32 -1.442695, %v1121_v42 }
 0x401   :  { %4762 = vpow2.f32 %v3729_v44 }
 0x40c   :  { %v4761_v49 = vpop.eup %4760 }
 0x40d   :  { %v1115_v7 = vadd.f32 1.0, %v4761_v49 }
 0x40e   :  { %v4763_v2 = vpop.eup %4762 }
 0x40f   :  { %4764 = vrcp.f32 %v1115_v7  ;;  %v1125_v60 = vadd.f32 1.0, %v4763_v2 }
 0x411   :  { %4766 = vrcp.f32 %v1125_v60  ;;  %v8058_v60 = vld [vmem:[#allocation29_spill] sm:$0xff] }
 0x41c   :  { %v4765_v14 = vpop.eup %4764 }
 0x41d   :  { %v1132_v51 = vmul.f32 %v4765_v14, %v1130_v56 }
 0x41e   :  { %v4767_v55 = vpop.eup %4766 }
 0x41f   :  { %v1133_v17 = vadd.f32 %v1132_v51, %v8051_v16  ;;  %v1135_v57 = vsub.f32 1.0, %v4767_v55  ;;  %v1140_v40 = vmul.f32 %v4767_v55, %v1138_v28 }
 0x421   :  { %4768 = vtanh.f32 %v1133_v17 }
 0x42e   :  { %v4769_v1 = vpop.eup %4768 }
 0x42f   :  { %v1136_v5 = vmul.f32 %v4769_v1, %v1135_v57  ;;  %v6305_v1 = vld [vmem:[%s7938_s4 + $0x178] sm:$0xff] }
 0x431   :  { %v1141_v6 = vadd.f32 %v1140_v40, %v1136_v5  ;;  %v6314_v5 = vld [vmem:[%s7938_s4 + $0x160] sm:$0xff]  ;;  %v6323_v40 = vld [vmem:[%s7938_s4 + $0x148] sm:$0xff] }
 0x433   :  { %1142 = vst [vmem:[#allocation3] sm:$0xf0] %v1141_v6  ;;  %v6185_v42 = vrot.slane %v1141_v6, 4  ;;  %v6332_v6 = vld [vmem:[%s7938_s4 + $0x130] sm:$0xff] }
 0x435   :  { %1211 = vmatmul.mubr.f32.vlgmr.msra.gmra.mxu0 %v6185_v42  ;;  %4258 = vmatmul.mubr.f32.vlgmr.msra.gmra.mxu1 %v6185_v42 }
 0x436   :  { %1311 = vmatpush1.msra.mxu0 %v6001_v26  ;;  %4261 = vmatpush3.msra.mxu1 %v5614_v29  ;;  %v6240_v29 = vld [vmem:[%s7938_s4 + $0x48] sm:$0xff] }
 0x437   :  { %1312 = vmatprep.subr.mxu0 %v5916_v59  ;;  %4262 = vmatprep.subr.mxu1 %v8037_v4 }
 0x438   :  { %1313 = vmatpush1.msra.mxu0 %v6010_v18  ;;  %4263 = vmatpush3.msra.mxu1 %v5623_v32  ;;  %v6247_v32 = vld [vmem:[%s7938_s4 + $0x38] sm:$0xff] }
 0x439   :  { %1314 = vmatprep.subr.mxu0 %v6017_v24  ;;  %4264 = vmatprep.subr.mxu1 %v8037_v4 }
 0x43a   :  { %1315 = vmatpush1.msra.mxu0 %v6024_v54  ;;  %4265 = vmatpush3.msra.mxu1 %v5632_v34  ;;  %v6254_v34 = vld [vmem:[%s7938_s4 + $0x30] sm:$0xff] }
 0x43b   :  { %1316 = vmatprep.subr.mxu0 %v6031_v12  ;;  %4266 = vmatprep.subr.mxu1 %v8037_v4 }
 0x43c   :  { %1317 = vmatpush1.msra.mxu0 %v6038_v20  ;;  %4267 = vmatpush3.msra.mxu1 %v5641_v35  ;;  %v6261_v35 = vld [vmem:[%s7938_s4 + $0x20] sm:$0xff] }
 0x43d   :  { %1318 = vmatprep.subr.mxu0 %v6045_v58  ;;  %4268 = vmatprep.subr.mxu1 %v8037_v4  ;;  %8052 = vst [vmem:[#allocation13_spill] sm:$0xff] %v6261_v35 }
 0x43e   :  { %1319 = vmatpush1.msra.mxu0 %v6052_v0  ;;  %4269 = vmatpush3.msra.mxu1 %v5651_v37  ;;  %v6268_v37 = vld [vmem:[%s7938_s4 + $0x18] sm:$0xff] }
 0x43f   :  { %1320 = vmatprep.subr.mxu0 %v6059_v63  ;;  %4270 = vmatprep.subr.mxu1 %v8037_v4  ;;  %8053 = vst [vmem:[#allocation22_spill] sm:$0xff] %v6268_v37 }
 0x440   :  { %1321 = vmatpush1.msra.mxu0 %v6066_v61  ;;  %4271 = vmatpush3.msra.mxu1 %v5660_v39  ;;  %v6275_v39 = vld [vmem:[%s7938_s4 + $0x8] sm:$0xff] }
 0x441   :  { %1322 = vmatprep.subr.mxu0 %v6073_v27  ;;  %4272 = vmatprep.subr.mxu1 %v8037_v4  ;;  %8054 = vst [vmem:[#allocation14_spill] sm:$0xff] %v6275_v39 }
 0x442   :  { %1323 = vmatpush1.msra.mxu0 %v6080_v22  ;;  %4273 = vmatpush3.msra.mxu1 %v5669_v41  ;;  %v6282_v41 = vld [vmem:[%s7938_s4] sm:$0xff] }
 0x443   :  { %1324 = vmatprep.subr.mxu0 %v6087_v13  ;;  %4274 = vmatprep.subr.mxu1 %v8037_v4  ;;  %8055 = vst [vmem:[#allocation17_spill] sm:$0xff] %v6282_v41 }
 0x444   :  { %1325 = vmatpush1.msra.mxu0 %v6094_v15  ;;  %4275 = vmatpush3.msra.mxu1 %v5678_v43 }
 0x445   :  { %1326 = vmatprep.subr.mxu0 %v6101_v19  ;;  %4276 = vmatprep.subr.mxu1 %v8037_v4 }
 0x446   :  { %1327 = vmatpush1.msra.mxu0 %v6108_v21  ;;  %4277 = vmatpush3.msra.mxu1 %v5687_v45 }
 0x447   :  { %1328 = vmatprep.subr.mxu0 %v6115_v23  ;;  %4278 = vmatprep.subr.mxu1 %v8037_v4 }
 0x448   :  { %1329 = vmatpush1.msra.mxu0 %v6122_v25  ;;  %4279 = vmatpush3.msra.mxu1 %v5696_v46  ;;  %v8056_v46 = vld [vmem:[#allocation23_spill] sm:$0xff] }
 0x449   :  { %1330 = vmatprep.subr.mxu0 %v6129_v30  ;;  %4280 = vmatprep.subr.mxu1 %v8037_v4 }
 0x44a   :  { %1331 = vmatpush1.msra.mxu0 %v6136_v31  ;;  %4281 = vmatpush3.msra.mxu1 %v5705_v47 }
 0x44b   :  { %1332 = vmatprep.subr.mxu0 %v6143_v33  ;;  %4282 = vmatprep.subr.mxu1 %v8037_v4 }
 0x44c   :  { %1333 = vmatpush1.msra.mxu0 %v6150_v36  ;;  %4283 = vmatpush3.msra.mxu1 %v5713_v48 }
 0x44d   :  { %1334 = vmatprep.subr.mxu0 %v6157_v38  ;;  %4284 = vmatprep.subr.mxu1 %v8037_v4 }
 0x44e   :  { %1335 = vmatpush1.msra.mxu0 %v6240_v29  ;;  %4285 = vmatpush3.msra.mxu1 %v5720_v50 }
 0x44f   :  { %1336 = vmatprep.subr.mxu0 %v6247_v32  ;;  %4286 = vmatprep.subr.mxu1 %v8037_v4 }
 0x450   :  { %1337 = vmatpush1.msra.mxu0 %v6254_v34  ;;  %4287 = vmatpush3.msra.mxu1 %v5727_v52 }
 0x451   :  { %1338 = vmatprep.subr.mxu0 %v6261_v35  ;;  %4288 = vmatprep.subr.mxu1 %v8037_v4 }
 0x452   :  { %1339 = vmatpush1.msra.mxu0 %v6268_v37  ;;  %4289 = vmatpush3.msra.mxu1 %v8045_v3  ;;  %v8057_v3 = vld [vmem:[#allocation24_spill] sm:$0xff] }
 0x453   :  { %1340 = vmatprep.subr.mxu0 %v6275_v39  ;;  %4290 = vmatprep.subr.mxu1 %v8037_v4 }
 0x454   :  { %1341 = vmatpush1.msra.mxu0 %v6282_v41  ;;  %1374 = vmatprep.mubr.f32.mxu0 %v8037_v4 }
 0x455   :  { %4291 = vmatpush3.msra.mxu1 %v8048_v8  ;;  %4292 = vmatprep.mubr.msk.f32.mxu1 %vm5048_vm2, %v8037_v4 }
 0x456   :  { %1489 = vmatprep.subr.mxu0 %v5984_v10  ;;  %4295 = vmatprep.subr.mxu1 %v8037_v4 }
 0x4f5   :  { %v1212_v43 = vpop.f32.mrf.mxu0  ;;  %v1283_v45 = vpop.f32.mrf.mxu1 }
 0x4f6   :  { %v1287_v47 = vadd.f32 %v1212_v43, %v8056_v46  ;;  %v1301_v7 = vadd.f32 %v5823_v62, %v1283_v45  ;;  %v6350_v43 = vld [vmem:[%s7938_s4 + $0x100] sm:$0xff]  ;;  %v6359_v45 = vld [vmem:[%s7938_s4 + $0xe8] sm:$0xff] }
 0x4f7   :  { %v4259_v48 = vpop.f32.mrf.mxu1  ;;  %v1214_v52 = vpop.f32.mrf.mxu0 }
 0x4f8   :  { %v3730_v50 = vmul.f32 -1.442695, %v1287_v47  ;;  %v1294_v16 = vadd.f32 %v1214_v52, %v8057_v3  ;;  %v6368_v47 = vld [vmem:[%s7938_s4 + $0xd0] sm:$0xff]  ;;  %v6377_v48 = vld [vmem:[%s7938_s4 + $0xb8] sm:$0xff]  ;;  %v6395_v52 = vld [vmem:[%s7938_s4 + $0x88] sm:$0xff] }
 0x4fa   :  { %4770 = vpow2.f32 %v3730_v50  ;;  %v3731_v9 = vmul.f32 -1.442695, %v1294_v16  ;;  %v6386_v50 = vld [vmem:[%s7938_s4 + $0xa0] sm:$0xff]  ;;  %v6404_v16 = vld [vmem:[%s7938_s4 + $0x70] sm:$0xff] }
 0x4fc   :  { %4772 = vpow2.f32 %v3731_v9  ;;  %v6413_v9 = vld [vmem:[%s7938_s4 + $0x58] sm:$0xff] }
 0x507   :  { %v4771_v8 = vpop.eup %4770 }
 0x508   :  { %v1291_v53 = vadd.f32 1.0, %v4771_v8  ;;  %v6422_v8 = vld [vmem:[%s7938_s4 + $0x40] sm:$0xff] }
 0x509   :  { %v4773_v44 = vpop.eup %4772 }
 0x50a   :  { %4774 = vrcp.f32 %v1291_v53  ;;  %v1298_v49 = vadd.f32 1.0, %v4773_v44  ;;  %v6431_v53 = vld [vmem:[%s7938_s4 + $0x28] sm:$0xff]  ;;  %v6441_v44 = vld [vmem:[%s7938_s4 + $0x10] sm:$0xff] }
 0x50b   :  { %8059 = vst [vmem:[#allocation15_spill] sm:$0xff] %v6431_v53  ;;  %8060 = vst [vmem:[#allocation16_spill] sm:$0xff] %v6441_v44 }
 0x50c   :  { %4776 = vrcp.f32 %v1298_v49 }
 0x517   :  { %v4775_v2 = vpop.eup %4774 }
 0x518   :  { %v1302_v11 = vmul.f32 %v4775_v2, %v1301_v7 }
 0x519   :  { %v4777_v14 = vpop.eup %4776 }
 0x51a   :  { %v1303_v56 = vadd.f32 %v1302_v11, %v8058_v60  ;;  %v1305_v51 = vsub.f32 1.0, %v4777_v14  ;;  %v1307_v57 = vmul.f32 %v4777_v14, %v6185_v42  ;;  %v6341_v42 = vld [vmem:[%s7938_s4 + $0x118] sm:$0xff] }
 0x51c   :  { %4778 = vtanh.f32 %v1303_v56 }
 0x529   :  { %v4779_v17 = vpop.eup %4778 }
 0x52a   :  { %v1306_v55 = vmul.f32 %v4779_v17, %v1305_v51 }
 0x52c   :  { %v6296_v28 = vadd.f32 %v1307_v57, %v1306_v55 }
 0x52e   :  { %1309 = vst [vmem:[#allocation3 + $0x18] sm:$0xf] %v6296_v28  ;;  %1375 = vmatmul.mubr.f32.vlgmr.msra.gmra.mxu0 %v6296_v28  ;;  %4293 = vmatmul.mubr.f32.vlgmr.msra.gmra.mxu1 %v6296_v28 }
 0x52f   :  { %1490 = vmatpush1.msra.mxu0 %v6001_v26  ;;  %4296 = vmatpush3.msra.mxu1 %v6305_v1 }
 0x530   :  { %1491 = vmatprep.subr.mxu0 %v5916_v59  ;;  %4297 = vmatprep.subr.mxu1 %v8037_v4 }
 0x531   :  { %1492 = vmatpush1.msra.mxu0 %v6010_v18  ;;  %4298 = vmatpush3.msra.mxu1 %v6314_v5 }
 0x532   :  { %1493 = vmatprep.subr.mxu0 %v6017_v24  ;;  %4299 = vmatprep.subr.mxu1 %v8037_v4 }
 0x533   :  { %1494 = vmatpush1.msra.mxu0 %v6024_v54  ;;  %4300 = vmatpush3.msra.mxu1 %v6323_v40 }
 0x534   :  { %1495 = vmatprep.subr.mxu0 %v6031_v12  ;;  %4301 = vmatprep.subr.mxu1 %v8037_v4 }
 0x535   :  { %1496 = vmatpush1.msra.mxu0 %v6038_v20  ;;  %4302 = vmatpush3.msra.mxu1 %v6332_v6 }
 0x536   :  { %1497 = vmatprep.subr.mxu0 %v6045_v58  ;;  %4303 = vmatprep.subr.mxu1 %v8037_v4 }
 0x537   :  { %1498 = vmatpush1.msra.mxu0 %v6052_v0  ;;  %4304 = vmatpush3.msra.mxu1 %v6341_v42 }
 0x538   :  { %1499 = vmatprep.subr.mxu0 %v6059_v63  ;;  %4305 = vmatprep.subr.mxu1 %v8037_v4 }
 0x539   :  { %1500 = vmatpush1.msra.mxu0 %v6066_v61  ;;  %4306 = vmatpush3.msra.mxu1 %v6350_v43 }
 0x53a   :  { %1501 = vmatprep.subr.mxu0 %v6073_v27  ;;  %4307 = vmatprep.subr.mxu1 %v8037_v4 }
 0x53b   :  { %1502 = vmatpush1.msra.mxu0 %v6080_v22  ;;  %4308 = vmatpush3.msra.mxu1 %v6359_v45 }
 0x53c   :  { %1503 = vmatprep.subr.mxu0 %v6087_v13  ;;  %4309 = vmatprep.subr.mxu1 %v8037_v4 }
 0x53d   :  { %1504 = vmatpush1.msra.mxu0 %v6094_v15  ;;  %4310 = vmatpush3.msra.mxu1 %v6368_v47 }
 0x53e   :  { %1505 = vmatprep.subr.mxu0 %v6101_v19  ;;  %4311 = vmatprep.subr.mxu1 %v8037_v4 }
 0x53f   :  { %1506 = vmatpush1.msra.mxu0 %v6108_v21  ;;  %4312 = vmatpush3.msra.mxu1 %v6377_v48 }
 0x540   :  { %1507 = vmatprep.subr.mxu0 %v6115_v23  ;;  %4313 = vmatprep.subr.mxu1 %v8037_v4 }
 0x541   :  { %1508 = vmatpush1.msra.mxu0 %v6122_v25  ;;  %4314 = vmatpush3.msra.mxu1 %v6386_v50 }
 0x542   :  { %1509 = vmatprep.subr.mxu0 %v6129_v30  ;;  %4315 = vmatprep.subr.mxu1 %v8037_v4 }
 0x543   :  { %1510 = vmatpush1.msra.mxu0 %v6136_v31  ;;  %4316 = vmatpush3.msra.mxu1 %v6395_v52 }
 0x544   :  { %1511 = vmatprep.subr.mxu0 %v6143_v33  ;;  %4317 = vmatprep.subr.mxu1 %v8037_v4 }
 0x545   :  { %1512 = vmatpush1.msra.mxu0 %v6150_v36  ;;  %4318 = vmatpush3.msra.mxu1 %v6404_v16 }
 0x546   :  { %1513 = vmatprep.subr.mxu0 %v6157_v38  ;;  %4319 = vmatprep.subr.mxu1 %v8037_v4 }
 0x547   :  { %1514 = vmatpush1.msra.mxu0 %v6240_v29  ;;  %4320 = vmatpush3.msra.mxu1 %v6413_v9 }
 0x548   :  { %1515 = vmatprep.subr.mxu0 %v6247_v32  ;;  %4321 = vmatprep.subr.mxu1 %v8037_v4 }
 0x549   :  { %1516 = vmatpush1.msra.mxu0 %v6254_v34  ;;  %4322 = vmatpush3.msra.mxu1 %v6422_v8 }
 0x54a   :  { %1517 = vmatprep.subr.mxu0 %v6261_v35  ;;  %4323 = vmatprep.subr.mxu1 %v8037_v4 }
 0x54b   :  { %1518 = vmatpush1.msra.mxu0 %v6268_v37  ;;  %4324 = vmatpush3.msra.mxu1 %v6431_v53 }
 0x54c   :  { %1519 = vmatprep.subr.mxu0 %v6275_v39  ;;  %4325 = vmatprep.subr.mxu1 %v8037_v4 }
 0x54d   :  { %1520 = vmatpush1.msra.mxu0 %v6282_v41  ;;  %1553 = vmatprep.mubr.f32.mxu0 %v8037_v4 }
 0x54e   :  { %4326 = vmatpush3.msra.mxu1 %v6441_v44  ;;  %4327 = vmatprep.mubr.msk.f32.mxu1 %vm5048_vm2, %v8037_v4 }
 0x54f   :  { %1653 = vmatprep.subr.mxu0 %v5984_v10  ;;  %4330 = vmatprep.subr.mxu1 %v8037_v4 }
 0x5ee   :  { %v1376_v49 = vpop.f32.mrf.mxu0  ;;  %v1447_v7 = vpop.f32.mrf.mxu1 }
 0x5ef   :  { %v1452_v2 = vrot.slane %v1376_v49, 4  ;;  %v1471_v39 = vadd.f32 %v5823_v62, %v1447_v7  ;;  %v8061_v62 = vld [vmem:[#allocation13_spill] sm:$0xff]  ;;  %v1865_v7 = vld [vmem:[%s7941_s7 + $0xf8] sm:$0xff] }
 0x5f0   :  { %v1378_v11 = vpop.f32.mrf.mxu0  ;;  %v4294_v56 = vpop.f32.mrf.mxu1 }
 0x5f1   :  { %v1454_v14 = vadd.f32 %v1452_v2, %v8056_v46  ;;  %v1462_v17 = vrot.slane %v1378_v11, 4  ;;  %v1473_v37 = vrot.slane %v1471_v39, 4 }
 0x5f3   :  { %v3732_v51 = vmul.f32 -1.442695, %v1454_v14  ;;  %v1464_v55 = vadd.f32 %v1462_v17, %v8057_v3  ;;  %v1481_v3 = vrot.slane %v6296_v28, 4  ;;  %v1866_v17 = vld [vmem:[%s7941_s7 + $0x100] sm:$0xff] }
 0x5f5   :  { %4780 = vpow2.f32 %v3732_v51  ;;  %v3733_v57 = vmul.f32 -1.442695, %v1464_v55  ;;  %v1864_v55 = vld [vmem:[%s7941_s7 + $0xf0] sm:$0xff] }
 0x5f7   :  { %4782 = vpow2.f32 %v3733_v57  ;;  %v1862_v57 = vld [vmem:[%s7941_s7 + $0xe0] sm:$0xff] }
 0x602   :  { %v4781_v44 = vpop.eup %4780 }
 0x603   :  { %v1458_v41 = vadd.f32 1.0, %v4781_v44 }
 0x604   :  { %v4783_v10 = vpop.eup %4782 }
 0x605   :  { %4784 = vrcp.f32 %v1458_v41  ;;  %v1468_v53 = vadd.f32 1.0, %v4783_v10  ;;  %v1863_v10 = vld [vmem:[%s7941_s7 + $0xe8] sm:$0xff] }
 0x607   :  { %4786 = vrcp.f32 %v1468_v53  ;;  %v1867_v53 = vld [vmem:[%s7941_s7 + $0x108] sm:$0xff] }
 0x612   :  { %v4785_v49 = vpop.eup %4784 }
 0x613   :  { %v1475_v35 = vmul.f32 %v4785_v49, %v1473_v37  ;;  %v1861_v49 = vld [vmem:[%s7941_s7 + $0xd8] sm:$0xff] }
 0x614   :  { %v4787_v2 = vpop.eup %4786 }
 0x615   :  { %v1476_v46 = vadd.f32 %v1475_v35, %v8058_v60  ;;  %v1478_v11 = vsub.f32 1.0, %v4787_v2  ;;  %v1483_v51 = vmul.f32 %v4787_v2, %v1481_v3  ;;  %v1860_v2 = vld [vmem:[%s7941_s7 + $0xd0] sm:$0xff] }
 0x616   :  { %v1856_v3 = vld [vmem:[%s7941_s7 + $0xb0] sm:$0xff] }
 0x617   :  { %4788 = vtanh.f32 %v1476_v46  ;;  %v1859_v46 = vld [vmem:[%s7941_s7 + $0xc8] sm:$0xff] }
 0x624   :  { %v4789_v56 = vpop.eup %4788 }
 0x625   :  { %v1479_v14 = vmul.f32 %v4789_v56, %v1478_v11  ;;  %v1858_v11 = vld [vmem:[%s7941_s7 + $0xc0] sm:$0xff]  ;;  %v1857_v56 = vld [vmem:[%s7941_s7 + $0xb8] sm:$0xff] }
 0x627   :  { %v1484_v44 = vadd.f32 %v1483_v51, %v1479_v14  ;;  %v1855_v14 = vld [vmem:[%s7941_s7 + $0xa8] sm:$0xff]  ;;  %v1853_v51 = vld [vmem:[%s7941_s7 + $0x98] sm:$0xff] }
 0x629   :  { %1485 = vst [vmem:[#allocation3 + $0x18] sm:$0xf0] %v1484_v44  ;;  %v6453_v41 = vrot.slane %v1484_v44, 4  ;;  %v1854_v44 = vld [vmem:[%s7941_s7 + $0xa0] sm:$0xff] }
 0x62b   :  { %1554 = vmatmul.mubr.f32.vlgmr.msra.gmra.mxu0 %v6453_v41  ;;  %4328 = vmatmul.mubr.f32.vlgmr.msra.gmra.mxu1 %v6453_v41 }
 0x62c   :  { %1654 = vmatpush1.msra.mxu0 %v6001_v26  ;;  %4331 = vmatpush3.msra.mxu1 %v6305_v1  ;;  %v8063_v26 = vld [vmem:[#allocation15_spill] sm:$0xff] }
 0x62d   :  { %1655 = vmatprep.subr.mxu0 %v5916_v59  ;;  %4332 = vmatprep.subr.mxu1 %v8037_v4  ;;  %v8062_v59 = vld [vmem:[#allocation22_spill] sm:$0xff] }
 0x62e   :  { %1656 = vmatpush1.msra.mxu0 %v6010_v18  ;;  %4333 = vmatpush3.msra.mxu1 %v6314_v5  ;;  %v8064_v18 = vld [vmem:[#allocation14_spill] sm:$0xff]  ;;  %v1879_v5 = vld [vmem:[%s7941_s7 + $0x168] sm:$0xff] }
 0x62f   :  { %1657 = vmatprep.subr.mxu0 %v6017_v24  ;;  %4334 = vmatprep.subr.mxu1 %v8037_v4  ;;  %v8065_v24 = vld [vmem:[#allocation17_spill] sm:$0xff] }
 0x630   :  { %1658 = vmatpush1.msra.mxu0 %v6024_v54  ;;  %4335 = vmatpush3.msra.mxu1 %v6323_v40  ;;  %v8066_v54 = vld [vmem:[#allocation16_spill] sm:$0xff]  ;;  %v1877_v40 = vld [vmem:[%s7941_s7 + $0x158] sm:$0xff] }
 0x631   :  { %1659 = vmatprep.subr.mxu0 %v6031_v12  ;;  %4336 = vmatprep.subr.mxu1 %v8037_v4  ;;  %v1880_v12 = vld [vmem:[%s7941_s7 + $0x170] sm:$0xff] }
 0x632   :  { %1660 = vmatpush1.msra.mxu0 %v6038_v20  ;;  %4337 = vmatpush3.msra.mxu1 %v6332_v6  ;;  %v1881_v20 = vld [vmem:[%s7941_s7 + $0x178] sm:$0xff]  ;;  %v1878_v6 = vld [vmem:[%s7941_s7 + $0x160] sm:$0xff] }
 0x633   :  { %1661 = vmatprep.subr.mxu0 %v6045_v58  ;;  %4338 = vmatprep.subr.mxu1 %v8037_v4 }
 0x634   :  { %1662 = vmatpush1.msra.mxu0 %v6052_v0  ;;  %4339 = vmatpush3.msra.mxu1 %v6341_v42  ;;  %v1876_v42 = vld [vmem:[%s7941_s7 + $0x150] sm:$0xff] }
 0x635   :  { %1663 = vmatprep.subr.mxu0 %v6059_v63  ;;  %4340 = vmatprep.subr.mxu1 %v8037_v4  ;;  %v8067_v63 = vld [vmem:[#allocation25_spill] sm:$0xff] }
 0x636   :  { %1664 = vmatpush1.msra.mxu0 %v6066_v61  ;;  %4341 = vmatpush3.msra.mxu1 %v6350_v43  ;;  %v1874_v43 = vld [vmem:[%s7941_s7 + $0x140] sm:$0xff] }
 0x637   :  { %1665 = vmatprep.subr.mxu0 %v6073_v27  ;;  %4342 = vmatprep.subr.mxu1 %v8037_v4 }
 0x638   :  { %1666 = vmatpush1.msra.mxu0 %v6080_v22  ;;  %4343 = vmatpush3.msra.mxu1 %v6359_v45  ;;  %v6558_v45 = vld [vmem:[#allocation3 + $0x10] sm:$0xff] }
 0x639   :  { %1667 = vmatprep.subr.mxu0 %v6087_v13  ;;  %4344 = vmatprep.subr.mxu1 %v8037_v4 }
 0x63a   :  { %1668 = vmatpush1.msra.mxu0 %v6094_v15  ;;  %4345 = vmatpush3.msra.mxu1 %v6368_v47  ;;  %v8068_v15 = vld [vmem:[#allocation26_spill] sm:$0xff]  ;;  %v1875_v47 = vld [vmem:[%s7941_s7 + $0x148] sm:$0xff] }
 0x63b   :  { %1669 = vmatprep.subr.mxu0 %v6101_v19  ;;  %4346 = vmatprep.subr.mxu1 %v8037_v4 }
 0x63c   :  { %1670 = vmatpush1.msra.mxu0 %v6108_v21  ;;  %4347 = vmatpush3.msra.mxu1 %v6377_v48  ;;  %v1873_v48 = vld [vmem:[%s7941_s7 + $0x138] sm:$0xff] }
 0x63d   :  { %1671 = vmatprep.subr.mxu0 %v6115_v23  ;;  %4348 = vmatprep.subr.mxu1 %v8037_v4 }
 0x63e   :  { %1672 = vmatpush1.msra.mxu0 %v6122_v25  ;;  %4349 = vmatpush3.msra.mxu1 %v6386_v50  ;;  %v1871_v50 = vld [vmem:[%s7941_s7 + $0x128] sm:$0xff] }
 0x63f   :  { %1673 = vmatprep.subr.mxu0 %v6129_v30  ;;  %4350 = vmatprep.subr.mxu1 %v8037_v4 }
 0x640   :  { %1674 = vmatpush1.msra.mxu0 %v6136_v31  ;;  %4351 = vmatpush3.msra.mxu1 %v6395_v52  ;;  %v1872_v52 = vld [vmem:[%s7941_s7 + $0x130] sm:$0xff] }
 0x641   :  { %1675 = vmatprep.subr.mxu0 %v6143_v33  ;;  %4352 = vmatprep.subr.mxu1 %v8037_v4  ;;  %v6533_v33 = vld [vmem:[%s7940_s6] ss:$0 sm:$0xff] }
 0x642   :  { %1676 = vmatpush1.msra.mxu0 %v6150_v36  ;;  %4353 = vmatpush3.msra.mxu1 %v6404_v16  ;;  %v1870_v16 = vld [vmem:[%s7941_s7 + $0x120] sm:$0xff] }
 0x643   :  { %1677 = vmatprep.subr.mxu0 %v6157_v38  ;;  %4354 = vmatprep.subr.mxu1 %v8037_v4 }
 0x644   :  { %1678 = vmatpush1.msra.mxu0 %v6240_v29  ;;  %4355 = vmatpush3.msra.mxu1 %v6413_v9  ;;  %v1868_v9 = vld [vmem:[%s7941_s7 + $0x110] sm:$0xff] }
 0x645   :  { %1679 = vmatprep.subr.mxu0 %v6247_v32  ;;  %4356 = vmatprep.subr.mxu1 %v8037_v4  ;;  %v8069_v32 = vld [vmem:[#allocation28_spill] sm:$0xff] }
 0x646   :  { %1680 = vmatpush1.msra.mxu0 %v6254_v34  ;;  %4357 = vmatpush3.msra.mxu1 %v6422_v8  ;;  %v1869_v8 = vld [vmem:[%s7941_s7 + $0x118] sm:$0xff] }
 0x647   :  { %1681 = vmatprep.subr.mxu0 %v8061_v62  ;;  %4358 = vmatprep.subr.mxu1 %v8037_v4  ;;  %v1850_v62 = vld [vmem:[%s7941_s7 + $0x80] sm:$0xff] }
 0x648   :  { %1682 = vmatpush1.msra.mxu0 %v8062_v59  ;;  %4359 = vmatpush3.msra.mxu1 %v8063_v26  ;;  %v1851_v59 = vld [vmem:[%s7941_s7 + $0x88] sm:$0xff]  ;;  %v1849_v26 = vld [vmem:[%s7941_s7 + $0x78] sm:$0xff] }
 0x649   :  { %1683 = vmatprep.subr.mxu0 %v8064_v18  ;;  %4360 = vmatprep.subr.mxu1 %v8037_v4  ;;  %v1847_v18 = vld [vmem:[%s7941_s7 + $0x68] sm:$0xff] }
 0x64a   :  { %1684 = vmatpush1.msra.mxu0 %v8065_v24  ;;  %4361 = vmatpush3.msra.mxu1 %v8066_v54  ;;  %v1848_v24 = vld [vmem:[%s7941_s7 + $0x70] sm:$0xff]  ;;  %v1846_v54 = vld [vmem:[%s7941_s7 + $0x60] sm:$0xff] }
 0x64b   :  { %1717 = vmatprep.mubr.f32.mxu0 %v8037_v4  ;;  %4362 = vmatprep.mubr.msk.f32.mxu1 %vm5048_vm2, %v8037_v4 }
 0x64c   :  { %1899 = vmatprep.subr.mxu0 %v1880_v12  ;;  %4365 = vmatprep.subr.mxu1 %v1881_v20  ;;  %v1844_v12 = vld [vmem:[%s7941_s7 + $0x50] sm:$0xff] }
 0x6eb   :  { %v1555_v58 = vpop.f32.mrf.mxu0  ;;  %v1626_v0 = vpop.f32.mrf.mxu1 }
 0x6ec   :  { %v1630_v61 = vadd.f32 %v1555_v58, %v8067_v63  ;;  %v1644_v36 = vadd.f32 %v6533_v33, %v1626_v0  ;;  %v1843_v58 = vld [vmem:[%s7941_s7 + $0x48] sm:$0xff]  ;;  %v1841_v0 = vld [vmem:[%s7941_s7 + $0x38] sm:$0xff] }
 0x6ed   :  { %v4329_v27 = vpop.f32.mrf.mxu1  ;;  %v1557_v13 = vpop.f32.mrf.mxu0 }
 0x6ee   :  { %v3734_v22 = vmul.f32 -1.442695, %v1630_v61  ;;  %v1637_v19 = vadd.f32 %v1557_v13, %v8068_v15  ;;  %v1842_v61 = vld [vmem:[%s7941_s7 + $0x40] sm:$0xff]  ;;  %v1840_v27 = vld [vmem:[%s7941_s7 + $0x30] sm:$0xff]  ;;  %v1839_v13 = vld [vmem:[%s7941_s7 + $0x28] sm:$0xff] }
 0x6f0   :  { %4790 = vpow2.f32 %v3734_v22  ;;  %v3735_v21 = vmul.f32 -1.442695, %v1637_v19  ;;  %v1838_v22 = vld [vmem:[%s7941_s7 + $0x20] sm:$0xff]  ;;  %v1837_v19 = vld [vmem:[%s7941_s7 + $0x18] sm:$0xff] }
 0x6f2   :  { %4792 = vpow2.f32 %v3735_v21  ;;  %v1835_v21 = vld [vmem:[%s7941_s7 + $0x8] sm:$0xff] }
 0x6fd   :  { %v4791_v23 = vpop.eup %4790 }
 0x6fe   :  { %v1634_v25 = vadd.f32 1.0, %v4791_v23  ;;  %v1836_v23 = vld [vmem:[%s7941_s7 + $0x10] sm:$0xff] }
 0x6ff   :  { %v4793_v30 = vpop.eup %4792 }
 0x700   :  { %4794 = vrcp.f32 %v1634_v25  ;;  %v1641_v31 = vadd.f32 1.0, %v4793_v30  ;;  %v1834_v25 = vld [vmem:[%s7941_s7] sm:$0xff] }
 0x701   :  { %v1831_v30 = vld [vmem:[#allocation3] sm:$0xff] }
 0x702   :  { %4796 = vrcp.f32 %v1641_v31  ;;  %v1832_v31 = vld [vmem:[#allocation3 + $0x18] sm:$0xff] }
 0x70d   :  { %v4795_v38 = vpop.eup %4794 }
 0x70e   :  { %v1645_v29 = vmul.f32 %v4795_v38, %v1644_v36  ;;  %v6693_v36 = vld [vmem:[%s7942_s8 + $0x170] sm:$0xff]  ;;  %v6699_v38 = vld [vmem:[%s7942_s8 + $0x168] sm:$0xff] }
 0x70f   :  { %v4797_v35 = vpop.eup %4796  ;;  %8070 = vst [vmem:[#allocation18_spill] sm:$0xff] %v6693_v36 }
 0x710   :  { %v1646_v34 = vadd.f32 %v1645_v29, %v8069_v32  ;;  %v1648_v37 = vsub.f32 1.0, %v4797_v35  ;;  %v1650_v28 = vmul.f32 %v4797_v35, %v6453_v41  ;;  %v1852_v41 = vld [vmem:[%s7941_s7 + $0x90] sm:$0xff]  ;;  %v6705_v29 = vld [vmem:[%s7942_s8 + $0x158] sm:$0xff]  ;;  %v6717_v35 = vld [vmem:[%s7942_s8 + $0x140] sm:$0xff] }
 0x712   :  { %4798 = vtanh.f32 %v1646_v34  ;;  %v6711_v34 = vld [vmem:[%s7942_s8 + $0x150] sm:$0xff] }
 0x71f   :  { %v4799_v39 = vpop.eup %4798 }
 0x720   :  { %v1649_v60 = vmul.f32 %v4799_v39, %v1648_v37  ;;  %v6723_v37 = vld [vmem:[%s7942_s8 + $0x138] sm:$0xff]  ;;  %v6729_v39 = vld [vmem:[%s7942_s8 + $0x128] sm:$0xff] }
 0x722   :  { %v6538_v1 = vadd.f32 %v1650_v28, %v1649_v60  ;;  %v6735_v60 = vld [vmem:[%s7942_s8 + $0x120] sm:$0xff]  ;;  %v6741_v28 = vld [vmem:[%s7942_s8 + $0x110] sm:$0xff] }
 0x724   :  { %1652 = vst [vmem:[#allocation3 + $0x8] sm:$0xf] %v6538_v1  ;;  %1718 = vmatmul.mubr.f32.vlgmr.msra.gmra.mxu0 %v6538_v1  ;;  %4363 = vmatmul.mubr.f32.vlgmr.msra.gmra.mxu1 %v6538_v1 }
 0x725   :  { %1900 = vmatpush1.msra.mxu0 %v1879_v5  ;;  %4366 = vmatpush3.msra.mxu1 %v1881_v20  ;;  %v1845_v20 = vld [vmem:[%s7941_s7 + $0x58] sm:$0xff]  ;;  %v6747_v5 = vld [vmem:[%s7942_s8 + $0x108] sm:$0xff] }
 0x726   :  { %1901 = vmatprep.subr.mxu0 %v1877_v40  ;;  %4367 = vmatprep.subr.mxu1 %v1878_v6  ;;  %v6753_v40 = vld [vmem:[%s7942_s8 + $0xf8] sm:$0xff] }
 0x727   :  { %4397 = vmatprep.mubr.f32.mxu1 %v6558_v45  ;;  %1902 = vmatpush1.msra.mxu0 %v1876_v42  ;;  %v6765_v42 = vld [vmem:[%s7942_s8 + $0xe0] sm:$0xff] }
 0x728   :  { %4368 = vmatpush3.msra.mxu1 %v1878_v6  ;;  %1903 = vmatprep.subr.mxu0 %v1874_v43  ;;  %v6759_v6 = vld [vmem:[%s7942_s8 + $0xf0] sm:$0xff]  ;;  %v6771_v43 = vld [vmem:[%s7942_s8 + $0xd8] sm:$0xff] }
 0x729   :  { %4369 = vmatprep.subr.mxu1 %v1875_v47  ;;  %1904 = vmatpush1.msra.mxu0 %v1873_v48  ;;  %v6789_v48 = vld [vmem:[%s7942_s8 + $0xb0] sm:$0xff] }
 0x72a   :  { %4370 = vmatpush3.msra.mxu1 %v1875_v47  ;;  %1905 = vmatprep.subr.mxu0 %v1871_v50  ;;  %v6783_v47 = vld [vmem:[%s7942_s8 + $0xc0] sm:$0xff]  ;;  %v6795_v50 = vld [vmem:[%s7942_s8 + $0xa8] sm:$0xff] }
 0x72b   :  { %4371 = vmatprep.subr.mxu1 %v1872_v52  ;;  %1906 = vmatpush1.msra.mxu0 %v1870_v16  ;;  %v6807_v16 = vld [vmem:[%s7942_s8 + $0x90] sm:$0xff] }
 0x72c   :  { %4372 = vmatpush3.msra.mxu1 %v1872_v52  ;;  %1907 = vmatprep.subr.mxu0 %v1868_v9  ;;  %v6801_v52 = vld [vmem:[%s7942_s8 + $0x98] sm:$0xff]  ;;  %v6812_v9 = vld [vmem:[%s7942_s8 + $0x80] sm:$0xff] }
 0x72d   :  { %4373 = vmatprep.subr.mxu1 %v1869_v8  ;;  %1908 = vmatpush1.msra.mxu0 %v1867_v53  ;;  %v6823_v53 = vld [vmem:[%s7942_s8 + $0x68] sm:$0xff] }
 0x72e   :  { %4374 = vmatpush3.msra.mxu1 %v1869_v8  ;;  %1909 = vmatprep.subr.mxu0 %v1865_v7  ;;  %v6817_v8 = vld [vmem:[%s7942_s8 + $0x78] sm:$0xff]  ;;  %v6829_v7 = vld [vmem:[%s7942_s8 + $0x60] sm:$0xff] }
 0x72f   :  { %4375 = vmatprep.subr.mxu1 %v1866_v17  ;;  %1910 = vmatpush1.msra.mxu0 %v1864_v55  ;;  %v6841_v55 = vld [vmem:[%s7942_s8 + $0x48] sm:$0xff] }
 0x730   :  { %4376 = vmatpush3.msra.mxu1 %v1866_v17  ;;  %1911 = vmatprep.subr.mxu0 %v1862_v57  ;;  %v6835_v17 = vld [vmem:[%s7942_s8 + $0x50] sm:$0xff]  ;;  %v6847_v57 = vld [vmem:[%s7942_s8 + $0x38] sm:$0xff] }
 0x731   :  { %4377 = vmatprep.subr.mxu1 %v1863_v10  ;;  %1912 = vmatpush1.msra.mxu0 %v1861_v49  ;;  %v6860_v49 = vld [vmem:[%s7942_s8 + $0x20] sm:$0xff] }
 0x732   :  { %4378 = vmatpush3.msra.mxu1 %v1863_v10  ;;  %1913 = vmatprep.subr.mxu0 %v1859_v46  ;;  %v6853_v10 = vld [vmem:[%s7942_s8 + $0x30] sm:$0xff]  ;;  %8071 = vst [vmem:[#allocation20_spill] sm:$0xff] %v6860_v49  ;;  %v6865_v46 = vld [vmem:[%s7942_s8 + $0x18] sm:$0xff] }
 0x733   :  { %4379 = vmatprep.subr.mxu1 %v1860_v2  ;;  %1914 = vmatpush1.msra.mxu0 %v1858_v11  ;;  %8072 = vst [vmem:[#allocation21_spill] sm:$0xff] %v6865_v46  ;;  %v6876_v11 = vld [vmem:[%s7942_s8 + $0x178] sm:$0xff] }
 0x734   :  { %4380 = vmatpush3.msra.mxu1 %v1860_v2  ;;  %1915 = vmatprep.subr.mxu0 %v1856_v3  ;;  %v6871_v2 = vld [vmem:[%s7942_s8 + $0x8] sm:$0xff]  ;;  %v6882_v3 = vld [vmem:[%s7942_s8] sm:$0xff] }
 0x735   :  { %4381 = vmatprep.subr.mxu1 %v1857_v56  ;;  %1916 = vmatpush1.msra.mxu0 %v1855_v14  ;;  %8073 = vst [vmem:[#allocation27_spill] sm:$0xff] %v6871_v2  ;;  %8074 = vst [vmem:[#allocation23_spill] sm:$0xff] %v6882_v3  ;;  %v6896_v14 = vld [vmem:[%s7942_s8 + $0x148] sm:$0xff] }
 0x736   :  { %4382 = vmatpush3.msra.mxu1 %v1857_v56  ;;  %1917 = vmatprep.subr.mxu0 %v1853_v51  ;;  %v6891_v56 = vld [vmem:[%s7942_s8 + $0x160] sm:$0xff]  ;;  %v6904_v51 = vld [vmem:[%s7942_s8 + $0x130] sm:$0xff] }
 0x737   :  { %4383 = vmatprep.subr.mxu1 %v1854_v44  ;;  %1918 = vmatpush1.msra.mxu0 %v1852_v41  ;;  %v6919_v41 = vld [vmem:[%s7942_s8 + $0x100] sm:$0xff] }
 0x738   :  { %4384 = vmatpush3.msra.mxu1 %v1854_v44  ;;  %1919 = vmatprep.subr.mxu0 %v1850_v62  ;;  %v6912_v44 = vld [vmem:[%s7942_s8 + $0x118] sm:$0xff]  ;;  %v6926_v62 = vld [vmem:[%s7942_s8 + $0xe8] sm:$0xff] }
 0x739   :  { %4385 = vmatprep.subr.mxu1 %v1851_v59  ;;  %1920 = vmatpush1.msra.mxu0 %v1849_v26  ;;  %v6940_v26 = vld [vmem:[%s7942_s8 + $0xb8] sm:$0xff] }
 0x73a   :  { %4386 = vmatpush3.msra.mxu1 %v1851_v59  ;;  %1921 = vmatprep.subr.mxu0 %v1847_v18  ;;  %v6933_v59 = vld [vmem:[%s7942_s8 + $0xd0] sm:$0xff]  ;;  %v6947_v18 = vld [vmem:[%s7942_s8 + $0xa0] sm:$0xff] }
 0x73b   :  { %4387 = vmatprep.subr.mxu1 %v1848_v24  ;;  %1922 = vmatpush1.msra.mxu0 %v1846_v54  ;;  %v6961_v54 = vld [vmem:[%s7942_s8 + $0x70] sm:$0xff] }
 0x73c   :  { %4388 = vmatpush3.msra.mxu1 %v1848_v24  ;;  %1923 = vmatprep.subr.mxu0 %v1844_v12  ;;  %v6954_v24 = vld [vmem:[%s7942_s8 + $0x88] sm:$0xff]  ;;  %v6968_v12 = vld [vmem:[%s7942_s8 + $0x58] sm:$0xff] }
 0x73d   :  { %4389 = vmatprep.subr.mxu1 %v1845_v20  ;;  %1924 = vmatpush1.msra.mxu0 %v1843_v58  ;;  %v6982_v58 = vld [vmem:[%s7942_s8 + $0x28] sm:$0xff] }
 0x73e   :  { %4390 = vmatpush3.msra.mxu1 %v1845_v20  ;;  %1925 = vmatprep.subr.mxu0 %v1841_v0  ;;  %v6975_v20 = vld [vmem:[%s7942_s8 + $0x40] sm:$0xff]  ;;  %8075 = vst [vmem:[#allocation24_spill] sm:$0xff] %v6982_v58  ;;  %v6989_v0 = vld [vmem:[%s7942_s8 + $0x10] sm:$0xff] }
 0x73f   :  { %4391 = vmatprep.subr.mxu1 %v1842_v61  ;;  %1926 = vmatpush1.msra.mxu0 %v1840_v27  ;;  %8076 = vst [vmem:[#allocation29_spill] sm:$0xff] %v6989_v0 }
 0x740   :  { %4392 = vmatpush3.msra.mxu1 %v1842_v61  ;;  %1927 = vmatprep.subr.mxu0 %v1838_v22 }
 0x741   :  { %4393 = vmatprep.subr.mxu1 %v1839_v13  ;;  %1928 = vmatpush1.msra.mxu0 %v1837_v19 }
 0x742   :  { %4394 = vmatpush3.msra.mxu1 %v1839_v13  ;;  %1929 = vmatprep.subr.mxu0 %v1835_v21 }
 0x743   :  { %4395 = vmatprep.subr.mxu1 %v1836_v23  ;;  %1930 = vmatpush1.msra.mxu0 %v1834_v25 }
 0x744   :  { %1963 = vmatprep.mubr.f32.mxu0 %v8037_v4  ;;  %4396 = vmatpush3.msra.mxu1 %v1836_v23 }
 0x745   :  { %1964 = vmatmul.mubr.f32.vlgmr.msra.gmra.mxu0 %v6558_v45  ;;  %4398 = vmatmul.mubr.f32.vlgmr.msra.gmra.mxu1 %v1831_v30  ;;  %v6777_v45 = vld [vmem:[%s7942_s8 + $0xc8] sm:$0xff] }
 0x746   :  { %4400 = vmatprep.mubr.f32.mxu1 %v1832_v31  ;;  %1969 = vmatprep.mubr.f32.mxu0 %v8037_v4 }
 0x747   :  { %4403 = vmatprep.subr.mxu1 %v8037_v4  ;;  %2124 = vmatprep.subr.mxu0 %v6693_v36 }
 0x748   :  { %2125 = vmatpush1.msra.mxu0 %v6699_v38  ;;  %4404 = vmatpush3.msra.mxu1 %v6876_v11 }
 0x749   :  { %1970 = vmatmul.mubr.f32.gmra.mxu0 %v1831_v30  ;;  %2126 = vmatprep.subr.mxu0 %v6705_v29 }
 0x74a   :  { %1975 = vmatprep.mubr.f32.mxu0 %v8037_v4  ;;  %2127 = vmatpush1.msra.mxu0 %v6711_v34 }
 0x74b   :  { %2128 = vmatprep.subr.mxu0 %v6717_v35  ;;  %4405 = vmatprep.subr.mxu1 %v8037_v4 }
 0x74c   :  { %2129 = vmatpush1.msra.mxu0 %v6723_v37  ;;  %4406 = vmatpush3.msra.mxu1 %v6891_v56 }
 0x74d   :  { %1976 = vmatmul.mubr.f32.gmra.mxu0 %v1832_v31  ;;  %2130 = vmatprep.subr.mxu0 %v6729_v39 }
 0x74e   :  { %1981 = vmatprep.mubr.f32.mxu0 %v8037_v4  ;;  %2131 = vmatpush1.msra.mxu0 %v6735_v60 }
 0x74f   :  { %2132 = vmatprep.subr.mxu0 %v6741_v28  ;;  %4407 = vmatprep.subr.mxu1 %v8037_v4 }
 0x750   :  { %2133 = vmatpush1.msra.mxu0 %v6747_v5  ;;  %4408 = vmatpush3.msra.mxu1 %v6896_v14 }
 0x751   :  { %2134 = vmatprep.subr.mxu0 %v6753_v40  ;;  %4409 = vmatprep.subr.mxu1 %v8037_v4 }
 0x752   :  { %2135 = vmatpush1.msra.mxu0 %v6759_v6  ;;  %4410 = vmatpush3.msra.mxu1 %v6904_v51 }
 0x753   :  { %2136 = vmatprep.subr.mxu0 %v6765_v42  ;;  %4411 = vmatprep.subr.mxu1 %v8037_v4 }
 0x754   :  { %2137 = vmatpush1.msra.mxu0 %v6771_v43  ;;  %4412 = vmatpush3.msra.mxu1 %v6912_v44 }
 0x755   :  { %2138 = vmatprep.subr.mxu0 %v6777_v45  ;;  %4413 = vmatprep.subr.mxu1 %v8037_v4 }
 0x756   :  { %2139 = vmatpush1.msra.mxu0 %v6783_v47  ;;  %4414 = vmatpush3.msra.mxu1 %v6919_v41 }
 0x757   :  { %2140 = vmatprep.subr.mxu0 %v6789_v48  ;;  %4415 = vmatprep.subr.mxu1 %v8037_v4 }
 0x758   :  { %2141 = vmatpush1.msra.mxu0 %v6795_v50  ;;  %4416 = vmatpush3.msra.mxu1 %v6926_v62 }
 0x759   :  { %2142 = vmatprep.subr.mxu0 %v6801_v52  ;;  %4417 = vmatprep.subr.mxu1 %v8037_v4 }
 0x75a   :  { %2143 = vmatpush1.msra.mxu0 %v6807_v16  ;;  %4418 = vmatpush3.msra.mxu1 %v6933_v59 }
 0x75b   :  { %2144 = vmatprep.subr.mxu0 %v6812_v9  ;;  %4419 = vmatprep.subr.mxu1 %v8037_v4 }
 0x75c   :  { %2145 = vmatpush1.msra.mxu0 %v6817_v8  ;;  %4420 = vmatpush3.msra.mxu1 %v6940_v26 }
 0x75d   :  { %2146 = vmatprep.subr.mxu0 %v6823_v53  ;;  %4421 = vmatprep.subr.mxu1 %v8037_v4 }
 0x75e   :  { %2147 = vmatpush1.msra.mxu0 %v6829_v7  ;;  %4422 = vmatpush3.msra.mxu1 %v6947_v18 }
 0x75f   :  { %2148 = vmatprep.subr.mxu0 %v6835_v17  ;;  %4423 = vmatprep.subr.mxu1 %v8037_v4 }
 0x760   :  { %2149 = vmatpush1.msra.mxu0 %v6841_v55  ;;  %4424 = vmatpush3.msra.mxu1 %v6954_v24 }
 0x761   :  { %2150 = vmatprep.subr.mxu0 %v6847_v57  ;;  %4425 = vmatprep.subr.mxu1 %v8037_v4 }
 0x762   :  { %2151 = vmatpush1.msra.mxu0 %v6853_v10  ;;  %4426 = vmatpush3.msra.mxu1 %v6961_v54 }
 0x763   :  { %2152 = vmatprep.subr.mxu0 %v6860_v49  ;;  %4427 = vmatprep.subr.mxu1 %v8037_v4 }
 0x764   :  { %2153 = vmatpush1.msra.mxu0 %v6865_v46  ;;  %4428 = vmatpush3.msra.mxu1 %v6968_v12 }
 0x765   :  { %2154 = vmatprep.subr.mxu0 %v6871_v2  ;;  %4429 = vmatprep.subr.mxu1 %v8037_v4 }
 0x766   :  { %2155 = vmatpush1.msra.mxu0 %v6882_v3  ;;  %4430 = vmatpush3.msra.mxu1 %v6975_v20 }
 0x767   :  { %2294 = vmatprep.subr.mxu0 %v6693_v36  ;;  %4431 = vmatprep.subr.mxu1 %v8037_v4 }
 0x768   :  { %4432 = vmatpush3.msra.mxu1 %v6982_v58 }
 0x769   :  { %4433 = vmatprep.subr.mxu1 %v8037_v4 }
 0x76a   :  { %4434 = vmatpush3.msra.mxu1 %v6989_v0 }
 0x76b   :  { %4438 = vmatprep.subr.mxu1 %v8037_v4 }
 0x7e4   :  { %v1719_v61 = vpop.f32.mrf.mxu0  ;;  %v1790_v27 = vpop.f32.mrf.mxu1 }
 0x7e5   :  { %v1795_v22 = vrot.slane %v1719_v61, 4  ;;  %v1814_v2 = vadd.f32 %v6533_v33, %v1790_v27  ;;  %v7004_v33 = vld [vmem:[%s7936_s2 + $0x4] sm:$0xf] }
 0x7e6   :  { %v1721_v13 = vpop.f32.mrf.mxu0  ;;  %v4364_v19 = vpop.f32.mrf.mxu1 }
 0x7e7   :  { %v1797_v21 = vadd.f32 %v1795_v22, %v8067_v63  ;;  %v1805_v25 = vrot.slane %v1721_v13, 4  ;;  %v1816_v46 = vrot.slane %v1814_v2, 4  ;;  %v1824_v13 = vrot.slane %v6538_v1, 4  ;;  %v8078_v1 = vld [vmem:[#allocation21_spill] sm:$0xff]  ;;  %v8081_v2 = vld [vmem:[#allocation23_spill] sm:$0xff] }
 0x7e9   :  { %v3736_v23 = vmul.f32 -1.442695, %v1797_v21  ;;  %v1807_v30 = vadd.f32 %v1805_v25, %v8068_v15 }
 0x7eb   :  { %4800 = vpow2.f32 %v3736_v23  ;;  %v3737_v31 = vmul.f32 -1.442695, %v1807_v30 }
 0x7ed   :  { %4802 = vpow2.f32 %v3737_v31 }
 0x7f8   :  { %v4801_v36 = vpop.eup %4800 }
 0x7f9   :  { %v1801_v3 = vadd.f32 1.0, %v4801_v36 }
 0x7fa   :  { %v4803_v0 = vpop.eup %4802 }
 0x7fb   :  { %4804 = vrcp.f32 %v1801_v3  ;;  %v1811_v58 = vadd.f32 1.0, %v4803_v0  ;;  %v8083_v0 = vld [vmem:[#allocation18_spill] sm:$0xff] }
 0x7fd   :  { %4806 = vrcp.f32 %v1811_v58  ;;  %v8082_v58 = vld [vmem:[#allocation29_spill] sm:$0xff] }
 0x805   :  { %v1965_v27 = vpop.f32.mrf.mxu0 }
 0x807   :  { %v1967_v25 = vpop.f32.mrf.mxu0 }
 0x808   :  { %v4805_v61 = vpop.eup %4804 }
 0x809   :  { %v1818_v49 = vmul.f32 %v4805_v61, %v1816_v46  ;;  %v8080_v46 = vld [vmem:[#allocation27_spill] sm:$0xff]  ;;  %v7077_v30 = vpop.f32.mrf.mxu0  ;;  %v7081_v61 = vpop.f32.mrf.mxu1 }
 0x80a   :  { %v4807_v22 = vpop.eup %4806  ;;  %8084 = vst [vmem:[#allocation13_spill] sm:$0xff] %v7077_v30  ;;  %8086 = vst [vmem:[#allocation15_spill] sm:$0xff] %v7081_v61 }
 0x80b   :  { %v1819_v63 = vadd.f32 %v1818_v49, %v8069_v32  ;;  %v1821_v15 = vsub.f32 1.0, %v4807_v22  ;;  %v1826_v23 = vmul.f32 %v4807_v22, %v1824_v13  ;;  %v8077_v32 = vld [vmem:[#allocation20_spill] sm:$0xff]  ;;  %v7079_v31 = vpop.f32.mrf.mxu0  ;;  %v2054_v13 = vpop.f32.mrf.mxu1 }
 0x80c   :  { %v8079_v49 = vld [vmem:[#allocation24_spill] sm:$0xff]  ;;  %8085 = vst [vmem:[#allocation22_spill] sm:$0xff] %v7079_v31 }
 0x80d   :  { %4808 = vtanh.f32 %v1819_v63  ;;  %v7083_v63 = vpop.f32.mrf.mxu0  ;;  %v1882_v22 = vld [vmem:[%s7943_s9] sm:$0x7] }
 0x80e   :  { %8087 = vst [vmem:[#allocation14_spill] sm:$0xff] %v7083_v63 }
 0x81a   :  { %v4809_v19 = vpop.eup %4808 }
 0x81b   :  { %v1822_v21 = vmul.f32 %v4809_v19, %v1821_v15  ;;  %v7088_v15 = vpop.f32.mrf.mxu0  ;;  %v8089_v19 = vld [vmem:[#allocation19_spill] sm:$0xff] }
 0x81c   :  { %8088 = vst [vmem:[#allocation17_spill] sm:$0xff] %v7088_v15 }
 0x81d   :  { %v1827_v36 = vadd.f32 %v1826_v23, %v1822_v21  ;;  %v8090_v21 = vsub.s32 0, %v8089_v19 }
 0x81f   :  { %1828 = vst [vmem:[#allocation3 + $0x8] sm:$0xf0] %v1827_v36  ;;  %1829 = vst [vmem:[#allocation8 - $0x4] sm:$0xf0] %v1827_v36  ;;  %v7092_v23 = vrot.slane %v1882_v22, %v8090_v21 }
 0x821   :  { %8091 = vst [vmem:[#allocation16_spill] sm:$0xff] %v7092_v23  ;;  %v7103_v63 = vadd.f32 %v1965_v27, %v7092_v23 }
 0x826   :  { %v1833_v3 = vld [vmem:[#allocation3 + $0x8] sm:$0xff] }
 0x827   :  { %1982 = vmatmul.mubr.f32.gmra.mxu0 %v1833_v3  ;;  %4401 = vmatmul.mubr.f32.gmra.mxu1 %v1833_v3 }
 0x828   :  { %2188 = vmatprep.mubr.f32.mxu0 %v8037_v4  ;;  %4435 = vmatprep.mubr.msk.f32.mxu1 %vm5048_vm2, %v8037_v4 }
 0x82b   :  { %2189 = vmatmul.mubr.f32.vlgmr.msra.gmra.mxu0 %v7004_v33  ;;  %4436 = vmatmul.mubr.f32.vlgmr.msra.gmra.mxu1 %v7004_v33 }
 0x82c   :  { %2295 = vmatpush1.msra.mxu0 %v6699_v38  ;;  %4439 = vmatpush3.msra.mxu1 %v6876_v11 }
 0x82d   :  { %2296 = vmatprep.subr.mxu0 %v6705_v29  ;;  %4440 = vmatprep.subr.mxu1 %v8037_v4 }
 0x82e   :  { %2297 = vmatpush1.msra.mxu0 %v6711_v34  ;;  %4441 = vmatpush3.msra.mxu1 %v6891_v56 }
 0x82f   :  { %2298 = vmatprep.subr.mxu0 %v6717_v35  ;;  %4442 = vmatprep.subr.mxu1 %v8037_v4 }
 0x830   :  { %2299 = vmatpush1.msra.mxu0 %v6723_v37  ;;  %4443 = vmatpush3.msra.mxu1 %v6896_v14 }
 0x831   :  { %2300 = vmatprep.subr.mxu0 %v6729_v39  ;;  %4444 = vmatprep.subr.mxu1 %v8037_v4 }
 0x832   :  { %2301 = vmatpush1.msra.mxu0 %v6735_v60  ;;  %4445 = vmatpush3.msra.mxu1 %v6904_v51 }
 0x833   :  { %2302 = vmatprep.subr.mxu0 %v6741_v28  ;;  %4446 = vmatprep.subr.mxu1 %v8037_v4 }
 0x834   :  { %2303 = vmatpush1.msra.mxu0 %v6747_v5  ;;  %4447 = vmatpush3.msra.mxu1 %v6912_v44 }
 0x835   :  { %2304 = vmatprep.subr.mxu0 %v6753_v40  ;;  %4448 = vmatprep.subr.mxu1 %v8037_v4 }
 0x836   :  { %2305 = vmatpush1.msra.mxu0 %v6759_v6  ;;  %4449 = vmatpush3.msra.mxu1 %v6919_v41 }
 0x837   :  { %2306 = vmatprep.subr.mxu0 %v6765_v42  ;;  %4450 = vmatprep.subr.mxu1 %v8037_v4 }
 0x838   :  { %2307 = vmatpush1.msra.mxu0 %v6771_v43  ;;  %4451 = vmatpush3.msra.mxu1 %v6926_v62 }
 0x839   :  { %2308 = vmatprep.subr.mxu0 %v6777_v45  ;;  %4452 = vmatprep.subr.mxu1 %v8037_v4 }
 0x83a   :  { %2309 = vmatpush1.msra.mxu0 %v6783_v47  ;;  %4453 = vmatpush3.msra.mxu1 %v6933_v59 }
 0x83b   :  { %2310 = vmatprep.subr.mxu0 %v6789_v48  ;;  %4454 = vmatprep.subr.mxu1 %v8037_v4 }
 0x83c   :  { %2311 = vmatpush1.msra.mxu0 %v6795_v50  ;;  %4455 = vmatpush3.msra.mxu1 %v6940_v26 }
 0x83d   :  { %2312 = vmatprep.subr.mxu0 %v6801_v52  ;;  %4456 = vmatprep.subr.mxu1 %v8037_v4 }
 0x83e   :  { %2313 = vmatpush1.msra.mxu0 %v6807_v16  ;;  %4457 = vmatpush3.msra.mxu1 %v6947_v18 }
 0x83f   :  { %2314 = vmatprep.subr.mxu0 %v6812_v9  ;;  %4458 = vmatprep.subr.mxu1 %v8037_v4 }
 0x840   :  { %2315 = vmatpush1.msra.mxu0 %v6817_v8  ;;  %4459 = vmatpush3.msra.mxu1 %v6954_v24 }
 0x841   :  { %2316 = vmatprep.subr.mxu0 %v6823_v53  ;;  %4460 = vmatprep.subr.mxu1 %v8037_v4 }
 0x842   :  { %2317 = vmatpush1.msra.mxu0 %v6829_v7  ;;  %4461 = vmatpush3.msra.mxu1 %v6961_v54 }
 0x843   :  { %2318 = vmatprep.subr.mxu0 %v6835_v17  ;;  %4462 = vmatprep.subr.mxu1 %v8037_v4 }
 0x844   :  { %2319 = vmatpush1.msra.mxu0 %v6841_v55  ;;  %4463 = vmatpush3.msra.mxu1 %v6968_v12 }
 0x845   :  { %2320 = vmatprep.subr.mxu0 %v6847_v57  ;;  %4464 = vmatprep.subr.mxu1 %v8037_v4 }
 0x846   :  { %2321 = vmatpush1.msra.mxu0 %v6853_v10  ;;  %4465 = vmatpush3.msra.mxu1 %v6975_v20 }
 0x847   :  { %2322 = vmatprep.subr.mxu0 %v8077_v32  ;;  %4466 = vmatprep.subr.mxu1 %v8037_v4 }
 0x848   :  { %2323 = vmatpush1.msra.mxu0 %v8078_v1  ;;  %4467 = vmatpush3.msra.mxu1 %v8079_v49 }
 0x849   :  { %2324 = vmatprep.subr.mxu0 %v8080_v46  ;;  %4468 = vmatprep.subr.mxu1 %v8037_v4 }
 0x84a   :  { %2325 = vmatpush1.msra.mxu0 %v8081_v2  ;;  %2358 = vmatprep.mubr.f32.mxu0 %v8037_v4 }
 0x84b   :  { %4469 = vmatpush3.msra.mxu1 %v8082_v58  ;;  %4470 = vmatprep.mubr.msk.f32.mxu1 %vm5048_vm2, %v8037_v4  ;;  %v8096_v58 = vsub.s32 1, %v8089_v19 }
 0x84c   :  { %2473 = vmatprep.subr.mxu0 %v8083_v0  ;;  %4473 = vmatprep.subr.mxu1 %v8037_v4 }
 0x84d   :  { %v7107_v15 = vrot.slane %v1882_v22, %v8096_v58  ;;  %v7117_v58 = vld [vmem:[%s7944_s10] ss:$0 sm:$0xff] }
 0x84f   :  { %8097 = vst [vmem:[#allocation30_spill] sm:$0xff] %v7107_v15 }
 0x8e7   :  { %v7094_v36 = vpop.f32.mrf.mxu0  ;;  %v7096_v3 = vpop.f32.mrf.mxu1 }
 0x8e8   :  { %8092 = vst [vmem:[#allocation25_spill] sm:$0xff] %v7094_v36  ;;  %8093 = vst [vmem:[#allocation26_spill] sm:$0xff] %v7096_v3  ;;  %v7111_v3 = vadd.f32 %v1967_v25, %v7107_v15  ;;  %v8099_v25 = vsub.s32 2, %v8089_v19  ;;  %v8105_v19 = vld [vmem:[#allocation18_spill] sm:$0xff] }
 0x8e9   :  { %v7098_v31 = vpop.f32.mrf.mxu0  ;;  %v7100_v61 = vpop.f32.mrf.mxu1 }
 0x8ea   :  { %8094 = vst [vmem:[#allocation28_spill] sm:$0xff] %v7098_v31  ;;  %8095 = vst [vmem:[#allocation19_spill] sm:$0xff] %v7100_v61 }
 0x8eb   :  { %v2190_v30 = vpop.f32.mrf.mxu0  ;;  %v2261_v0 = vpop.f32.mrf.mxu1  ;;  %8098 = vst [vmem:[#allocation31_spill] sm:$0xff] %v7111_v3 }
 0x8ec   :  { %v2265_v21 = vadd.f32 %v2190_v30, %v7103_v63  ;;  %v2285_v30 = vadd.f32 %v7117_v58, %v2261_v0 }
 0x8ed   :  { %v4437_v2 = vpop.f32.mrf.mxu1  ;;  %v2192_v36 = vpop.f32.mrf.mxu0 }
 0x8ee   :  { %v3739_v46 = vmul.f32 -1.442695, %v2265_v21  ;;  %v2272_v31 = vadd.f32 %v2192_v36, %v7111_v3  ;;  %v7122_v21 = vrot.slane %v1882_v22, %v8099_v25  ;;  %v8102_v22 = vld [vmem:[#allocation27_spill] sm:$0xff] }
 0x8f0   :  { %4810 = vpow2.f32 %v3739_v46  ;;  %v3740_v61 = vmul.f32 -1.442695, %v2272_v31  ;;  %8100 = vst [vmem:[#allocation32_spill] sm:$0xff] %v7122_v21  ;;  %v7125_v31 = vadd.f32 %v2054_v13, %v7122_v21  ;;  %v8103_v13 = vld [vmem:[#allocation23_spill] sm:$0xff] }
 0x8f2   :  { %4812 = vpow2.f32 %v3740_v61 }
 0x8fd   :  { %v4811_v27 = vpop.eup %4810 }
 0x8fe   :  { %v2269_v23 = vadd.f32 1.0, %v4811_v27 }
 0x8ff   :  { %v4813_v49 = vpop.eup %4812 }
 0x900   :  { %4814 = vrcp.f32 %v2269_v23  ;;  %v2276_v2 = vadd.f32 1.0, %v4813_v49 }
 0x902   :  { %4816 = vrcp.f32 %v2276_v2 }
 0x90d   :  { %v4815_v46 = vpop.eup %4814 }
 0x90e   :  { %v2286_v61 = vmul.f32 %v4815_v46, %v2285_v30 }
 0x90f   :  { %v4817_v36 = vpop.eup %4816 }
 0x910   :  { %v2287_v23 = vadd.f32 %v2286_v61, %v7125_v31  ;;  %v2289_v27 = vsub.f32 1.0, %v4817_v36  ;;  %v2291_v49 = vmul.f32 %v4817_v36, %v7004_v33  ;;  %v8101_v33 = vld [vmem:[#allocation24_spill] sm:$0xff] }
 0x912   :  { %4818 = vtanh.f32 %v2287_v23 }
 0x91f   :  { %v4819_v15 = vpop.eup %4818 }
 0x920   :  { %v2290_v3 = vmul.f32 %v4819_v15, %v2289_v27  ;;  %v8104_v15 = vld [vmem:[#allocation29_spill] sm:$0xff]  ;;  %v8106_v27 = vld [vmem:[#allocation31_spill] sm:$0xff] }
 0x922   :  { %v7129_v0 = vadd.f32 %v2291_v49, %v2290_v3 }
 0x924   :  { %2293 = vst [vmem:[#allocation3 + $0x10] sm:$0xf] %v7129_v0  ;;  %2359 = vmatmul.mubr.f32.vlgmr.msra.gmra.mxu0 %v7129_v0  ;;  %4471 = vmatmul.mubr.f32.vlgmr.msra.gmra.mxu1 %v7129_v0 }
 0x925   :  { %2474 = vmatpush1.msra.mxu0 %v6699_v38  ;;  %4474 = vmatpush3.msra.mxu1 %v6876_v11 }
 0x926   :  { %2475 = vmatprep.subr.mxu0 %v6705_v29  ;;  %4475 = vmatprep.subr.mxu1 %v8037_v4 }
 0x927   :  { %2476 = vmatpush1.msra.mxu0 %v6711_v34  ;;  %4476 = vmatpush3.msra.mxu1 %v6891_v56 }
 0x928   :  { %2477 = vmatprep.subr.mxu0 %v6717_v35  ;;  %4477 = vmatprep.subr.mxu1 %v8037_v4 }
 0x929   :  { %2478 = vmatpush1.msra.mxu0 %v6723_v37  ;;  %4478 = vmatpush3.msra.mxu1 %v6896_v14 }
 0x92a   :  { %2479 = vmatprep.subr.mxu0 %v6729_v39  ;;  %4479 = vmatprep.subr.mxu1 %v8037_v4 }
 0x92b   :  { %2480 = vmatpush1.msra.mxu0 %v6735_v60  ;;  %4480 = vmatpush3.msra.mxu1 %v6904_v51 }
 0x92c   :  { %2481 = vmatprep.subr.mxu0 %v6741_v28  ;;  %4481 = vmatprep.subr.mxu1 %v8037_v4 }
 0x92d   :  { %2482 = vmatpush1.msra.mxu0 %v6747_v5  ;;  %4482 = vmatpush3.msra.mxu1 %v6912_v44 }
 0x92e   :  { %2483 = vmatprep.subr.mxu0 %v6753_v40  ;;  %4483 = vmatprep.subr.mxu1 %v8037_v4 }
 0x92f   :  { %2484 = vmatpush1.msra.mxu0 %v6759_v6  ;;  %4484 = vmatpush3.msra.mxu1 %v6919_v41 }
 0x930   :  { %2485 = vmatprep.subr.mxu0 %v6765_v42  ;;  %4485 = vmatprep.subr.mxu1 %v8037_v4 }
 0x931   :  { %2486 = vmatpush1.msra.mxu0 %v6771_v43  ;;  %4486 = vmatpush3.msra.mxu1 %v6926_v62 }
 0x932   :  { %2487 = vmatprep.subr.mxu0 %v6777_v45  ;;  %4487 = vmatprep.subr.mxu1 %v8037_v4 }
 0x933   :  { %2488 = vmatpush1.msra.mxu0 %v6783_v47  ;;  %4488 = vmatpush3.msra.mxu1 %v6933_v59 }
 0x934   :  { %2489 = vmatprep.subr.mxu0 %v6789_v48  ;;  %4489 = vmatprep.subr.mxu1 %v8037_v4 }
 0x935   :  { %2490 = vmatpush1.msra.mxu0 %v6795_v50  ;;  %4490 = vmatpush3.msra.mxu1 %v6940_v26 }
 0x936   :  { %2491 = vmatprep.subr.mxu0 %v6801_v52  ;;  %4491 = vmatprep.subr.mxu1 %v8037_v4 }
 0x937   :  { %2492 = vmatpush1.msra.mxu0 %v6807_v16  ;;  %4492 = vmatpush3.msra.mxu1 %v6947_v18 }
 0x938   :  { %2493 = vmatprep.subr.mxu0 %v6812_v9  ;;  %4493 = vmatprep.subr.mxu1 %v8037_v4 }
 0x939   :  { %2494 = vmatpush1.msra.mxu0 %v6817_v8  ;;  %4494 = vmatpush3.msra.mxu1 %v6954_v24 }
 0x93a   :  { %2495 = vmatprep.subr.mxu0 %v6823_v53  ;;  %4495 = vmatprep.subr.mxu1 %v8037_v4 }
 0x93b   :  { %2496 = vmatpush1.msra.mxu0 %v6829_v7  ;;  %4496 = vmatpush3.msra.mxu1 %v6961_v54 }
 0x93c   :  { %2497 = vmatprep.subr.mxu0 %v6835_v17  ;;  %4497 = vmatprep.subr.mxu1 %v8037_v4 }
 0x93d   :  { %2498 = vmatpush1.msra.mxu0 %v6841_v55  ;;  %4498 = vmatpush3.msra.mxu1 %v6968_v12 }
 0x93e   :  { %2499 = vmatprep.subr.mxu0 %v6847_v57  ;;  %4499 = vmatprep.subr.mxu1 %v8037_v4 }
 0x93f   :  { %2500 = vmatpush1.msra.mxu0 %v6853_v10  ;;  %4500 = vmatpush3.msra.mxu1 %v6975_v20 }
 0x940   :  { %2501 = vmatprep.subr.mxu0 %v8077_v32  ;;  %4501 = vmatprep.subr.mxu1 %v8037_v4 }
 0x941   :  { %2502 = vmatpush1.msra.mxu0 %v8078_v1  ;;  %4502 = vmatpush3.msra.mxu1 %v8101_v33 }
 0x942   :  { %2503 = vmatprep.subr.mxu0 %v8102_v22  ;;  %4503 = vmatprep.subr.mxu1 %v8037_v4 }
 0x943   :  { %2504 = vmatpush1.msra.mxu0 %v8103_v13  ;;  %2537 = vmatprep.mubr.f32.mxu0 %v8037_v4 }
 0x944   :  { %4504 = vmatpush3.msra.mxu1 %v8104_v15  ;;  %4505 = vmatprep.mubr.msk.f32.mxu1 %vm5048_vm2, %v8037_v4 }
 0x945   :  { %2637 = vmatprep.subr.mxu0 %v8105_v19  ;;  %4508 = vmatprep.subr.mxu1 %v8037_v4 }
 0x9e4   :  { %v2360_v3 = vpop.f32.mrf.mxu0  ;;  %v2431_v2 = vpop.f32.mrf.mxu1 }
 0x9e5   :  { %v2436_v30 = vrot.slane %v2360_v3, 4  ;;  %v2455_v22 = vadd.f32 %v7117_v58, %v2431_v2  ;;  %v8114_v2 = vld [vmem:[#allocation16_spill] sm:$0xff] }
 0x9e6   :  { %v2362_v25 = vpop.f32.mrf.mxu0  ;;  %v4472_v46 = vpop.f32.mrf.mxu1 }
 0x9e7   :  { %v2438_v61 = vadd.f32 %v2436_v30, %v7103_v63  ;;  %v2446_v36 = vrot.slane %v2362_v25, 4  ;;  %v2457_v1 = vrot.slane %v2455_v22, 4  ;;  %v2465_v46 = vrot.slane %v7129_v0, 4  ;;  %v8110_v0 = vld [vmem:[#allocation27_spill] sm:$0xff]  ;;  %v8112_v22 = vld [vmem:[#allocation29_spill] sm:$0xff] }
 0x9e9   :  { %v3742_v23 = vmul.f32 -1.442695, %v2438_v61  ;;  %v2448_v49 = vadd.f32 %v2446_v36, %v8106_v27  ;;  %v8115_v36 = vld [vmem:[#allocation13_spill] sm:$0xff] }
 0x9ea   :  { %v7279_v27 = vadd.f32 %v8115_v36, %v8114_v2 }
 0x9eb   :  { %4820 = vpow2.f32 %v3742_v23  ;;  %v3743_v21 = vmul.f32 -1.442695, %v2448_v49 }
 0x9ec   :  { %8116 = vst [vmem:[#allocation31_spill] sm:$0xff] %v7279_v27 }
 0x9ed   :  { %4822 = vpow2.f32 %v3743_v21 }
 0x9f8   :  { %v4821_v15 = vpop.eup %4820 }
 0x9f9   :  { %v2442_v13 = vadd.f32 1.0, %v4821_v15 }
 0x9fa   :  { %v4823_v19 = vpop.eup %4822 }
 0x9fb   :  { %4824 = vrcp.f32 %v2442_v13  ;;  %v2452_v33 = vadd.f32 1.0, %v4823_v19  ;;  %v8113_v19 = vld [vmem:[#allocation18_spill] sm:$0xff] }
 0x9fd   :  { %4826 = vrcp.f32 %v2452_v33  ;;  %v8111_v33 = vld [vmem:[#allocation23_spill] sm:$0xff] }
 0xa08   :  { %v4825_v3 = vpop.eup %4824 }
 0xa09   :  { %v2459_v32 = vmul.f32 %v4825_v3, %v2457_v1  ;;  %v8108_v1 = vld [vmem:[#allocation21_spill] sm:$0xff] }
 0xa0a   :  { %v4827_v30 = vpop.eup %4826 }
 0xa0b   :  { %v2460_v63 = vadd.f32 %v2459_v32, %v7125_v31  ;;  %v2462_v25 = vsub.f32 1.0, %v4827_v30  ;;  %v2467_v23 = vmul.f32 %v4827_v30, %v2465_v46  ;;  %v8107_v32 = vld [vmem:[#allocation20_spill] sm:$0xff] }
 0xa0c   :  { %v8109_v31 = vld [vmem:[#allocation24_spill] sm:$0xff] }
 0xa0d   :  { %4828 = vtanh.f32 %v2460_v63 }
 0xa1a   :  { %v4829_v61 = vpop.eup %4828 }
 0xa1b   :  { %v2463_v21 = vmul.f32 %v4829_v61, %v2462_v25  ;;  %v8117_v61 = vld [vmem:[#allocation30_spill] sm:$0xff] }
 0xa1d   :  { %v2468_v15 = vadd.f32 %v2467_v23, %v2463_v21  ;;  %v8118_v21 = vld [vmem:[#allocation22_spill] sm:$0xff] }
 0xa1e   :  { %v7284_v23 = vadd.f32 %v8118_v21, %v8117_v61 }
 0xa1f   :  { %2469 = vst [vmem:[#allocation3 + $0x10] sm:$0xf0] %v2468_v15  ;;  %v7206_v13 = vrot.slane %v2468_v15, 4 }
 0xa21   :  { %2538 = vmatmul.mubr.f32.vlgmr.msra.gmra.mxu0 %v7206_v13  ;;  %4506 = vmatmul.mubr.f32.vlgmr.msra.gmra.mxu1 %v7206_v13 }
 0xa22   :  { %2638 = vmatpush1.msra.mxu0 %v6699_v38  ;;  %4509 = vmatpush3.msra.mxu1 %v6876_v11 }
 0xa23   :  { %2639 = vmatprep.subr.mxu0 %v6705_v29  ;;  %4510 = vmatprep.subr.mxu1 %v8037_v4 }
 0xa24   :  { %2640 = vmatpush1.msra.mxu0 %v6711_v34  ;;  %4511 = vmatpush3.msra.mxu1 %v6891_v56 }
 0xa25   :  { %2641 = vmatprep.subr.mxu0 %v6717_v35  ;;  %4512 = vmatprep.subr.mxu1 %v8037_v4 }
 0xa26   :  { %2642 = vmatpush1.msra.mxu0 %v6723_v37  ;;  %4513 = vmatpush3.msra.mxu1 %v6896_v14 }
 0xa27   :  { %2643 = vmatprep.subr.mxu0 %v6729_v39  ;;  %4514 = vmatprep.subr.mxu1 %v8037_v4 }
 0xa28   :  { %2644 = vmatpush1.msra.mxu0 %v6735_v60  ;;  %4515 = vmatpush3.msra.mxu1 %v6904_v51 }
 0xa29   :  { %2645 = vmatprep.subr.mxu0 %v6741_v28  ;;  %4516 = vmatprep.subr.mxu1 %v8037_v4 }
 0xa2a   :  { %2646 = vmatpush1.msra.mxu0 %v6747_v5  ;;  %4517 = vmatpush3.msra.mxu1 %v6912_v44 }
 0xa2b   :  { %2647 = vmatprep.subr.mxu0 %v6753_v40  ;;  %4518 = vmatprep.subr.mxu1 %v8037_v4 }
 0xa2c   :  { %2648 = vmatpush1.msra.mxu0 %v6759_v6  ;;  %4519 = vmatpush3.msra.mxu1 %v6919_v41 }
 0xa2d   :  { %2649 = vmatprep.subr.mxu0 %v6765_v42  ;;  %4520 = vmatprep.subr.mxu1 %v8037_v4 }
 0xa2e   :  { %2650 = vmatpush1.msra.mxu0 %v6771_v43  ;;  %4521 = vmatpush3.msra.mxu1 %v6926_v62 }
 0xa2f   :  { %2651 = vmatprep.subr.mxu0 %v6777_v45  ;;  %4522 = vmatprep.subr.mxu1 %v8037_v4 }
 0xa30   :  { %2652 = vmatpush1.msra.mxu0 %v6783_v47  ;;  %4523 = vmatpush3.msra.mxu1 %v6933_v59 }
 0xa31   :  { %2653 = vmatprep.subr.mxu0 %v6789_v48  ;;  %4524 = vmatprep.subr.mxu1 %v8037_v4 }
 0xa32   :  { %2654 = vmatpush1.msra.mxu0 %v6795_v50  ;;  %4525 = vmatpush3.msra.mxu1 %v6940_v26 }
 0xa33   :  { %2655 = vmatprep.subr.mxu0 %v6801_v52  ;;  %4526 = vmatprep.subr.mxu1 %v8037_v4 }
 0xa34   :  { %2656 = vmatpush1.msra.mxu0 %v6807_v16  ;;  %4527 = vmatpush3.msra.mxu1 %v6947_v18 }
 0xa35   :  { %2657 = vmatprep.subr.mxu0 %v6812_v9  ;;  %4528 = vmatprep.subr.mxu1 %v8037_v4 }
 0xa36   :  { %2658 = vmatpush1.msra.mxu0 %v6817_v8  ;;  %4529 = vmatpush3.msra.mxu1 %v6954_v24 }
 0xa37   :  { %2659 = vmatprep.subr.mxu0 %v6823_v53  ;;  %4530 = vmatprep.subr.mxu1 %v8037_v4 }
 0xa38   :  { %2660 = vmatpush1.msra.mxu0 %v6829_v7  ;;  %4531 = vmatpush3.msra.mxu1 %v6961_v54 }
 0xa39   :  { %2661 = vmatprep.subr.mxu0 %v6835_v17  ;;  %4532 = vmatprep.subr.mxu1 %v8037_v4 }
 0xa3a   :  { %2662 = vmatpush1.msra.mxu0 %v6841_v55  ;;  %4533 = vmatpush3.msra.mxu1 %v6968_v12 }
 0xa3b   :  { %2663 = vmatprep.subr.mxu0 %v6847_v57  ;;  %4534 = vmatprep.subr.mxu1 %v8037_v4 }
 0xa3c   :  { %2664 = vmatpush1.msra.mxu0 %v6853_v10  ;;  %4535 = vmatpush3.msra.mxu1 %v6975_v20 }
 0xa3d   :  { %2665 = vmatprep.subr.mxu0 %v8107_v32  ;;  %4536 = vmatprep.subr.mxu1 %v8037_v4 }
 0xa3e   :  { %2666 = vmatpush1.msra.mxu0 %v8108_v1  ;;  %4537 = vmatpush3.msra.mxu1 %v8109_v31 }
 0xa3f   :  { %2667 = vmatprep.subr.mxu0 %v8110_v0  ;;  %4538 = vmatprep.subr.mxu1 %v8037_v4 }
 0xa40   :  { %2668 = vmatpush1.msra.mxu0 %v8111_v33  ;;  %2701 = vmatprep.mubr.f32.mxu0 %v8037_v4 }
 0xa41   :  { %4539 = vmatpush3.msra.mxu1 %v8112_v22  ;;  %4540 = vmatprep.mubr.msk.f32.mxu1 %vm5048_vm2, %v8037_v4 }
 0xa42   :  { %2816 = vmatprep.subr.mxu0 %v8113_v19  ;;  %4543 = vmatprep.subr.mxu1 %v8037_v4 }
 0xae1   :  { %v2539_v49 = vpop.f32.mrf.mxu0  ;;  %v2610_v3 = vpop.f32.mrf.mxu1 }
 0xae2   :  { %v2614_v63 = vadd.f32 %v2539_v49, %v7279_v27  ;;  %v2628_v0 = vadd.f32 %v7117_v58, %v2610_v3  ;;  %v7479_v3 = vld [vmem:[%s7942_s8 + $0x100] sm:$0xff] }
 0xae3   :  { %v4507_v30 = vpop.f32.mrf.mxu1  ;;  %v2541_v46 = vpop.f32.mrf.mxu0 }
 0xae4   :  { %v3744_v25 = vmul.f32 -1.442695, %v2614_v63  ;;  %v2621_v15 = vadd.f32 %v2541_v46, %v7284_v23  ;;  %v8119_v30 = vld [vmem:[#allocation32_spill] sm:$0xff]  ;;  %v8120_v63 = vld [vmem:[#allocation15_spill] sm:$0xff] }
 0xae5   :  { %v7290_v27 = vadd.f32 %v8120_v63, %v8119_v30  ;;  %v7504_v63 = vld [vmem:[%s7942_s8 + $0xc8] sm:$0xff] }
 0xae6   :  { %4830 = vpow2.f32 %v3744_v25  ;;  %v3745_v19 = vmul.f32 -1.442695, %v2621_v15 }
 0xae8   :  { %4832 = vpow2.f32 %v3745_v19 }
 0xaf3   :  { %v4831_v22 = vpop.eup %4830 }
 0xaf4   :  { %v2618_v33 = vadd.f32 1.0, %v4831_v22 }
 0xaf5   :  { %v4833_v36 = vpop.eup %4832 }
 0xaf6   :  { %4834 = vrcp.f32 %v2618_v33  ;;  %v2625_v2 = vadd.f32 1.0, %v4833_v36  ;;  %v7492_v36 = vld [vmem:[%s7942_s8 + $0xd8] sm:$0xff] }
 0xaf8   :  { %4836 = vrcp.f32 %v2625_v2  ;;  %v7466_v2 = vld [vmem:[%s7942_s8 + $0xf8] sm:$0xff] }
 0xb03   :  { %v4835_v49 = vpop.eup %4834 }
 0xb04   :  { %v2629_v31 = vmul.f32 %v4835_v49, %v2628_v0  ;;  %v7460_v0 = vld [vmem:[%s7942_s8 + $0x118] sm:$0xff]  ;;  %v7498_v49 = vld [vmem:[%s7942_s8 + $0xe8] sm:$0xff] }
 0xb05   :  { %v4837_v46 = vpop.eup %4836 }
 0xb06   :  { %v2630_v25 = vadd.f32 %v2629_v31, %v7290_v27  ;;  %v2632_v21 = vsub.f32 1.0, %v4837_v46  ;;  %v2634_v33 = vmul.f32 %v4837_v46, %v7206_v13  ;;  %v7435_v13 = vld [vmem:[%s7942_s8 + $0x120] sm:$0xff]  ;;  %v7454_v31 = vld [vmem:[%s7942_s8 + $0x108] sm:$0xff]  ;;  %v7517_v46 = vld [vmem:[%s7942_s8 + $0xd0] sm:$0xff] }
 0xb08   :  { %4838 = vtanh.f32 %v2630_v25  ;;  %v7511_v25 = vld [vmem:[%s7942_s8 + $0xc0] sm:$0xff] }
 0xb15   :  { %v4839_v15 = vpop.eup %4838 }
 0xb16   :  { %v2633_v19 = vmul.f32 %v4839_v15, %v2632_v21  ;;  %v7523_v21 = vld [vmem:[%s7942_s8 + $0xb0] sm:$0xff]  ;;  %v7530_v15 = vld [vmem:[%s7942_s8 + $0xa8] sm:$0xff] }
 0xb18   :  { %v7294_v22 = vadd.f32 %v2634_v33, %v2633_v19  ;;  %v7536_v19 = vld [vmem:[%s7942_s8 + $0xb8] sm:$0xff] }
 0xb19   :  { %v7542_v33 = vld [vmem:[%s7942_s8 + $0x98] sm:$0xff] }
 0xb1a   :  { %2636 = vst [vmem:[#allocation3] sm:$0xf] %v7294_v22  ;;  %2702 = vmatmul.mubr.f32.vlgmr.msra.gmra.mxu0 %v7294_v22  ;;  %4541 = vmatmul.mubr.f32.vlgmr.msra.gmra.mxu1 %v7294_v22 }
 0xb1b   :  { %2817 = vmatpush1.msra.mxu0 %v6699_v38  ;;  %4544 = vmatpush3.msra.mxu1 %v6876_v11  ;;  %v8121_v38 = vld [vmem:[#allocation24_spill] sm:$0xff]  ;;  %v2808_v11 = vrot.slane %v7294_v22, 4  ;;  %v7549_v22 = vld [vmem:[%s7942_s8 + $0x90] sm:$0xff] }
 0xb1c   :  { %2818 = vmatprep.subr.mxu0 %v6705_v29  ;;  %4545 = vmatprep.subr.mxu1 %v8037_v4  ;;  %v8122_v29 = vld [vmem:[#allocation27_spill] sm:$0xff] }
 0xb1d   :  { %2819 = vmatpush1.msra.mxu0 %v6711_v34  ;;  %4546 = vmatpush3.msra.mxu1 %v6891_v56  ;;  %v8123_v34 = vld [vmem:[#allocation23_spill] sm:$0xff] }
 0xb1e   :  { %2820 = vmatprep.subr.mxu0 %v6717_v35  ;;  %4547 = vmatprep.subr.mxu1 %v8037_v4  ;;  %v8124_v35 = vld [vmem:[#allocation29_spill] sm:$0xff] }
 0xb1f   :  { %2821 = vmatpush1.msra.mxu0 %v6723_v37  ;;  %4548 = vmatpush3.msra.mxu1 %v6896_v14  ;;  %v7367_v37 = vld [vmem:[%s7942_s8 + $0x170] sm:$0xff] }
 0xb20   :  { %2822 = vmatprep.subr.mxu0 %v6729_v39  ;;  %4549 = vmatprep.subr.mxu1 %v8037_v4  ;;  %8125 = vst [vmem:[#allocation20_spill] sm:$0xff] %v7367_v37 }
 0xb21   :  { %2823 = vmatpush1.msra.mxu0 %v6735_v60  ;;  %4550 = vmatpush3.msra.mxu1 %v6904_v51 }
 0xb22   :  { %2824 = vmatprep.subr.mxu0 %v6741_v28  ;;  %4551 = vmatprep.subr.mxu1 %v8037_v4 }
 0xb23   :  { %2825 = vmatpush1.msra.mxu0 %v6747_v5  ;;  %4552 = vmatpush3.msra.mxu1 %v6912_v44 }
 0xb24   :  { %2826 = vmatprep.subr.mxu0 %v6753_v40  ;;  %4553 = vmatprep.subr.mxu1 %v8037_v4 }
 0xb25   :  { %2827 = vmatpush1.msra.mxu0 %v6759_v6  ;;  %4554 = vmatpush3.msra.mxu1 %v6919_v41  ;;  %v8126_v6 = vld [vmem:[#allocation31_spill] sm:$0xff] }
 0xb26   :  { %2828 = vmatprep.subr.mxu0 %v6765_v42  ;;  %4555 = vmatprep.subr.mxu1 %v8037_v4 }
 0xb27   :  { %2829 = vmatpush1.msra.mxu0 %v6771_v43  ;;  %4556 = vmatpush3.msra.mxu1 %v6926_v62 }
 0xb28   :  { %2830 = vmatprep.subr.mxu0 %v6777_v45  ;;  %4557 = vmatprep.subr.mxu1 %v8037_v4 }
 0xb29   :  { %2831 = vmatpush1.msra.mxu0 %v6783_v47  ;;  %4558 = vmatpush3.msra.mxu1 %v6933_v59  ;;  %v7383_v59 = vld [vmem:[%s7942_s8 + $0x168] sm:$0xff] }
 0xb2a   :  { %2832 = vmatprep.subr.mxu0 %v6789_v48  ;;  %4559 = vmatprep.subr.mxu1 %v8037_v4 }
 0xb2b   :  { %2833 = vmatpush1.msra.mxu0 %v6795_v50  ;;  %4560 = vmatpush3.msra.mxu1 %v6940_v26  ;;  %v7389_v26 = vld [vmem:[%s7942_s8 + $0x178] sm:$0xff] }
 0xb2c   :  { %2834 = vmatprep.subr.mxu0 %v6801_v52  ;;  %4561 = vmatprep.subr.mxu1 %v8037_v4 }
 0xb2d   :  { %2835 = vmatpush1.msra.mxu0 %v6807_v16  ;;  %4562 = vmatpush3.msra.mxu1 %v6947_v18  ;;  %v7395_v18 = vld [vmem:[%s7942_s8 + $0x158] sm:$0xff] }
 0xb2e   :  { %2836 = vmatprep.subr.mxu0 %v6812_v9  ;;  %4563 = vmatprep.subr.mxu1 %v8037_v4 }
 0xb2f   :  { %2837 = vmatpush1.msra.mxu0 %v6817_v8  ;;  %4564 = vmatpush3.msra.mxu1 %v6954_v24  ;;  %v7402_v24 = vld [vmem:[%s7942_s8 + $0x150] sm:$0xff] }
 0xb30   :  { %2838 = vmatprep.subr.mxu0 %v6823_v53  ;;  %4565 = vmatprep.subr.mxu1 %v8037_v4 }
 0xb31   :  { %2839 = vmatpush1.msra.mxu0 %v6829_v7  ;;  %4566 = vmatpush3.msra.mxu1 %v6961_v54  ;;  %v7409_v54 = vld [vmem:[%s7942_s8 + $0x140] sm:$0xff] }
 0xb32   :  { %2840 = vmatprep.subr.mxu0 %v6835_v17  ;;  %4567 = vmatprep.subr.mxu1 %v8037_v4 }
 0xb33   :  { %2841 = vmatpush1.msra.mxu0 %v6841_v55  ;;  %4568 = vmatpush3.msra.mxu1 %v6968_v12  ;;  %v7416_v12 = vld [vmem:[%s7942_s8 + $0x138] sm:$0xff] }
 0xb34   :  { %2842 = vmatprep.subr.mxu0 %v6847_v57  ;;  %4569 = vmatprep.subr.mxu1 %v8037_v4 }
 0xb35   :  { %2843 = vmatpush1.msra.mxu0 %v6853_v10  ;;  %4570 = vmatpush3.msra.mxu1 %v6975_v20  ;;  %v7428_v20 = vld [vmem:[%s7942_s8 + $0x128] sm:$0xff] }
 0xb36   :  { %2844 = vmatprep.subr.mxu0 %v8107_v32  ;;  %4571 = vmatprep.subr.mxu1 %v8037_v4  ;;  %v7441_v32 = vld [vmem:[%s7942_s8 + $0x130] sm:$0xff] }
 0xb37   :  { %2845 = vmatpush1.msra.mxu0 %v8108_v1  ;;  %4572 = vmatpush3.msra.mxu1 %v8121_v38  ;;  %v7447_v1 = vld [vmem:[%s7942_s8 + $0x110] sm:$0xff]  ;;  %v7555_v38 = vld [vmem:[%s7942_s8 + $0xa0] sm:$0xff] }
 0xb38   :  { %2846 = vmatprep.subr.mxu0 %v8122_v29  ;;  %4573 = vmatprep.subr.mxu1 %v8037_v4  ;;  %v7561_v29 = vld [vmem:[%s7942_s8 + $0x80] sm:$0xff] }
 0xb39   :  { %2847 = vmatpush1.msra.mxu0 %v8123_v34  ;;  %2880 = vmatprep.mubr.f32.mxu0 %v8037_v4  ;;  %v7568_v34 = vld [vmem:[%s7942_s8 + $0x78] sm:$0xff] }
 0xb3a   :  { %4574 = vmatpush3.msra.mxu1 %v8124_v35  ;;  %4575 = vmatprep.mubr.msk.f32.mxu1 %vm5048_vm2, %v8037_v4  ;;  %v7574_v35 = vld [vmem:[%s7942_s8 + $0x88] sm:$0xff] }
 0xb3b   :  { %2980 = vmatprep.subr.mxu0 %v7367_v37  ;;  %4578 = vmatprep.subr.mxu1 %v8037_v4 }
 0xbda   :  { %v2703_v39 = vpop.f32.mrf.mxu0  ;;  %v2774_v60 = vpop.f32.mrf.mxu1 }
 0xbdb   :  { %v2779_v28 = vrot.slane %v2703_v39, 4  ;;  %v2798_v9 = vadd.f32 %v7117_v58, %v2774_v60  ;;  %v7580_v39 = vld [vmem:[%s7942_s8 + $0x68] sm:$0xff]  ;;  %v7587_v60 = vld [vmem:[%s7942_s8 + $0x60] sm:$0xff] }
 0xbdc   :  { %v2705_v5 = vpop.f32.mrf.mxu0  ;;  %v4542_v40 = vpop.f32.mrf.mxu1 }
 0xbdd   :  { %v2781_v42 = vadd.f32 %v2779_v28, %v8126_v6  ;;  %v2789_v45 = vrot.slane %v2705_v5, 4  ;;  %v2800_v53 = vrot.slane %v2798_v9, 4  ;;  %v7593_v28 = vld [vmem:[%s7942_s8 + $0x70] sm:$0xff]  ;;  %v7606_v40 = vld [vmem:[%s7942_s8 + $0x48] sm:$0xff]  ;;  %v7612_v6 = vld [vmem:[%s7942_s8 + $0x58] sm:$0xff] }
 0xbde   :  { %v7599_v5 = vld [vmem:[%s7942_s8 + $0x50] sm:$0xff] }
 0xbdf   :  { %v3746_v43 = vmul.f32 -1.442695, %v2781_v42  ;;  %v2791_v47 = vadd.f32 %v2789_v45, %v7284_v23  ;;  %v7485_v23 = vld [vmem:[%s7942_s8 + $0xe0] sm:$0xff]  ;;  %v7618_v42 = vld [vmem:[%s7942_s8 + $0x38] sm:$0xff]  ;;  %v7670_v9 = vld [vmem:[%s7942_s8 + $0x10] sm:$0xff] }
 0xbe0   :  { %v7631_v45 = vld [vmem:[%s7942_s8 + $0x40] sm:$0xff]  ;;  %8132 = vst [vmem:[#allocation24_spill] sm:$0xff] %v7670_v9 }
 0xbe1   :  { %4840 = vpow2.f32 %v3746_v43  ;;  %v3747_v48 = vmul.f32 -1.442695, %v2791_v47  ;;  %v7625_v43 = vld [vmem:[%s7942_s8 + $0x30] sm:$0xff]  ;;  %v7637_v47 = vld [vmem:[%s7942_s8 + $0x20] sm:$0xff] }
 0xbe2   :  { %8127 = vst [vmem:[#allocation21_spill] sm:$0xff] %v7637_v47 }
 0xbe3   :  { %4842 = vpow2.f32 %v3747_v48  ;;  %v7644_v48 = vld [vmem:[%s7942_s8 + $0x18] sm:$0xff] }
 0xbe4   :  { %8128 = vst [vmem:[#allocation18_spill] sm:$0xff] %v7644_v48 }
 0xbee   :  { %v4841_v50 = vpop.eup %4840 }
 0xbef   :  { %v2785_v52 = vadd.f32 1.0, %v4841_v50  ;;  %v7650_v50 = vld [vmem:[%s7942_s8 + $0x28] sm:$0xff] }
 0xbf0   :  { %v4843_v16 = vpop.eup %4842  ;;  %8129 = vst [vmem:[#allocation13_spill] sm:$0xff] %v7650_v50 }
 0xbf1   :  { %4844 = vrcp.f32 %v2785_v52  ;;  %v2795_v8 = vadd.f32 1.0, %v4843_v16  ;;  %v7656_v52 = vld [vmem:[%s7942_s8 + $0x8] sm:$0xff]  ;;  %v7663_v16 = vld [vmem:[%s7942_s8] sm:$0xff] }
 0xbf2   :  { %8130 = vst [vmem:[#allocation22_spill] sm:$0xff] %v7656_v52  ;;  %8131 = vst [vmem:[#allocation15_spill] sm:$0xff] %v7663_v16 }
 0xbf3   :  { %4846 = vrcp.f32 %v2795_v8  ;;  %v8133_v8 = vld [vmem:[#allocation16_spill] sm:$0xff] }
 0xbfe   :  { %v4845_v7 = vpop.eup %4844 }
 0xbff   :  { %v2802_v17 = vmul.f32 %v4845_v7, %v2800_v53  ;;  %v8134_v53 = vld [vmem:[#allocation14_spill] sm:$0xff] }
 0xc00   :  { %v4847_v57 = vpop.eup %4846  ;;  %v7679_v7 = vadd.f32 %v8134_v53, %v8133_v8 }
 0xc01   :  { %v2803_v55 = vadd.f32 %v2802_v17, %v7290_v27  ;;  %v2805_v10 = vsub.f32 1.0, %v4847_v57  ;;  %v2810_v44 = vmul.f32 %v4847_v57, %v2808_v11  ;;  %v7473_v27 = vld [vmem:[%s7942_s8 + $0xf0] sm:$0xff] }
 0xc02   :  { %8135 = vst [vmem:[#allocation27_spill] sm:$0xff] %v7679_v7 }
 0xc03   :  { %4848 = vtanh.f32 %v2803_v55 }
 0xc10   :  { %v4849_v14 = vpop.eup %4848 }
 0xc11   :  { %v2806_v51 = vmul.f32 %v4849_v14, %v2805_v10 }
 0xc13   :  { %v2811_v41 = vadd.f32 %v2810_v44, %v2806_v51  ;;  %v8136_v51 = vld [vmem:[#allocation17_spill] sm:$0xff] }
 0xc14   :  { %v7684_v44 = vadd.f32 %v8136_v51, %v8117_v61 }
 0xc15   :  { %2812 = vst [vmem:[#allocation3] sm:$0xf0] %v2811_v41  ;;  %v7376_v62 = vrot.slane %v2811_v41, 4 }
 0xc17   :  { %2881 = vmatmul.mubr.f32.vlgmr.msra.gmra.mxu0 %v7376_v62  ;;  %4576 = vmatmul.mubr.f32.vlgmr.msra.gmra.mxu1 %v7376_v62 }
 0xc18   :  { %2981 = vmatpush1.msra.mxu0 %v7383_v59  ;;  %4579 = vmatpush3.msra.mxu1 %v7389_v26 }
 0xc19   :  { %2982 = vmatprep.subr.mxu0 %v7395_v18  ;;  %4580 = vmatprep.subr.mxu1 %v8037_v4 }
 0xc1a   :  { %2983 = vmatpush1.msra.mxu0 %v7402_v24  ;;  %4581 = vmatpush3.msra.mxu1 %v6891_v56  ;;  %v7422_v56 = vld [vmem:[%s7942_s8 + $0x148] sm:$0xff] }
 0xc1b   :  { %2984 = vmatprep.subr.mxu0 %v7409_v54  ;;  %4582 = vmatprep.subr.mxu1 %v8037_v4 }
 0xc1c   :  { %2985 = vmatpush1.msra.mxu0 %v7416_v12  ;;  %4583 = vmatpush3.msra.mxu1 %v7422_v56 }
 0xc1d   :  { %2986 = vmatprep.subr.mxu0 %v7428_v20  ;;  %4584 = vmatprep.subr.mxu1 %v8037_v4 }
 0xc1e   :  { %2987 = vmatpush1.msra.mxu0 %v7435_v13  ;;  %4585 = vmatpush3.msra.mxu1 %v7441_v32 }
 0xc1f   :  { %2988 = vmatprep.subr.mxu0 %v7447_v1  ;;  %4586 = vmatprep.subr.mxu1 %v8037_v4 }
 0xc20   :  { %2989 = vmatpush1.msra.mxu0 %v7454_v31  ;;  %4587 = vmatpush3.msra.mxu1 %v7460_v0 }
 0xc21   :  { %2990 = vmatprep.subr.mxu0 %v7466_v2  ;;  %4588 = vmatprep.subr.mxu1 %v8037_v4 }
 0xc22   :  { %2991 = vmatpush1.msra.mxu0 %v7473_v27  ;;  %4589 = vmatpush3.msra.mxu1 %v7479_v3 }
 0xc23   :  { %2992 = vmatprep.subr.mxu0 %v7485_v23  ;;  %4590 = vmatprep.subr.mxu1 %v8037_v4 }
 0xc24   :  { %2993 = vmatpush1.msra.mxu0 %v7492_v36  ;;  %4591 = vmatpush3.msra.mxu1 %v7498_v49 }
 0xc25   :  { %2994 = vmatprep.subr.mxu0 %v7504_v63  ;;  %4592 = vmatprep.subr.mxu1 %v8037_v4 }
 0xc26   :  { %2995 = vmatpush1.msra.mxu0 %v7511_v25  ;;  %4593 = vmatpush3.msra.mxu1 %v7517_v46 }
 0xc27   :  { %2996 = vmatprep.subr.mxu0 %v7523_v21  ;;  %4594 = vmatprep.subr.mxu1 %v8037_v4 }
 0xc28   :  { %2997 = vmatpush1.msra.mxu0 %v7530_v15  ;;  %4595 = vmatpush3.msra.mxu1 %v7536_v19 }
 0xc29   :  { %2998 = vmatprep.subr.mxu0 %v7542_v33  ;;  %4596 = vmatprep.subr.mxu1 %v8037_v4 }
 0xc2a   :  { %2999 = vmatpush1.msra.mxu0 %v7549_v22  ;;  %4597 = vmatpush3.msra.mxu1 %v7555_v38 }
 0xc2b   :  { %3000 = vmatprep.subr.mxu0 %v7561_v29  ;;  %4598 = vmatprep.subr.mxu1 %v8037_v4 }
 0xc2c   :  { %3001 = vmatpush1.msra.mxu0 %v7568_v34  ;;  %4599 = vmatpush3.msra.mxu1 %v7574_v35 }
 0xc2d   :  { %3002 = vmatprep.subr.mxu0 %v7580_v39  ;;  %4600 = vmatprep.subr.mxu1 %v8037_v4 }
 0xc2e   :  { %3003 = vmatpush1.msra.mxu0 %v7587_v60  ;;  %4601 = vmatpush3.msra.mxu1 %v7593_v28 }
 0xc2f   :  { %3004 = vmatprep.subr.mxu0 %v7599_v5  ;;  %4602 = vmatprep.subr.mxu1 %v8037_v4 }
 0xc30   :  { %3005 = vmatpush1.msra.mxu0 %v7606_v40  ;;  %4603 = vmatpush3.msra.mxu1 %v7612_v6 }
 0xc31   :  { %3006 = vmatprep.subr.mxu0 %v7618_v42  ;;  %4604 = vmatprep.subr.mxu1 %v8037_v4 }
 0xc32   :  { %3007 = vmatpush1.msra.mxu0 %v7625_v43  ;;  %4605 = vmatpush3.msra.mxu1 %v7631_v45 }
 0xc33   :  { %3008 = vmatprep.subr.mxu0 %v7637_v47  ;;  %4606 = vmatprep.subr.mxu1 %v8037_v4 }
 0xc34   :  { %3009 = vmatpush1.msra.mxu0 %v7644_v48  ;;  %4607 = vmatpush3.msra.mxu1 %v7650_v50 }
 0xc35   :  { %3010 = vmatprep.subr.mxu0 %v7656_v52  ;;  %4608 = vmatprep.subr.mxu1 %v8037_v4 }
 0xc36   :  { %3011 = vmatpush1.msra.mxu0 %v7663_v16  ;;  %3044 = vmatprep.mubr.f32.mxu0 %v8037_v4 }
 0xc37   :  { %4609 = vmatpush3.msra.mxu1 %v7670_v9  ;;  %4610 = vmatprep.mubr.msk.f32.mxu1 %vm5048_vm2, %v8037_v4 }
 0xc38   :  { %3159 = vmatprep.subr.mxu0 %v7367_v37  ;;  %4613 = vmatprep.subr.mxu1 %v8037_v4 }
 0xcd7   :  { %v2882_v17 = vpop.f32.mrf.mxu0  ;;  %v2953_v55 = vpop.f32.mrf.mxu1 }
 0xcd8   :  { %v2957_v57 = vadd.f32 %v2882_v17, %v7679_v7  ;;  %v2971_v52 = vadd.f32 %v7117_v58, %v2953_v55  ;;  %v8141_v55 = vld [vmem:[#allocation20_spill] sm:$0xff] }
 0xcd9   :  { %v4577_v10 = vpop.f32.mrf.mxu1  ;;  %v2884_v14 = vpop.f32.mrf.mxu0 }
 0xcda   :  { %v3748_v11 = vmul.f32 -1.442695, %v2957_v57  ;;  %v2964_v41 = vadd.f32 %v2884_v14, %v7684_v44  ;;  %v8137_v57 = vld [vmem:[#allocation19_spill] sm:$0xff] }
 0xcdb   :  { %v7690_v10 = vadd.f32 %v8137_v57, %v8119_v30 }
 0xcdc   :  { %4850 = vpow2.f32 %v3748_v11  ;;  %v3749_v37 = vmul.f32 -1.442695, %v2964_v41 }
 0xcde   :  { %4852 = vpow2.f32 %v3749_v37 }
 0xce9   :  { %v4851_v9 = vpop.eup %4850 }
 0xcea   :  { %v2961_v16 = vadd.f32 1.0, %v4851_v9 }
 0xceb   :  { %v4853_v53 = vpop.eup %4852 }
 0xcec   :  { %4854 = vrcp.f32 %v2961_v16  ;;  %v2968_v8 = vadd.f32 1.0, %v4853_v53 }
 0xcee   :  { %4856 = vrcp.f32 %v2968_v8  ;;  %v8139_v8 = vld [vmem:[#allocation15_spill] sm:$0xff] }
 0xcf9   :  { %v4855_v17 = vpop.eup %4854 }
 0xcfa   :  { %v2972_v7 = vmul.f32 %v4855_v17, %v2971_v52  ;;  %v8138_v52 = vld [vmem:[#allocation22_spill] sm:$0xff] }
 0xcfb   :  { %v4857_v14 = vpop.eup %4856 }
 0xcfc   :  { %v2973_v11 = vadd.f32 %v2972_v7, %v7690_v10  ;;  %v2975_v51 = vsub.f32 1.0, %v4857_v14  ;;  %v2977_v16 = vmul.f32 %v4857_v14, %v7376_v62  ;;  %v7707_v62 = vld [vmem:[%s7942_s8 + $0x160] sm:$0xff] }
 0xcfd   :  { %v8140_v7 = vld [vmem:[#allocation24_spill] sm:$0xff] }
 0xcfe   :  { %4858 = vtanh.f32 %v2973_v11 }
 0xd0b   :  { %v4859_v37 = vpop.eup %4858 }
 0xd0c   :  { %v2976_v41 = vmul.f32 %v4859_v37, %v2975_v51  ;;  %v8142_v51 = vld [vmem:[#allocation27_spill] sm:$0xff] }
 0xd0e   :  { %v7694_v9 = vadd.f32 %v2977_v16, %v2976_v41 }
 0xd10   :  { %2979 = vst [vmem:[#allocation3 + $0x18] sm:$0xf] %v7694_v9  ;;  %3045 = vmatmul.mubr.f32.vlgmr.msra.gmra.mxu0 %v7694_v9  ;;  %4611 = vmatmul.mubr.f32.vlgmr.msra.gmra.mxu1 %v7694_v9 }
 0xd11   :  { %3160 = vmatpush1.msra.mxu0 %v7383_v59  ;;  %4614 = vmatpush3.msra.mxu1 %v7389_v26 }
 0xd12   :  { %3161 = vmatprep.subr.mxu0 %v7395_v18  ;;  %4615 = vmatprep.subr.mxu1 %v8037_v4 }
 0xd13   :  { %3162 = vmatpush1.msra.mxu0 %v7402_v24  ;;  %4616 = vmatpush3.msra.mxu1 %v7707_v62 }
 0xd14   :  { %3163 = vmatprep.subr.mxu0 %v7409_v54  ;;  %4617 = vmatprep.subr.mxu1 %v8037_v4 }
 0xd15   :  { %3164 = vmatpush1.msra.mxu0 %v7416_v12  ;;  %4618 = vmatpush3.msra.mxu1 %v7422_v56 }
 0xd16   :  { %3165 = vmatprep.subr.mxu0 %v7428_v20  ;;  %4619 = vmatprep.subr.mxu1 %v8037_v4 }
 0xd17   :  { %3166 = vmatpush1.msra.mxu0 %v7435_v13  ;;  %4620 = vmatpush3.msra.mxu1 %v7441_v32 }
 0xd18   :  { %3167 = vmatprep.subr.mxu0 %v7447_v1  ;;  %4621 = vmatprep.subr.mxu1 %v8037_v4 }
 0xd19   :  { %3168 = vmatpush1.msra.mxu0 %v7454_v31  ;;  %4622 = vmatpush3.msra.mxu1 %v7460_v0 }
 0xd1a   :  { %3169 = vmatprep.subr.mxu0 %v7466_v2  ;;  %4623 = vmatprep.subr.mxu1 %v8037_v4 }
 0xd1b   :  { %3170 = vmatpush1.msra.mxu0 %v7473_v27  ;;  %4624 = vmatpush3.msra.mxu1 %v7479_v3 }
 0xd1c   :  { %3171 = vmatprep.subr.mxu0 %v7485_v23  ;;  %4625 = vmatprep.subr.mxu1 %v8037_v4 }
 0xd1d   :  { %3172 = vmatpush1.msra.mxu0 %v7492_v36  ;;  %4626 = vmatpush3.msra.mxu1 %v7498_v49 }
 0xd1e   :  { %3173 = vmatprep.subr.mxu0 %v7504_v63  ;;  %4627 = vmatprep.subr.mxu1 %v8037_v4 }
 0xd1f   :  { %3174 = vmatpush1.msra.mxu0 %v7511_v25  ;;  %4628 = vmatpush3.msra.mxu1 %v7517_v46 }
 0xd20   :  { %3175 = vmatprep.subr.mxu0 %v7523_v21  ;;  %4629 = vmatprep.subr.mxu1 %v8037_v4 }
 0xd21   :  { %3176 = vmatpush1.msra.mxu0 %v7530_v15  ;;  %4630 = vmatpush3.msra.mxu1 %v7536_v19 }
 0xd22   :  { %3177 = vmatprep.subr.mxu0 %v7542_v33  ;;  %4631 = vmatprep.subr.mxu1 %v8037_v4 }
 0xd23   :  { %3178 = vmatpush1.msra.mxu0 %v7549_v22  ;;  %4632 = vmatpush3.msra.mxu1 %v7555_v38 }
 0xd24   :  { %3179 = vmatprep.subr.mxu0 %v7561_v29  ;;  %4633 = vmatprep.subr.mxu1 %v8037_v4 }
 0xd25   :  { %3180 = vmatpush1.msra.mxu0 %v7568_v34  ;;  %4634 = vmatpush3.msra.mxu1 %v7574_v35 }
 0xd26   :  { %3181 = vmatprep.subr.mxu0 %v7580_v39  ;;  %4635 = vmatprep.subr.mxu1 %v8037_v4 }
 0xd27   :  { %3182 = vmatpush1.msra.mxu0 %v7587_v60  ;;  %4636 = vmatpush3.msra.mxu1 %v7593_v28 }
 0xd28   :  { %3183 = vmatprep.subr.mxu0 %v7599_v5  ;;  %4637 = vmatprep.subr.mxu1 %v8037_v4 }
 0xd29   :  { %3184 = vmatpush1.msra.mxu0 %v7606_v40  ;;  %4638 = vmatpush3.msra.mxu1 %v7612_v6 }
 0xd2a   :  { %3185 = vmatprep.subr.mxu0 %v7618_v42  ;;  %4639 = vmatprep.subr.mxu1 %v8037_v4 }
 0xd2b   :  { %3186 = vmatpush1.msra.mxu0 %v7625_v43  ;;  %4640 = vmatpush3.msra.mxu1 %v7631_v45 }
 0xd2c   :  { %3187 = vmatprep.subr.mxu0 %v7637_v47  ;;  %4641 = vmatprep.subr.mxu1 %v8037_v4 }
 0xd2d   :  { %3188 = vmatpush1.msra.mxu0 %v7644_v48  ;;  %4642 = vmatpush3.msra.mxu1 %v7650_v50 }
 0xd2e   :  { %3189 = vmatprep.subr.mxu0 %v8138_v52  ;;  %4643 = vmatprep.subr.mxu1 %v8037_v4 }
 0xd2f   :  { %3190 = vmatpush1.msra.mxu0 %v8139_v8  ;;  %3223 = vmatprep.mubr.f32.mxu0 %v8037_v4 }
 0xd30   :  { %4644 = vmatpush3.msra.mxu1 %v8140_v7  ;;  %4645 = vmatprep.mubr.msk.f32.mxu1 %vm5048_vm2, %v8037_v4 }
 0xd31   :  { %3323 = vmatprep.subr.mxu0 %v8141_v55  ;;  %4648 = vmatprep.subr.mxu1 %v8037_v4 }
 0xdd0   :  { %v3046_v53 = vpop.f32.mrf.mxu0  ;;  %v3117_v17 = vpop.f32.mrf.mxu1 }
 0xdd1   :  { %v3122_v57 = vrot.slane %v3046_v53, 4  ;;  %v3141_v52 = vadd.f32 %v7117_v58, %v3117_v17  ;;  %v8143_v58 = vld [vmem:[#allocation21_spill] sm:$0xff] }
 0xdd2   :  { %v3048_v11 = vpop.f32.mrf.mxu0  ;;  %v4612_v14 = vpop.f32.mrf.mxu1  ;;  %v3510_v17 = vld [vmem:[%s7945_s11 + $0x28] sm:$0xff] }
 0xdd3   :  { %v3124_v37 = vadd.f32 %v3122_v57, %v8142_v51  ;;  %v3132_v16 = vrot.slane %v3048_v11, 4  ;;  %v3143_v48 = vrot.slane %v3141_v52, 4  ;;  %v3511_v52 = vld [vmem:[%s7945_s11 + $0x30] sm:$0xff] }
 0xdd5   :  { %v3750_v41 = vmul.f32 -1.442695, %v3124_v37  ;;  %v3134_v30 = vadd.f32 %v3132_v16, %v7684_v44  ;;  %v3151_v44 = vrot.slane %v7694_v9, 4  ;;  %v3513_v9 = vld [vmem:[%s7945_s11 + $0x40] sm:$0xff]  ;;  %v3507_v16 = vld [vmem:[%s7945_s11 + $0x10] sm:$0xff] }
 0xdd6   :  { %v3509_v37 = vld [vmem:[%s7945_s11 + $0x20] sm:$0xff] }
 0xdd7   :  { %4860 = vpow2.f32 %v3750_v41  ;;  %v3751_v61 = vmul.f32 -1.442695, %v3134_v30  ;;  %v3508_v41 = vld [vmem:[%s7945_s11 + $0x18] sm:$0xff] }
 0xdd9   :  { %4862 = vpow2.f32 %v3751_v61 }
 0xde4   :  { %v4861_v7 = vpop.eup %4860 }
 0xde5   :  { %v3128_v8 = vadd.f32 1.0, %v4861_v7 }
 0xde6   :  { %v4863_v55 = vpop.eup %4862 }
 0xde7   :  { %4864 = vrcp.f32 %v3128_v8  ;;  %v3138_v50 = vadd.f32 1.0, %v4863_v55  ;;  %v3506_v55 = vld [vmem:[%s7945_s11 + $0x8] sm:$0xff] }
 0xde9   :  { %4866 = vrcp.f32 %v3138_v50  ;;  %v3515_v50 = vld [vmem:[%s7945_s11 + $0x50] sm:$0xff] }
 0xdf4   :  { %v4865_v53 = vpop.eup %4864 }
 0xdf5   :  { %v3145_v47 = vmul.f32 %v4865_v53, %v3143_v48  ;;  %v3516_v48 = vld [vmem:[%s7945_s11 + $0x58] sm:$0xff]  ;;  %v3505_v53 = vld [vmem:[%s7945_s11] sm:$0xff] }
 0xdf6   :  { %v4867_v11 = vpop.eup %4866 }
 0xdf7   :  { %v3146_v57 = vadd.f32 %v3145_v47, %v7690_v10  ;;  %v3148_v14 = vsub.f32 1.0, %v4867_v11  ;;  %v3153_v51 = vmul.f32 %v4867_v11, %v3151_v44  ;;  %v3517_v47 = vld [vmem:[%s7945_s11 + $0x60] sm:$0xff]  ;;  %v3514_v10 = vld [vmem:[%s7945_s11 + $0x48] sm:$0xff] }
 0xdf9   :  { %4868 = vtanh.f32 %v3146_v57  ;;  %v3502_v57 = vld [vmem:[#allocation3] sm:$0xff] }
 0xe06   :  { %v4869_v30 = vpop.eup %4868 }
 0xe07   :  { %v3149_v61 = vmul.f32 %v4869_v30, %v3148_v14 }
 0xe09   :  { %v3154_v7 = vadd.f32 %v3153_v51, %v3149_v61 }
 0xe0b   :  { %3155 = vst [vmem:[#allocation3 + $0x18] sm:$0xf0] %v3154_v7  ;;  %v7776_v8 = vrot.slane %v3154_v7, 4 }
 0xe0d   :  { %3224 = vmatmul.mubr.f32.vlgmr.msra.gmra.mxu0 %v7776_v8  ;;  %4646 = vmatmul.mubr.f32.vlgmr.msra.gmra.mxu1 %v7776_v8 }
 0xe0e   :  { %3324 = vmatpush1.msra.mxu0 %v7383_v59  ;;  %4649 = vmatpush3.msra.mxu1 %v7389_v26  ;;  %v8144_v59 = vld [vmem:[#allocation18_spill] sm:$0xff]  ;;  %v8145_v26 = vld [vmem:[#allocation13_spill] sm:$0xff] }
 0xe0f   :  { %3325 = vmatprep.subr.mxu0 %v7395_v18  ;;  %4650 = vmatprep.subr.mxu1 %v8037_v4  ;;  %v8146_v18 = vld [vmem:[#allocation22_spill] sm:$0xff] }
 0xe10   :  { %3326 = vmatpush1.msra.mxu0 %v7402_v24  ;;  %4651 = vmatpush3.msra.mxu1 %v7707_v62  ;;  %v8147_v24 = vld [vmem:[#allocation15_spill] sm:$0xff] }
 0xe11   :  { %3327 = vmatprep.subr.mxu0 %v7409_v54  ;;  %4652 = vmatprep.subr.mxu1 %v8037_v4  ;;  %v8148_v54 = vld [vmem:[#allocation24_spill] sm:$0xff]  ;;  %v3512_v62 = vld [vmem:[%s7945_s11 + $0x38] sm:$0xff] }
 0xe12   :  { %3328 = vmatpush1.msra.mxu0 %v7416_v12  ;;  %4653 = vmatpush3.msra.mxu1 %v7422_v56  ;;  %v3520_v12 = vld [vmem:[%s7945_s11 + $0x78] sm:$0xff]  ;;  %v8149_v56 = vld [vmem:[#allocation16_spill] sm:$0xff] }
 0xe13   :  { %3329 = vmatprep.subr.mxu0 %v7428_v20  ;;  %4654 = vmatprep.subr.mxu1 %v8037_v4  ;;  %v8150_v20 = vld [vmem:[#allocation25_spill] sm:$0xff]  ;;  %v3503_v11 = vld [vmem:[#allocation3 + $0x18] sm:$0xff] }
 0xe14   :  { %3330 = vmatpush1.msra.mxu0 %v7435_v13  ;;  %4655 = vmatpush3.msra.mxu1 %v7441_v32  ;;  %v7850_v13 = vadd.f32 %v8150_v20, %v8149_v56 }
 0xe15   :  { %3331 = vmatprep.subr.mxu0 %v7447_v1  ;;  %4656 = vmatprep.subr.mxu1 %v8037_v4 }
 0xe16   :  { %3332 = vmatpush1.msra.mxu0 %v7454_v31  ;;  %4657 = vmatpush3.msra.mxu1 %v7460_v0 }
 0xe17   :  { %3333 = vmatprep.subr.mxu0 %v7466_v2  ;;  %4658 = vmatprep.subr.mxu1 %v8037_v4 }
 0xe18   :  { %3334 = vmatpush1.msra.mxu0 %v7473_v27  ;;  %4659 = vmatpush3.msra.mxu1 %v7479_v3  ;;  %v8151_v3 = vld [vmem:[#allocation30_spill] sm:$0xff] }
 0xe19   :  { %3335 = vmatprep.subr.mxu0 %v7485_v23  ;;  %4660 = vmatprep.subr.mxu1 %v8037_v4  ;;  %v8152_v23 = vld [vmem:[#allocation28_spill] sm:$0xff] }
 0xe1a   :  { %3336 = vmatpush1.msra.mxu0 %v7492_v36  ;;  %4661 = vmatpush3.msra.mxu1 %v7498_v49  ;;  %v7855_v36 = vadd.f32 %v8152_v23, %v8151_v3 }
 0xe1b   :  { %3337 = vmatprep.subr.mxu0 %v7504_v63  ;;  %4662 = vmatprep.subr.mxu1 %v8037_v4 }
 0xe1c   :  { %3338 = vmatpush1.msra.mxu0 %v7511_v25  ;;  %4663 = vmatpush3.msra.mxu1 %v7517_v46 }
 0xe1d   :  { %3339 = vmatprep.subr.mxu0 %v7523_v21  ;;  %4664 = vmatprep.subr.mxu1 %v8037_v4 }
 0xe1e   :  { %3340 = vmatpush1.msra.mxu0 %v7530_v15  ;;  %4665 = vmatpush3.msra.mxu1 %v7536_v19  ;;  %v7861_v15 = vld [vmem:[%s7944_s10] ss:$0 sm:$0xff] }
 0xe1f   :  { %3341 = vmatprep.subr.mxu0 %v7542_v33  ;;  %4666 = vmatprep.subr.mxu1 %v8037_v4 }
 0xe20   :  { %3342 = vmatpush1.msra.mxu0 %v7549_v22  ;;  %4667 = vmatpush3.msra.mxu1 %v7555_v38  ;;  %v8153_v22 = vld [vmem:[#allocation32_spill] sm:$0xff]  ;;  %v8154_v38 = vld [vmem:[#allocation26_spill] sm:$0xff] }
 0xe21   :  { %3343 = vmatprep.subr.mxu0 %v7561_v29  ;;  %4668 = vmatprep.subr.mxu1 %v8037_v4  ;;  %v7866_v29 = vadd.f32 %v8154_v38, %v8153_v22 }
 0xe22   :  { %3344 = vmatpush1.msra.mxu0 %v7568_v34  ;;  %4669 = vmatpush3.msra.mxu1 %v7574_v35 }
 0xe23   :  { %3345 = vmatprep.subr.mxu0 %v7580_v39  ;;  %4670 = vmatprep.subr.mxu1 %v8037_v4 }
 0xe24   :  { %3346 = vmatpush1.msra.mxu0 %v7587_v60  ;;  %4671 = vmatpush3.msra.mxu1 %v7593_v28 }
 0xe25   :  { %3347 = vmatprep.subr.mxu0 %v7599_v5  ;;  %4672 = vmatprep.subr.mxu1 %v8037_v4 }
 0xe26   :  { %3348 = vmatpush1.msra.mxu0 %v7606_v40  ;;  %4673 = vmatpush3.msra.mxu1 %v7612_v6 }
 0xe27   :  { %3349 = vmatprep.subr.mxu0 %v7618_v42  ;;  %4674 = vmatprep.subr.mxu1 %v8037_v4  ;;  %v3519_v42 = vld [vmem:[%s7945_s11 + $0x70] sm:$0xff] }
 0xe28   :  { %3350 = vmatpush1.msra.mxu0 %v7625_v43  ;;  %4675 = vmatpush3.msra.mxu1 %v7631_v45  ;;  %v3501_v43 = vld [vmem:[#allocation3 + $0x10] sm:$0xff]  ;;  %v3518_v45 = vld [vmem:[%s7945_s11 + $0x68] sm:$0xff] }
 0xe29   :  { %3351 = vmatprep.subr.mxu0 %v8143_v58  ;;  %4676 = vmatprep.subr.mxu1 %v8037_v4 }
 0xe2a   :  { %3352 = vmatpush1.msra.mxu0 %v8144_v59  ;;  %4677 = vmatpush3.msra.mxu1 %v8145_v26 }
 0xe2b   :  { %3353 = vmatprep.subr.mxu0 %v8146_v18  ;;  %4678 = vmatprep.subr.mxu1 %v8037_v4 }
 0xe2c   :  { %3354 = vmatpush1.msra.mxu0 %v8147_v24  ;;  %3387 = vmatprep.mubr.f32.mxu0 %v8037_v4 }
 0xe2d   :  { %4679 = vmatpush3.msra.mxu1 %v8148_v54  ;;  %4680 = vmatprep.mubr.msk.f32.mxu1 %vm5048_vm2, %v8037_v4 }
 0xe2e   :  { %4683 = vmatprep.subr.mxu0 %v3520_v12 }
 0xecd   :  { %v3225_v32 = vpop.f32.mrf.mxu0  ;;  %v3296_v1 = vpop.f32.mrf.mxu1 }
 0xece   :  { %v3300_v31 = vadd.f32 %v3225_v32, %v7850_v13  ;;  %v3314_v19 = vadd.f32 %v7861_v15, %v3296_v1 }
 0xecf   :  { %v4647_v0 = vpop.f32.mrf.mxu1  ;;  %v3227_v27 = vpop.f32.mrf.mxu0 }
 0xed0   :  { %v3752_v2 = vmul.f32 -1.442695, %v3300_v31  ;;  %v3307_v4 = vadd.f32 %v3227_v27, %v7855_v36 }
 0xed2   :  { %4870 = vpow2.f32 %v3752_v2  ;;  %v3753_v49 = vmul.f32 -1.442695, %v3307_v4 }
 0xed4   :  { %4872 = vpow2.f32 %v3753_v49 }
 0xedf   :  { %v4871_v63 = vpop.eup %4870 }
 0xee0   :  { %v3304_v25 = vadd.f32 1.0, %v4871_v63 }
 0xee1   :  { %v4873_v46 = vpop.eup %4872 }
 0xee2   :  { %4874 = vrcp.f32 %v3304_v25  ;;  %v3311_v21 = vadd.f32 1.0, %v4873_v46 }
 0xee4   :  { %4876 = vrcp.f32 %v3311_v21 }
 0xeef   :  { %v4875_v33 = vpop.eup %4874 }
 0xef0   :  { %v3315_v34 = vmul.f32 %v4875_v33, %v3314_v19 }
 0xef1   :  { %v4877_v39 = vpop.eup %4876 }
 0xef2   :  { %v3316_v35 = vadd.f32 %v3315_v34, %v7866_v29  ;;  %v3318_v60 = vsub.f32 1.0, %v4877_v39  ;;  %v3320_v40 = vmul.f32 %v4877_v39, %v7776_v8 }
 0xef4   :  { %4878 = vtanh.f32 %v3316_v35 }
 0xf01   :  { %v4879_v28 = vpop.eup %4878 }
 0xf02   :  { %v3319_v5 = vmul.f32 %v4879_v28, %v3318_v60 }
 0xf04   :  { %v7870_v6 = vadd.f32 %v3320_v40, %v3319_v5 }
 0xf06   :  { %3322 = vst [vmem:[#allocation3 + $0x8] sm:$0xf] %v7870_v6  ;;  %3388 = vmatmul.mubr.f32.vlgmr.msra.gmra.mxu0 %v7870_v6  ;;  %4681 = vmatmul.mubr.f32.vlgmr.msra.gmra.mxu1 %v7870_v6 }
 0xf07   :  { %4684 = vmatpush3.msra.mxu0 %v3520_v12  ;;  %4715 = vmatprep.mubr.f32.mxu0 %v3501_v43  ;;  %v3756_v12 = vld [vmem:[%s7946_s12] ss:$0 sm:$0xff]  ;;  %s5049_s12 = smov [#allocation8]  }
 0xf08   :  { %4685 = vmatprep.subr.mxu0 %v3519_v42  ;;  %s3634_s22 = sshll.u32 %s5049_s12, 4  ;;  %s3635_s22 = int_to_ptr.vmem [resolvable:$true] %s3634_s22 }
 0xf09   :  { %4686 = vmatpush3.msra.mxu0 %v3519_v42  ;;  %s5000_s19 = scalar_lea.vmem %s3635_s22, 128  ;;  %p5005_p6 = scmp.lt.s32.totalorder %s3635_s22, %s3635_s22 }
 0xf0a   :  { %4687 = vmatprep.subr.mxu0 %v3518_v45  ;;  %p5001_p5 = scmp.ne.s32.totalorder %s3635_s22, %s5000_s19  ;;  %p5006_p7 = scmp.lt.s32.totalorder %s5000_s19, %s5000_s19 }
 0xf0b   :  { %4688 = vmatpush3.msra.mxu0 %v3518_v45 }
 0xf0c   :  { %4689 = vmatprep.subr.mxu0 %v3517_v47  ;;  %p5007_p8 = por %p5006_p7, %p5005_p6 }
 0xf0d   :  { %4690 = vmatpush3.msra.mxu0 %v3517_v47 }
 0xf0e   :  { %4691 = vmatprep.subr.mxu0 %v3516_v48  ;;  %p5008_p9 = pnand %p5007_p8, %p5001_p5 }
 0xf0f   :  { %4692 = vmatpush3.msra.mxu0 %v3516_v48 }
 0xf10   :  { %4693 = vmatprep.subr.mxu0 %v3515_v50 }
 0xf11   :  { %4694 = vmatpush3.msra.mxu0 %v3515_v50 }
 0xf12   :  { %4695 = vmatprep.subr.mxu0 %v3514_v10 }
 0xf13   :  { %4696 = vmatpush3.msra.mxu0 %v3514_v10 }
 0xf14   :  { %4697 = vmatprep.subr.mxu0 %v3513_v9 }
 0xf15   :  { %4698 = vmatpush3.msra.mxu0 %v3513_v9 }
 0xf16   :  { %4699 = vmatprep.subr.mxu0 %v3512_v62 }
 0xf17   :  { %4700 = vmatpush3.msra.mxu0 %v3512_v62 }
 0xf18   :  { %4701 = vmatprep.subr.mxu0 %v3511_v52 }
 0xf19   :  { %4702 = vmatpush3.msra.mxu0 %v3511_v52 }
 0xf1a   :  { %4703 = vmatprep.subr.mxu0 %v3510_v17 }
 0xf1b   :  { %4704 = vmatpush3.msra.mxu0 %v3510_v17 }
 0xf1c   :  { %4705 = vmatprep.subr.mxu0 %v3509_v37 }
 0xf1d   :  { %4706 = vmatpush3.msra.mxu0 %v3509_v37 }
 0xf1e   :  { %4707 = vmatprep.subr.mxu0 %v3508_v41 }
 0xf1f   :  { %4708 = vmatpush3.msra.mxu0 %v3508_v41 }
 0xf20   :  { %4709 = vmatprep.subr.mxu0 %v3507_v16 }
 0xf21   :  { %4710 = vmatpush3.msra.mxu0 %v3507_v16 }
 0xf22   :  { %4711 = vmatprep.subr.mxu0 %v3506_v55 }
 0xf23   :  { %4712 = vmatpush3.msra.mxu0 %v3506_v55 }
 0xf24   :  { %4713 = vmatprep.subr.mxu0 %v3505_v53 }
 0xf25   :  { %4714 = vmatpush3.msra.mxu0 %v3505_v53 }
 0xf26   :  { %4716 = vmatmul.mubr.f32.vlgmr.msra.gmra.mxu0 %v3502_v57 }
 0xf27   :  { %4718 = vmatprep.mubr.f32.mxu0 %v3503_v11 }
 0xfc6   :  { %v3389_v14 = vpop.f32.mrf.mxu0  ;;  %v3460_v44 = vpop.f32.mrf.mxu1 }
 0xfc7   :  { %v3465_v30 = vrot.slane %v3389_v14, 4  ;;  %v3484_v56 = vadd.f32 %v7861_v15, %v3460_v44 }
 0xfc8   :  { %v3391_v61 = vpop.f32.mrf.mxu0  ;;  %v4682_v51 = vpop.f32.mrf.mxu1 }
 0xfc9   :  { %v3467_v7 = vadd.f32 %v3465_v30, %v7850_v13  ;;  %v3475_v58 = vrot.slane %v3391_v61, 4  ;;  %v3486_v31 = vrot.slane %v3484_v56, 4 }
 0xfcb   :  { %v3754_v8 = vmul.f32 -1.442695, %v3467_v7  ;;  %v3477_v59 = vadd.f32 %v3475_v58, %v7855_v36  ;;  %v3494_v36 = vrot.slane %v7870_v6, 4 }
 0xfcd   :  { %4880 = vpow2.f32 %v3754_v8  ;;  %v3755_v26 = vmul.f32 -1.442695, %v3477_v59 }
 0xfcf   :  { %4882 = vpow2.f32 %v3755_v26 }
 0xfda   :  { %v4881_v18 = vpop.eup %4880 }
 0xfdb   :  { %v3471_v24 = vadd.f32 1.0, %v4881_v18 }
 0xfdc   :  { %v4883_v54 = vpop.eup %4882 }
 0xfdd   :  { %4884 = vrcp.f32 %v3471_v24  ;;  %v3481_v32 = vadd.f32 1.0, %v4883_v54 }
 0xfdf   :  { %4886 = vrcp.f32 %v3481_v32 }
 0xfe6   :  { %v4717_v20 = vpop.f32.mrf.mxu0 }
 0xfe7   :  { %v3600_v13 = vadd.f32 %v4717_v20, %v3756_v12 }
 0xfe8   :  { %v3594_v1 = vpop.f32.mrf.mxu0 }
 0xfe9   :  { %3614 = vst [vmem:[#allocation7 + $0x8] sm:$0xff] %v3600_v13  ;;  %v3595_v0 = vadd.f32 %v3756_v12, %v3594_v1 }
 0xfea   :  { %v4885_v2 = vpop.eup %4884 }
 0xfeb   :  { %v3488_v27 = vmul.f32 %v4885_v2, %v3486_v31  ;;  %3613 = vst [vmem:[#allocation7] sm:$0xff] %v3595_v0 }
 0xfec   :  { %v4887_v23 = vpop.eup %4886 }
 0xfed   :  { %v3489_v3 = vadd.f32 %v3488_v27, %v7866_v29  ;;  %v3491_v4 = vsub.f32 1.0, %v4887_v23  ;;  %v3496_v25 = vmul.f32 %v4887_v23, %v3494_v36 }
 0xfef   :  { %4888 = vtanh.f32 %v3489_v3 }
 0xffc   :  { %v4889_v49 = vpop.eup %4888 }
 0xffd   :  { %v3492_v63 = vmul.f32 %v4889_v49, %v3491_v4 }
 0xfff   :  { %v3497_v46 = vadd.f32 %v3496_v25, %v3492_v63 }
0x1001   :  { %3498 = vst [vmem:[#allocation3 + $0x8] sm:$0xf0] %v3497_v46  ;;  %3500 = vst [vmem:[#allocation8] sm:$0xf0] %v3497_v46 }
0x1008   :  { %v3504_v21 = vld [vmem:[#allocation3 + $0x8] sm:$0xff] }
0x1009   :  { %4719 = vmatmul.mubr.f32.gmra.mxu0 %v3504_v21 }
0x100a   :  { %5011 = shalt.err (!%p5008_p9)
}
0x100b   :  { %s5050_s27 = smov 64   ;;  %s5051_s4 = smov 4  }
0x100c   :  { %3640 = dma.vmem_to_hbm [thread:$0]  %s3635_s22, 128, %s7948_s14, [#allocation9], %s5050_s27, %s5050_s27, %s5051_s4  }
0x100d   :  { %s5052_s5 = smov [#allocation7]  }
0x100e   :  { %s3622_s25 = sshll.u32 %s5052_s5, 4  ;;  %s3623_s25 = int_to_ptr.vmem [resolvable:$true] %s3622_s25 }
0x100f   :  { %s5020_s30 = scalar_lea.vmem %s3623_s25, 512  ;;  %p5025_p11 = scmp.lt.s32.totalorder %s3623_s25, %s3623_s25 }
0x1010   :  { %p5021_p10 = scmp.ne.s32.totalorder %s3623_s25, %s5020_s30  ;;  %p5026_p12 = scmp.lt.s32.totalorder %s5020_s30, %s5020_s30 }
0x1012   :  { %p5027_p13 = por %p5026_p12, %p5025_p11 }
0x1014   :  { %p5028_p0 = pnand %p5027_p13, %p5021_p10 }
0x10c9   :  { %v4720_v15 = vpop.f32.mrf.mxu0 }
0x10ca   :  { %v3610_v19 = vadd.f32 %v4720_v15, %v3756_v12 }
0x10cb   :  { %v3604_v33 = vpop.f32.mrf.mxu0 }
0x10cc   :  { %3616 = vst [vmem:[#allocation7 + $0x18] sm:$0xff] %v3610_v19  ;;  %v3605_v22 = vadd.f32 %v3756_v12, %v3604_v33 }
0x10ce   :  { %3615 = vst [vmem:[#allocation7 + $0x10] sm:$0xff] %v3605_v22 }
0x10cf   :  { %5031 = shalt.err (!%p5028_p0)
}
0x10d0   :  { %s5053_s15 = smov 128   ;;  %s5054_s29 = smov 8  }
0x10d1   :  { %3628 = dma.vmem_to_hbm [thread:$0]  %s3623_s25, 512, %s7947_s13, [#allocation5], %s5053_s15, %s5053_s15, %s5054_s29  }
0x10d2   :  { %5042 = dma.done.wait [#allocation5], 512  }
0x10d3   :  { %5043 = vsyncadd [#allocation5], 4294966784 }
0x10d4   :  { %5044 = dma.done.wait [#allocation9], 128  }
0x10d5   :  { %5045 = vsyncadd [#allocation9], 4294967168 }
0x10d6   :  { %3647 = vsyncpa [#allocation5], 1 }
0x10d7   :  { %3648 = vsyncpa [#allocation9], 1 }
0x10d8   :  { %3649 = vsyncpa [#allocation6], 1 }

</bundles_post_ra>
